<compile_context>
chip_gen: v6e
topology: v6e:2x2x1
jax: 0.10.0
libtpu: 0.0.40
codegen_flags: <defaults>
</compile_context>

<pallas_src>
import functools

import jax
import jax.numpy as jnp
from jax.experimental import pallas as pl
from jax.experimental.pallas import tpu as pltpu

_SUBLANE = 8
_LANE = 128


def _round_up(v, m):
    return ((v + m - 1) // m) * m


def _vmem_limit(block_bytes):
    # 2x for double-buffering + generous slack; capped to v7x physical (64 MiB).
    return int(min(64 * 2**20, max(32 * 2**20, 2 * block_bytes + 8 * 2**20)))


# ----------------------------------------------------------------------------
# Pallas kernels
# ----------------------------------------------------------------------------
def _in_proj_kernel(x_ref, w_ref, b_ref, o_ref):
    """Layer-0 input projection for TB time steps: gi0 = x @ W_ih0 + b_ih0.

    x: (TB, Np, Dp)  ->  flattened to (TB*Np, Dp) for a proper MXU M dimension.
    """
    TB, Np, Dp = x_ref.shape
    G = o_ref.shape[-1]
    x = x_ref[...].reshape(TB * Np, Dp).astype(w_ref.dtype)
    y = jnp.dot(x, w_ref[...], preferred_element_type=jnp.float32) + b_ref[...]
    o_ref[...] = y.reshape(TB, Np, G).astype(o_ref.dtype)


def _gru_seq_kernel(gi0_ref, mask_ref, h0_ref, whh_ref, bhh_ref,
                    wih_ref, bih_ref, gamma_ref, beta_ref,
                    y_ref, h_ref, *, num_layers, h_real, tb_steps, t_real, guard):
    """One grid step = TB time steps of the full stacked GRU + fused LayerNorm.

    gi0:  (TB, NB, 3Hp)  layer-0 input gates (bias folded in)
    mask: (TB, NB, 1)    per-step mask (lane-broadcast inside the kernel)
    h0:   (L, NB, Hp)    initial hidden state (read only at time-block 0)
    whh:  (L, Hp, 3Hp)   recurrent weights (VMEM-resident)
    bhh:  (L, 1, 3Hp)
    wih:  (L, Hp, 3Hp)   input weights for layers >= 1 (row 0 unused)
    bih:  (L, 1, 3Hp)
    gamma/beta: (1, Hp)  LayerNorm params
    y:    (TB, NB, Hp)   LayerNorm'ed top-layer output
    h:    (L, NB, Hp)    carried hidden state (resident output accumulator)
    """
    tb = pl.program_id(1)

    @pl.when(tb == 0)
    def _init():
        h_ref[...] = h0_ref[...]

    w_dt = whh_ref.dtype
    Hp = h_ref.shape[-1]
    inv_n = 1.0 / float(h_real)
    gamma = gamma_ref[...]
    beta = beta_ref[...]
    t0 = tb * tb_steps

    def step(s):
        mask = mask_ref[s]                                # (NB, 1) -> lane broadcast
        layer_out = None
        for l in range(num_layers):                       # static unroll (small L)
            # TODO(synk): switch to lax.fori_loop with dynamic whh_ref[l] if L grows > ~4.
            h_prev = h_ref[l] * mask
            if l == 0:
                gi = gi0_ref[s].astype(jnp.float32)       # hoisted projection
            else:
                gi = (jnp.dot(layer_out.astype(w_dt), wih_ref[l],
                              preferred_element_type=jnp.float32) + bih_ref[l])
            gh = (jnp.dot(h_prev.astype(w_dt), whh_ref[l],
                          preferred_element_type=jnp.float32) + bhh_ref[l])
            # Gate order (r, z, n); each slice is a 128-lane aligned block.
            r = jax.nn.sigmoid(gi[:, 0:Hp] + gh[:, 0:Hp])
            z = jax.nn.sigmoid(gi[:, Hp:2 * Hp] + gh[:, Hp:2 * Hp])
            n = jnp.tanh(gi[:, 2 * Hp:3 * Hp] + r * gh[:, 2 * Hp:3 * Hp])
            h_new = n + z * (h_prev - n)                  # == (1-z)*n + z*h_prev
            h_ref[l] = h_new
            layer_out = h_new

        # Fused LayerNorm.  Padded feature lanes of layer_out are exactly 0 (zero-padded
        # weights/biases/h0), so sums over all Hp lanes equal sums over the real H lanes.
        x = layer_out
        mean = jnp.sum(x, axis=-1, keepdims=True) * inv_n
        ex2 = jnp.sum(x * x, axis=-1, keepdims=True) * inv_n
        var = ex2 - mean * mean
        y = (x - mean) * jax.lax.rsqrt(var + 1e-5)
        y_ref[s] = (y * gamma + beta).astype(y_ref.dtype)

    for s in range(tb_steps):                             # static unroll over the block
        if guard:
            @pl.when(t0 + s < t_real)
            def _do(s=s):
                step(s)
        else:
            step(s)


# ----------------------------------------------------------------------------
# pallas_call wrappers
# ----------------------------------------------------------------------------
def _input_projection(x_seq, w_ih0, b_ih0, tb_steps):
    """gi0 = x @ W_ih0 + b_ih0 for all (padded) T steps, TB steps per grid iteration."""
    Tp, Np, Dp = x_seq.shape
    G = w_ih0.shape[1]
    n_tb = Tp // tb_steps
    out_dtype = w_ih0.dtype                       # bf16 halves the gi0 HBM stream
    block_bytes = (tb_steps * Np * Dp * 4 + Dp * G * w_ih0.dtype.itemsize + G * 4
                   + tb_steps * Np * G * jnp.dtype(out_dtype).itemsize)
    return pl.pallas_call(
        _in_proj_kernel,
        out_shape=jax.ShapeDtypeStruct((Tp, Np, G), out_dtype),
        grid_spec=pltpu.PrefetchScalarGridSpec(
            num_scalar_prefetch=0,
            grid=(n_tb,),
            in_specs=[
                pl.BlockSpec((tb_steps, Np, Dp), lambda t: (t, 0, 0)),
                pl.BlockSpec((Dp, G), lambda t: (0, 0)),       # resident
                pl.BlockSpec((1, G), lambda t: (0, 0)),        # resident
            ],
            out_specs=pl.BlockSpec((tb_steps, Np, G), lambda t: (t, 0, 0)),
        ),
        compiler_params=pltpu.CompilerParams(
            dimension_semantics=("parallel",),
            vmem_limit_bytes=_vmem_limit(block_bytes)),
    )(x_seq, w_ih0, b_ih0)


def _gru_sequence(gi0, m_seq, h0, packed, *, tb_steps, nb, t_real, guard):
    """Fused stacked-GRU recurrence (time-blocked) + LayerNorm in a single pallas_call."""
    Tp, Np, G = gi0.shape
    L, _, Hp = h0.shape
    n_tb = Tp // tb_steps
    n_b = Np // nb
    w_bytes = packed["whh"].dtype.itemsize
    block_bytes = (tb_steps * nb * G * gi0.dtype.itemsize    # gi0
                   + tb_steps * nb * 4                       # mask
                   + 2 * L * nb * Hp * 4                     # h0 + h out
                   + 2 * L * Hp * G * w_bytes                # whh + wih
                   + 2 * L * G * 4 + 2 * Hp * 4              # biases + LN params
                   + tb_steps * nb * Hp * 4)                 # y out
    kernel = functools.partial(
        _gru_seq_kernel, num_layers=L, h_real=packed["H"],
        tb_steps=tb_steps, t_real=t_real, guard=guard)
    return pl.pallas_call(
        kernel,
        out_shape=(jax.ShapeDtypeStruct((Tp, Np, Hp), jnp.float32),
                   jax.ShapeDtypeStruct((L, Np, Hp), jnp.float32)),
        grid_spec=pltpu.PrefetchScalarGridSpec(
            num_scalar_prefetch=0,
            grid=(n_b, n_tb),
            in_specs=[
                pl.BlockSpec((tb_steps, nb, G), lambda b, t: (t, b, 0)),   # gi0
                pl.BlockSpec((tb_steps, nb, 1), lambda b, t: (t, b, 0)),   # mask
                pl.BlockSpec((L, nb, Hp), lambda b, t: (0, b, 0)),         # h0
                pl.BlockSpec((L, Hp, G), lambda b, t: (0, 0, 0)),          # w_hh (resident)
                pl.BlockSpec((L, 1, G), lambda b, t: (0, 0, 0)),           # b_hh (resident)
                pl.BlockSpec((L, Hp, G), lambda b, t: (0, 0, 0)),          # w_ih >=1 (resident)
                pl.BlockSpec((L, 1, G), lambda b, t: (0, 0, 0)),           # b_ih >=1 (resident)
                pl.BlockSpec((1, Hp), lambda b, t: (0, 0)),                # gamma (resident)
                pl.BlockSpec((1, Hp), lambda b, t: (0, 0)),                # beta (resident)
            ],
            out_specs=(
                pl.BlockSpec((tb_steps, nb, Hp), lambda b, t: (t, b, 0)),  # y
                pl.BlockSpec((L, nb, Hp), lambda b, t: (0, b, 0)),         # final h
            ),
        ),
        compiler_params=pltpu.CompilerParams(
            dimension_semantics=("parallel", "arbitrary"),  # batch || , time sequential
            vmem_limit_bytes=_vmem_limit(block_bytes)),
    )(gi0, m_seq, h0,
      packed["whh"], packed["bhh"], packed["wih_up"], packed["bih_up"],
      packed["gamma"], packed["beta"])


# ----------------------------------------------------------------------------
# Parameter packing (PyTorch layout -> padded, gate-aligned TPU layout)
# ----------------------------------------------------------------------------
def pack_params(layers, ln, mxu_dtype=jnp.float32):
    """layers[l]: dict with PyTorch-shaped w_ih (3H, D_l), w_hh (3H, H), b_ih/b_hh (3H,).
    ln: dict gamma/beta (H,).  Use mxu_dtype=jnp.bfloat16 on v6e/v7x (MXU-native, halves
    resident weight VMEM and the gi0 HBM stream); float32 matches PyTorch exactly."""
    L = len(layers)
    H = ln["gamma"].shape[0]
    D = layers[0]["w_ih"].shape[1]
    Hp = _round_up(H, _LANE)
    Dp = _round_up(D, _LANE)
    G = 3 * Hp

    def pack_w(w, in_pad):
        in_dim = w.shape[1]
        w = w.reshape(3, H, in_dim)                     # gates (r, z, n)
        w = jnp.transpose(w, (2, 0, 1))                 # (in_dim, 3, H)
        w = jnp.pad(w, ((0, in_pad - in_dim), (0, 0), (0, Hp - H)))
        return w.reshape(in_pad, G)

    def pack_b(b):
        b = b.reshape(3, H)
        b = jnp.pad(b, ((0, 0), (0, Hp - H)))
        return b.reshape(1, G)

    w_ih0 = pack_w(layers[0]["w_ih"], Dp).astype(mxu_dtype)
    b_ih0 = pack_b(layers[0]["b_ih"]).astype(jnp.float32)

    whh = jnp.stack([pack_w(p["w_hh"], Hp) for p in layers], 0).astype(mxu_dtype)
    bhh = jnp.stack([pack_b(p["b_hh"]) for p in layers], 0).astype(jnp.float32)

    # w_ih / b_ih for layers >= 1; row 0 is unused (layer 0 uses the hoisted projection).
    wih_up = [jnp.zeros((Hp, G), jnp.float32)]
    bih_up = [jnp.zeros((1, G), jnp.float32)]
    for p in layers[1:]:
        wih_up.append(pack_w(p["w_ih"], Hp))
        bih_up.append(pack_b(p["b_ih"]))
    wih_up = jnp.stack(wih_up, 0).astype(mxu_dtype)
    bih_up = jnp.stack(bih_up, 0).astype(jnp.float32)

    gamma = jnp.pad(ln["gamma"], (0, Hp - H)).reshape(1, Hp).astype(jnp.float32)
    beta = jnp.pad(ln["beta"], (0, Hp - H)).reshape(1, Hp).astype(jnp.float32)

    return dict(w_ih0=w_ih0, b_ih0=b_ih0, whh=whh, bhh=bhh,
                wih_up=wih_up, bih_up=bih_up, gamma=gamma, beta=beta,
                L=L, H=H, D=D, Hp=Hp, Dp=Dp)


# ----------------------------------------------------------------------------
# RNNLayer forward (both branches of the PyTorch module go through T = B // N)
# ----------------------------------------------------------------------------
def rnn_layer_forward(packed, x, hxs, masks, tb_max=16):
    """x: (B, D) with B == N (single step) or B == T*N (rollout);
    hxs: (N, L, H); masks: (B, 1).  Returns (x_out (B, H), hxs_out (N, L, H))."""
    N, L, H = hxs.shape
    B, D = x.shape
    assert B % N == 0
    T = B // N
    Hp, Dp = packed["Hp"], packed["Dp"]
    Np = _round_up(N, _SUBLANE)

    # Time blocking: TB steps per grid iteration (amortizes per-grid-step overhead).
    TB = T if T <= tb_max else tb_max
    Tp = _round_up(T, TB)
    guard = (Tp != T)
    # Batch blocking: >1 block lets v7x megacore-shard the sequential recurrence.
    NB = Np // 2 if (Np >= 16 and (Np // 2) % _SUBLANE == 0) else Np

    x_seq = jnp.pad(x.reshape(T, N, D).astype(jnp.float32),
                    ((0, Tp - T), (0, Np - N), (0, Dp - D)))
    m_seq = jnp.pad(masks.reshape(T, N, 1).astype(jnp.float32),
                    ((0, Tp - T), (0, Np - N), (0, 0)))
    h0 = jnp.pad(jnp.transpose(hxs, (1, 0, 2)).astype(jnp.float32),
                 ((0, 0), (0, Np - N), (0, Hp - H)))

    # Hoisted layer-0 input projection for all time steps (batch/time-parallel matmul).
    gi0 = _input_projection(x_seq, packed["w_ih0"], packed["b_ih0"], TB)

    # Fused time-blocked sequential recurrence + LayerNorm.
    y, h_fin = _gru_sequence(gi0, m_seq, h0, packed,
                             tb_steps=TB, nb=NB, t_real=T, guard=guard)

    x_out = y[:T, :N, :H].reshape(T * N, H)
    h_out = jnp.transpose(h_fin, (1, 0, 2))[:N, :, :H]
    return x_out, h_out


# ----------------------------------------------------------------------------
# Deterministic init (orthogonal weights, zero biases, LN weight=1) + pure-JAX reference
# ----------------------------------------------------------------------------
def init_params(key, inputs_dim, hidden, recurrent_N):
    orth = jax.nn.initializers.orthogonal()
    layers = []
    for l in range(recurrent_N):
        in_dim = inputs_dim if l == 0 else hidden
        key, k1, k2 = jax.random.split(key, 3)
        layers.append(dict(
            w_ih=orth(k1, (3 * hidden, in_dim), jnp.float32),   # PyTorch layout
            w_hh=orth(k2, (3 * hidden, hidden), jnp.float32),
            b_ih=jnp.zeros((3 * hidden,), jnp.float32),
            b_hh=jnp.zeros((3 * hidden,), jnp.float32),
        ))
    ln = dict(gamma=jnp.ones((hidden,), jnp.float32),
              beta=jnp.zeros((hidden,), jnp.float32))
    return layers, ln


def _ref_forward(layers, ln, x, hxs, masks):
    """Plain-JAX reference (per-step masking; equivalent to PyTorch for binary masks)."""
    N, L, H = hxs.shape
    B, D = x.shape
    T = B // N
    x_seq = x.reshape(T, N, D)
    m_seq = masks.reshape(T, N, 1)
    h = jnp.transpose(hxs, (1, 0, 2))
    outs = []
    for t in range(T):
        inp = x_seq[t]
        new_h = []
        for l in range(L):
            p = layers[l]
            hl = h[l] * m_seq[t]
            gi = inp @ p["w_ih"].T + p["b_ih"]
            gh = hl @ p["w_hh"].T + p["b_hh"]
            i_r, i_z, i_n = jnp.split(gi, 3, axis=-1)
            h_r, h_z, h_n = jnp.split(gh, 3, axis=-1)
            r = jax.nn.sigmoid(i_r + h_r)
            z = jax.nn.sigmoid(i_z + h_z)
            n = jnp.tanh(i_n + r * h_n)
            hl_new = (1.0 - z) * n + z * hl
            new_h.append(hl_new)
            inp = hl_new
        h = jnp.stack(new_h, 0)
        outs.append(inp)
    out = jnp.stack(outs, 0).reshape(T * N, H)
    mean = out.mean(-1, keepdims=True)
    var = ((out - mean) ** 2).mean(-1, keepdims=True)
    y = (out - mean) / jnp.sqrt(var + 1e-5) * ln["gamma"] + ln["beta"]
    return y, jnp.transpose(h, (1, 0, 2))


# ----------------------------------------------------------------------------
if __name__ == "__main__":
    key = jax.random.PRNGKey(0)
    inputs_dim, hidden, recurrent_N = 32, 32, 1
    N, T = 4, 8

    kp, kx, kh, km, kx1, km1, kp2, kx2, kh2, km2 = jax.random.split(key, 10)
    layers, ln = init_params(kp, inputs_dim, hidden, recurrent_N)
    packed = pack_params(layers, ln)                     # float32: exact vs reference
    fwd = jax.jit(functools.partial(rnn_layer_forward, packed))

    # --- rollout (T-step) branch ---
    x = jax.random.normal(kx, (T * N, inputs_dim), jnp.float32)
    hxs = jax.random.normal(kh, (N, recurrent_N, hidden), jnp.float32)
    masks = (jax.random.uniform(km, (T * N, 1)) > 0.2).astype(jnp.float32)

    x_out, h_out = fwd(x, hxs, masks)
    jax.block_until_ready((x_out, h_out))
    x_r, h_r = _ref_forward(layers, ln, x, hxs, masks)
    assert x_out.shape == (T * N, hidden) and h_out.shape == (N, recurrent_N, hidden)
    assert jnp.allclose(x_out, x_r, atol=5e-2, rtol=5e-2)
    assert jnp.allclose(h_out, h_r, atol=5e-2, rtol=5e-2)

    # --- single-step branch (B == N) ---
    x1 = jax.random.normal(kx1, (N, inputs_dim), jnp.float32)
    masks1 = (jax.random.uniform(km1, (N, 1)) > 0.2).astype(jnp.float32)
    x_out1, h_out1 = fwd(x1, hxs, masks1)
    jax.block_until_ready((x_out1, h_out1))
    x_r1, h_r1 = _ref_forward(layers, ln, x1, hxs, masks1)
    assert x_out1.shape == (N, hidden) and h_out1.shape == (N, recurrent_N, hidden)
    assert jnp.allclose(x_out1, x_r1, atol=5e-2, rtol=5e-2)
    assert jnp.allclose(h_out1, h_r1, atol=5e-2, rtol=5e-2)

    # --- multi-layer (recurrent_N=2) rollout, T not a multiple of the time block ---
    layers2, ln2 = init_params(kp2, inputs_dim, hidden, 2)
    packed2 = pack_params(layers2, ln2)
    fwd2 = jax.jit(functools.partial(rnn_layer_forward, packed2))
    T2 = 3
    x2 = jax.random.normal(kx2, (T2 * N, inputs_dim), jnp.float32)
    hxs2 = jax.random.normal(kh2, (N, 2, hidden), jnp.float32)
    masks2 = (jax.random.uniform(km2, (T2 * N, 1)) > 0.2).astype(jnp.float32)
    x_out2, h_out2 = fwd2(x2, hxs2, masks2)
    jax.block_until_ready((x_out2, h_out2))
    x_r2, h_r2 = _ref_forward(layers2, ln2, x2, hxs2, masks2)
    assert jnp.allclose(x_out2, x_r2, atol=5e-2, rtol=5e-2)
    assert jnp.allclose(h_out2, h_r2, atol=5e-2, rtol=5e-2)

    # --- bf16 MXU path (recommended on v6e/v7x): looser tolerance vs f32 reference ---
    packed_bf16 = pack_params(layers, ln, mxu_dtype=jnp.bfloat16)
    fwd_bf16 = jax.jit(functools.partial(rnn_layer_forward, packed_bf16))
    x_out_b, h_out_b = fwd_bf16(x, hxs, masks)
    jax.block_until_ready((x_out_b, h_out_b))
    assert jnp.allclose(x_out_b, x_r, atol=1e-1, rtol=1e-1)
    assert jnp.allclose(h_out_b, h_r, atol=1e-1, rtol=1e-1)

    print("KERNEL_OK")
</pallas_src>

<mosaic_0001>
module attributes {stable_mosaic.version = 11 : i64} {
  func.func @_in_proj_kernel(%arg0: i32, %arg1: memref<8x8x128xf32, #tpu.memory_space<vmem>>, %arg2: memref<128x384xf32, #tpu.memory_space<vmem>>, %arg3: memref<1x384xf32, #tpu.memory_space<vmem>>, %arg4: memref<8x8x384xf32, #tpu.memory_space<vmem>>) attributes {dimension_semantics = [#tpu.dimension_semantics<parallel>], iteration_bounds = array<i64: 1>, scalar_prefetch = 0 : i64, scratch_operands = 0 : i64, tpu.core_type = #tpu.core_type<tc>, window_params = [{transform_indices = @transform_0, window_bounds = array<i64: 8, 8, 128>}, {pipeline_mode = #tpu.pipeline_mode<synchronous>, transform_indices = @transform_1, window_bounds = array<i64: 128, 384>}, {pipeline_mode = #tpu.pipeline_mode<synchronous>, transform_indices = @transform_2, window_bounds = array<i64: 1, 384>}, {transform_indices = @transform_3, window_bounds = array<i64: 8, 8, 384>}]} {
    %c0 = arith.constant 0 : index
    %c0_0 = arith.constant 0 : index
    %c0_1 = arith.constant 0 : index
    %0 = vector.load %arg1[%c0, %c0_0, %c0_1] : memref<8x8x128xf32, #tpu.memory_space<vmem>>, vector<8x8x128xf32>
    %1 = vector.shape_cast %0 : vector<8x8x128xf32> to vector<64x128xf32>
    %c0_2 = arith.constant 0 : index
    %c0_3 = arith.constant 0 : index
    %2 = vector.load %arg2[%c0_2, %c0_3] : memref<128x384xf32, #tpu.memory_space<vmem>>, vector<128x384xf32>
    %cst = arith.constant dense<0.000000e+00> : vector<64x384xf32>
    %3 = tpu.matmul %1, %2, %cst {dimension_numbers = #tpu.dot_dimension_numbers<[1], [0], [0], [1], [0, 0, 1, 1], [], []>} : vector<64x128xf32>, vector<128x384xf32>, vector<64x384xf32> -> vector<64x384xf32>
    %c0_4 = arith.constant 0 : index
    %c0_5 = arith.constant 0 : index
    %4 = vector.load %arg3[%c0_4, %c0_5] : memref<1x384xf32, #tpu.memory_space<vmem>>, vector<1x384xf32>
    %5 = vector.broadcast %4 : vector<1x384xf32> to vector<64x384xf32>
    %6 = arith.addf %3, %5 : vector<64x384xf32>
    %7 = vector.shape_cast %6 : vector<64x384xf32> to vector<8x8x384xf32>
    %c0_6 = arith.constant 0 : index
    %c0_7 = arith.constant 0 : index
    %c0_8 = arith.constant 0 : index
    %8 = vector.load %arg4[%c0_6, %c0_7, %c0_8] : memref<8x8x384xf32, #tpu.memory_space<vmem>>, vector<8x8x384xf32>
    tpu.vector_store %arg4[%c0_6, %c0_7, %c0_8], %7 {strides = array<i32>} : memref<8x8x384xf32, #tpu.memory_space<vmem>>, vector<8x8x384xf32>,
    return
  }
  func.func @transform_0(%arg0: i32) -> (i32, i32, i32) {
    %c0_i32 = arith.constant 0 : i32
    %c0_i32_0 = arith.constant 0 : i32
    %c0_i32_1 = arith.constant 0 : i32
    return %arg0, %c0_i32, %c0_i32_0 : i32, i32, i32
  }
  func.func @transform_1(%arg0: i32) -> (i32, i32) {
    %c0_i32 = arith.constant 0 : i32
    %c0_i32_0 = arith.constant 0 : i32
    %c0_i32_1 = arith.constant 0 : i32
    return %c0_i32, %c0_i32_0 : i32, i32
  }
  func.func @transform_2(%arg0: i32) -> (i32, i32) {
    %c0_i32 = arith.constant 0 : i32
    %c0_i32_0 = arith.constant 0 : i32
    %c0_i32_1 = arith.constant 0 : i32
    return %c0_i32, %c0_i32_0 : i32, i32
  }
  func.func @transform_3(%arg0: i32) -> (i32, i32, i32) {
    %c0_i32 = arith.constant 0 : i32
    %c0_i32_0 = arith.constant 0 : i32
    %c0_i32_1 = arith.constant 0 : i32
    return %arg0, %c0_i32, %c0_i32_0 : i32, i32, i32
  }
}

module attributes {stable_mosaic.version = 11 : i64} {
  func.func @_gru_seq_kernel(%arg0: i32, %arg1: i32, %arg2: memref<8x8x384xf32, #tpu.memory_space<vmem>>, %arg3: memref<8x8x1xf32, #tpu.memory_space<vmem>>, %arg4: memref<1x8x128xf32, #tpu.memory_space<vmem>>, %arg5: memref<1x128x384xf32, #tpu.memory_space<vmem>>, %arg6: memref<1x1x384xf32, #tpu.memory_space<vmem>>, %arg7: memref<1x128x384xf32, #tpu.memory_space<vmem>>, %arg8: memref<1x1x384xf32, #tpu.memory_space<vmem>>, %arg9: memref<1x128xf32, #tpu.memory_space<vmem>>, %arg10: memref<1x128xf32, #tpu.memory_space<vmem>>, %arg11: memref<8x8x128xf32, #tpu.memory_space<vmem>>, %arg12: memref<1x8x128xf32, #tpu.memory_space<vmem>>) attributes {dimension_semantics = [#tpu.dimension_semantics<parallel>, #tpu.dimension_semantics<arbitrary>], iteration_bounds = array<i64: 1, 1>, scalar_prefetch = 0 : i64, scratch_operands = 0 : i64, tpu.core_type = #tpu.core_type<tc>, window_params = [{transform_indices = @transform_0, window_bounds = array<i64: 8, 8, 384>}, {transform_indices = @transform_1, window_bounds = array<i64: 8, 8, 1>}, {transform_indices = @transform_2, window_bounds = array<i64: 1, 8, 128>}, {pipeline_mode = #tpu.pipeline_mode<synchronous>, transform_indices = @transform_3, window_bounds = array<i64: 1, 128, 384>}, {pipeline_mode = #tpu.pipeline_mode<synchronous>, transform_indices = @transform_4, window_bounds = array<i64: 1, 1, 384>}, {pipeline_mode = #tpu.pipeline_mode<synchronous>, transform_indices = @transform_5, window_bounds = array<i64: 1, 128, 384>}, {pipeline_mode = #tpu.pipeline_mode<synchronous>, transform_indices = @transform_6, window_bounds = array<i64: 1, 1, 384>}, {pipeline_mode = #tpu.pipeline_mode<synchronous>, transform_indices = @transform_7, window_bounds = array<i64: 1, 128>}, {pipeline_mode = #tpu.pipeline_mode<synchronous>, transform_indices = @transform_8, window_bounds = array<i64: 1, 128>}, {transform_indices = @transform_9, window_bounds = array<i64: 8, 8, 128>}, {transform_indices = @transform_10, window_bounds = array<i64: 1, 8, 128>}]} {
    %c0_i32 = arith.constant 0 : i32
    %0 = arith.cmpi eq, %arg1, %c0_i32 : i32
    %1 = arith.extui %0 : i1 to i32
    %c0_i32_0 = arith.constant 0 : i32
    %2 = arith.cmpi ne, %1, %c0_i32_0 : i32
    scf.if %2 {
      %c0_228 = arith.constant 0 : index
      %c0_229 = arith.constant 0 : index
      %c0_230 = arith.constant 0 : index
      %541 = vector.load %arg4[%c0_228, %c0_229, %c0_230] : memref<1x8x128xf32, #tpu.memory_space<vmem>>, vector<1x8x128xf32>
      %c0_231 = arith.constant 0 : index
      %c0_232 = arith.constant 0 : index
      %c0_233 = arith.constant 0 : index
      %542 = vector.load %arg12[%c0_231, %c0_232, %c0_233] : memref<1x8x128xf32, #tpu.memory_space<vmem>>, vector<1x8x128xf32>
      tpu.vector_store %arg12[%c0_231, %c0_232, %c0_233], %541 {strides = array<i32>} : memref<1x8x128xf32, #tpu.memory_space<vmem>>, vector<1x8x128xf32>,
    } else {
    }
    %c0 = arith.constant 0 : index
    %c0_1 = arith.constant 0 : index
    %3 = vector.load %arg9[%c0, %c0_1] : memref<1x128xf32, #tpu.memory_space<vmem>>, vector<1x128xf32>
    %c0_2 = arith.constant 0 : index
    %c0_3 = arith.constant 0 : index
    %4 = vector.load %arg10[%c0_2, %c0_3] : memref<1x128xf32, #tpu.memory_space<vmem>>, vector<1x128xf32>
    %c0_4 = arith.constant 0 : index
    %c0_5 = arith.constant 0 : index
    %c0_6 = arith.constant 0 : index
    %5 = vector.load %arg3[%c0_4, %c0_5, %c0_6] : memref<8x8x1xf32, #tpu.memory_space<vmem>>, vector<1x8x1xf32>
    %6 = vector.shape_cast %5 : vector<1x8x1xf32> to vector<8x1xf32>
    %c0_7 = arith.constant 0 : index
    %c0_8 = arith.constant 0 : index
    %c0_9 = arith.constant 0 : index
    %7 = vector.load %arg12[%c0_7, %c0_8, %c0_9] : memref<1x8x128xf32, #tpu.memory_space<vmem>>, vector<1x8x128xf32>
    %8 = vector.shape_cast %7 : vector<1x8x128xf32> to vector<8x128xf32>
    %9 = vector.broadcast %6 : vector<8x1xf32> to vector<8x128xf32>
    %10 = arith.mulf %8, %9 : vector<8x128xf32>
    %c0_10 = arith.constant 0 : index
    %c0_11 = arith.constant 0 : index
    %c0_12 = arith.constant 0 : index
    %11 = vector.load %arg2[%c0_10, %c0_11, %c0_12] : memref<8x8x384xf32, #tpu.memory_space<vmem>>, vector<1x8x384xf32>
    %12 = vector.shape_cast %11 : vector<1x8x384xf32> to vector<8x384xf32>
    %c0_13 = arith.constant 0 : index
    %c0_14 = arith.constant 0 : index
    %c0_15 = arith.constant 0 : index
    %13 = vector.load %arg5[%c0_13, %c0_14, %c0_15] : memref<1x128x384xf32, #tpu.memory_space<vmem>>, vector<1x128x384xf32>
    %14 = vector.shape_cast %13 : vector<1x128x384xf32> to vector<128x384xf32>
    %cst = arith.constant dense<0.000000e+00> : vector<8x384xf32>
    %15 = tpu.matmul %10, %14, %cst {dimension_numbers = #tpu.dot_dimension_numbers<[1], [0], [0], [1], [0, 0, 1, 1], [], []>} : vector<8x128xf32>, vector<128x384xf32>, vector<8x384xf32> -> vector<8x384xf32>
    %c0_16 = arith.constant 0 : index
    %c0_17 = arith.constant 0 : index
    %c0_18 = arith.constant 0 : index
    %16 = vector.load %arg6[%c0_16, %c0_17, %c0_18] : memref<1x1x384xf32, #tpu.memory_space<vmem>>, vector<1x1x384xf32>
    %17 = vector.shape_cast %16 : vector<1x1x384xf32> to vector<1x384xf32>
    %18 = vector.broadcast %17 : vector<1x384xf32> to vector<8x384xf32>
    %19 = arith.addf %15, %18 : vector<8x384xf32>
    %20 = vector.extract_strided_slice %12 {offsets = [0, 0], sizes = [8, 128], strides = [1, 1]} : vector<8x384xf32> to vector<8x128xf32>
    %21 = vector.extract_strided_slice %19 {offsets = [0, 0], sizes = [8, 128], strides = [1, 1]} : vector<8x384xf32> to vector<8x128xf32>
    %22 = arith.addf %20, %21 : vector<8x128xf32>
    %23 = arith.negf %22 : vector<8x128xf32>
    %24 = math.exp %23 : vector<8x128xf32>
    %cst_19 = arith.constant 1.000000e+00 : f32
    %25 = vector.broadcast %cst_19 : f32 to vector<8x128xf32>
    %26 = arith.addf %25, %24 : vector<8x128xf32>
    %27 = arith.divf %25, %26 : vector<8x128xf32>
    %28 = vector.extract_strided_slice %12 {offsets = [0, 128], sizes = [8, 128], strides = [1, 1]} : vector<8x384xf32> to vector<8x128xf32>
    %29 = vector.extract_strided_slice %19 {offsets = [0, 128], sizes = [8, 128], strides = [1, 1]} : vector<8x384xf32> to vector<8x128xf32>
    %30 = arith.addf %28, %29 : vector<8x128xf32>
    %31 = arith.negf %30 : vector<8x128xf32>
    %32 = math.exp %31 : vector<8x128xf32>
    %cst_20 = arith.constant 1.000000e+00 : f32
    %33 = vector.broadcast %cst_20 : f32 to vector<8x128xf32>
    %34 = arith.addf %33, %32 : vector<8x128xf32>
    %35 = arith.divf %33, %34 : vector<8x128xf32>
    %36 = vector.extract_strided_slice %12 {offsets = [0, 256], sizes = [8, 128], strides = [1, 1]} : vector<8x384xf32> to vector<8x128xf32>
    %37 = vector.extract_strided_slice %19 {offsets = [0, 256], sizes = [8, 128], strides = [1, 1]} : vector<8x384xf32> to vector<8x128xf32>
    %38 = arith.mulf %27, %37 : vector<8x128xf32>
    %39 = arith.addf %36, %38 : vector<8x128xf32>
    %40 = math.tanh %39 : vector<8x128xf32>
    %41 = arith.subf %10, %40 : vector<8x128xf32>
    %42 = arith.mulf %35, %41 : vector<8x128xf32>
    %43 = arith.addf %40, %42 : vector<8x128xf32>
    %c0_21 = arith.constant 0 : index
    %c0_22 = arith.constant 0 : index
    %c0_23 = arith.constant 0 : index
    %44 = vector.load %arg12[%c0_21, %c0_22, %c0_23] : memref<1x8x128xf32, #tpu.memory_space<vmem>>, vector<1x8x128xf32>
    %45 = vector.shape_cast %44 : vector<1x8x128xf32> to vector<8x128xf32>
    %46 = vector.shape_cast %43 : vector<8x128xf32> to vector<1x8x128xf32>
    tpu.vector_store %arg12[%c0_21, %c0_22, %c0_23], %46 {strides = array<i32>} : memref<1x8x128xf32, #tpu.memory_space<vmem>>, vector<1x8x128xf32>,
    %cst_24 = arith.constant dense<0.000000e+00> : vector<8xf32>
    %47 = vector.multi_reduction <add>, %43, %cst_24 [1] : vector<8x128xf32> to vector<8xf32>
    %48 = vector.shape_cast %47 : vector<8xf32> to vector<8x1xf32>
    %cst_25 = arith.constant 3.125000e-02 : f32
    %49 = vector.broadcast %cst_25 : f32 to vector<8x1xf32>
    %50 = arith.mulf %48, %49 : vector<8x1xf32>
    %51 = arith.mulf %43, %43 : vector<8x128xf32>
    %cst_26 = arith.constant dense<0.000000e+00> : vector<8xf32>
    %52 = vector.multi_reduction <add>, %51, %cst_26 [1] : vector<8x128xf32> to vector<8xf32>
    %53 = vector.shape_cast %52 : vector<8xf32> to vector<8x1xf32>
    %cst_27 = arith.constant 3.125000e-02 : f32
    %54 = vector.broadcast %cst_27 : f32 to vector<8x1xf32>
    %55 = arith.mulf %53, %54 : vector<8x1xf32>
    %56 = arith.mulf %50, %50 : vector<8x1xf32>
    %57 = arith.subf %55, %56 : vector<8x1xf32>
    %58 = vector.broadcast %50 : vector<8x1xf32> to vector<8x128xf32>
    %59 = arith.subf %43, %58 : vector<8x128xf32>
    %cst_28 = arith.constant 9.99999974E-6 : f32
    %60 = vector.broadcast %cst_28 : f32 to vector<8x1xf32>
    %61 = arith.addf %57, %60 : vector<8x1xf32>
    %62 = math.rsqrt %61 : vector<8x1xf32>
    %63 = vector.broadcast %62 : vector<8x1xf32> to vector<8x128xf32>
    %64 = arith.mulf %59, %63 : vector<8x128xf32>
    %65 = vector.broadcast %3 : vector<1x128xf32> to vector<8x128xf32>
    %66 = arith.mulf %64, %65 : vector<8x128xf32>
    %67 = vector.broadcast %4 : vector<1x128xf32> to vector<8x128xf32>
    %68 = arith.addf %66, %67 : vector<8x128xf32>
    %c0_29 = arith.constant 0 : index
    %c0_30 = arith.constant 0 : index
    %c0_31 = arith.constant 0 : index
    %69 = vector.load %arg11[%c0_29, %c0_30, %c0_31] : memref<8x8x128xf32, #tpu.memory_space<vmem>>, vector<1x8x128xf32>
    %70 = vector.shape_cast %69 : vector<1x8x128xf32> to vector<8x128xf32>
    %71 = vector.shape_cast %68 : vector<8x128xf32> to vector<1x8x128xf32>
    tpu.vector_store %arg11[%c0_29, %c0_30, %c0_31], %71 {strides = array<i32>} : memref<8x8x128xf32, #tpu.memory_space<vmem>>, vector<1x8x128xf32>,
    %c1 = arith.constant 1 : index
    %c0_32 = arith.constant 0 : index
    %c0_33 = arith.constant 0 : index
    %72 = vector.load %arg3[%c1, %c0_32, %c0_33] : memref<8x8x1xf32, #tpu.memory_space<vmem>>, vector<1x8x1xf32>
    %73 = vector.shape_cast %72 : vector<1x8x1xf32> to vector<8x1xf32>
    %c0_34 = arith.constant 0 : index
    %c0_35 = arith.constant 0 : index
    %c0_36 = arith.constant 0 : index
    %74 = vector.load %arg12[%c0_34, %c0_35, %c0_36] : memref<1x8x128xf32, #tpu.memory_space<vmem>>, vector<1x8x128xf32>
    %75 = vector.shape_cast %74 : vector<1x8x128xf32> to vector<8x128xf32>
    %76 = vector.broadcast %73 : vector<8x1xf32> to vector<8x128xf32>
    %77 = arith.mulf %75, %76 : vector<8x128xf32>
    %c1_37 = arith.constant 1 : index
    %c0_38 = arith.constant 0 : index
    %c0_39 = arith.constant 0 : index
    %78 = vector.load %arg2[%c1_37, %c0_38, %c0_39] : memref<8x8x384xf32, #tpu.memory_space<vmem>>, vector<1x8x384xf32>
    %79 = vector.shape_cast %78 : vector<1x8x384xf32> to vector<8x384xf32>
    %c0_40 = arith.constant 0 : index
    %c0_41 = arith.constant 0 : index
    %c0_42 = arith.constant 0 : index
    %80 = vector.load %arg5[%c0_40, %c0_41, %c0_42] : memref<1x128x384xf32, #tpu.memory_space<vmem>>, vector<1x128x384xf32>
    %81 = vector.shape_cast %80 : vector<1x128x384xf32> to vector<128x384xf32>
    %cst_43 = arith.constant dense<0.000000e+00> : vector<8x384xf32>
    %82 = tpu.matmul %77, %81, %cst_43 {dimension_numbers = #tpu.dot_dimension_numbers<[1], [0], [0], [1], [0, 0, 1, 1], [], []>} : vector<8x128xf32>, vector<128x384xf32>, vector<8x384xf32> -> vector<8x384xf32>
    %c0_44 = arith.constant 0 : index
    %c0_45 = arith.constant 0 : index
    %c0_46 = arith.constant 0 : index
    %83 = vector.load %arg6[%c0_44, %c0_45, %c0_46] : memref<1x1x384xf32, #tpu.memory_space<vmem>>, vector<1x1x384xf32>
    %84 = vector.shape_cast %83 : vector<1x1x384xf32> to vector<1x384xf32>
    %85 = vector.broadcast %84 : vector<1x384xf32> to vector<8x384xf32>
    %86 = arith.addf %82, %85 : vector<8x384xf32>
    %87 = vector.extract_strided_slice %79 {offsets = [0, 0], sizes = [8, 128], strides = [1, 1]} : vector<8x384xf32> to vector<8x128xf32>
    %88 = vector.extract_strided_slice %86 {offsets = [0, 0], sizes = [8, 128], strides = [1, 1]} : vector<8x384xf32> to vector<8x128xf32>
    %89 = arith.addf %87, %88 : vector<8x128xf32>
    %90 = arith.negf %89 : vector<8x128xf32>
    %91 = math.exp %90 : vector<8x128xf32>
    %cst_47 = arith.constant 1.000000e+00 : f32
    %92 = vector.broadcast %cst_47 : f32 to vector<8x128xf32>
    %93 = arith.addf %92, %91 : vector<8x128xf32>
    %94 = arith.divf %92, %93 : vector<8x128xf32>
    %95 = vector.extract_strided_slice %79 {offsets = [0, 128], sizes = [8, 128], strides = [1, 1]} : vector<8x384xf32> to vector<8x128xf32>
    %96 = vector.extract_strided_slice %86 {offsets = [0, 128], sizes = [8, 128], strides = [1, 1]} : vector<8x384xf32> to vector<8x128xf32>
    %97 = arith.addf %95, %96 : vector<8x128xf32>
    %98 = arith.negf %97 : vector<8x128xf32>
    %99 = math.exp %98 : vector<8x128xf32>
    %cst_48 = arith.constant 1.000000e+00 : f32
    %100 = vector.broadcast %cst_48 : f32 to vector<8x128xf32>
    %101 = arith.addf %100, %99 : vector<8x128xf32>
    %102 = arith.divf %100, %101 : vector<8x128xf32>
    %103 = vector.extract_strided_slice %79 {offsets = [0, 256], sizes = [8, 128], strides = [1, 1]} : vector<8x384xf32> to vector<8x128xf32>
    %104 = vector.extract_strided_slice %86 {offsets = [0, 256], sizes = [8, 128], strides = [1, 1]} : vector<8x384xf32> to vector<8x128xf32>
    %105 = arith.mulf %94, %104 : vector<8x128xf32>
    %106 = arith.addf %103, %105 : vector<8x128xf32>
    %107 = math.tanh %106 : vector<8x128xf32>
    %108 = arith.subf %77, %107 : vector<8x128xf32>
    %109 = arith.mulf %102, %108 : vector<8x128xf32>
    %110 = arith.addf %107, %109 : vector<8x128xf32>
    %c0_49 = arith.constant 0 : index
    %c0_50 = arith.constant 0 : index
    %c0_51 = arith.constant 0 : index
    %111 = vector.load %arg12[%c0_49, %c0_50, %c0_51] : memref<1x8x128xf32, #tpu.memory_space<vmem>>, vector<1x8x128xf32>
    %112 = vector.shape_cast %111 : vector<1x8x128xf32> to vector<8x128xf32>
    %113 = vector.shape_cast %110 : vector<8x128xf32> to vector<1x8x128xf32>
    tpu.vector_store %arg12[%c0_49, %c0_50, %c0_51], %113 {strides = array<i32>} : memref<1x8x128xf32, #tpu.memory_space<vmem>>, vector<1x8x128xf32>,
    %cst_52 = arith.constant dense<0.000000e+00> : vector<8xf32>
    %114 = vector.multi_reduction <add>, %110, %cst_52 [1] : vector<8x128xf32> to vector<8xf32>
    %115 = vector.shape_cast %114 : vector<8xf32> to vector<8x1xf32>
    %cst_53 = arith.constant 3.125000e-02 : f32
    %116 = vector.broadcast %cst_53 : f32 to vector<8x1xf32>
    %117 = arith.mulf %115, %116 : vector<8x1xf32>
    %118 = arith.mulf %110, %110 : vector<8x128xf32>
    %cst_54 = arith.constant dense<0.000000e+00> : vector<8xf32>
    %119 = vector.multi_reduction <add>, %118, %cst_54 [1] : vector<8x128xf32> to vector<8xf32>
    %120 = vector.shape_cast %119 : vector<8xf32> to vector<8x1xf32>
    %cst_55 = arith.constant 3.125000e-02 : f32
    %121 = vector.broadcast %cst_55 : f32 to vector<8x1xf32>
    %122 = arith.mulf %120, %121 : vector<8x1xf32>
    %123 = arith.mulf %117, %117 : vector<8x1xf32>
    %124 = arith.subf %122, %123 : vector<8x1xf32>
    %125 = vector.broadcast %117 : vector<8x1xf32> to vector<8x128xf32>
    %126 = arith.subf %110, %125 : vector<8x128xf32>
    %cst_56 = arith.constant 9.99999974E-6 : f32
    %127 = vector.broadcast %cst_56 : f32 to vector<8x1xf32>
    %128 = arith.addf %124, %127 : vector<8x1xf32>
    %129 = math.rsqrt %128 : vector<8x1xf32>
    %130 = vector.broadcast %129 : vector<8x1xf32> to vector<8x128xf32>
    %131 = arith.mulf %126, %130 : vector<8x128xf32>
    %132 = vector.broadcast %3 : vector<1x128xf32> to vector<8x128xf32>
    %133 = arith.mulf %131, %132 : vector<8x128xf32>
    %134 = vector.broadcast %4 : vector<1x128xf32> to vector<8x128xf32>
    %135 = arith.addf %133, %134 : vector<8x128xf32>
    %c1_57 = arith.constant 1 : index
    %c0_58 = arith.constant 0 : index
    %c0_59 = arith.constant 0 : index
    %136 = vector.load %arg11[%c1_57, %c0_58, %c0_59] : memref<8x8x128xf32, #tpu.memory_space<vmem>>, vector<1x8x128xf32>
    %137 = vector.shape_cast %136 : vector<1x8x128xf32> to vector<8x128xf32>
    %138 = vector.shape_cast %135 : vector<8x128xf32> to vector<1x8x128xf32>
    tpu.vector_store %arg11[%c1_57, %c0_58, %c0_59], %138 {strides = array<i32>} : memref<8x8x128xf32, #tpu.memory_space<vmem>>, vector<1x8x128xf32>,
    %c2 = arith.constant 2 : index
    %c0_60 = arith.constant 0 : index
    %c0_61 = arith.constant 0 : index
    %139 = vector.load %arg3[%c2, %c0_60, %c0_61] : memref<8x8x1xf32, #tpu.memory_space<vmem>>, vector<1x8x1xf32>
    %140 = vector.shape_cast %139 : vector<1x8x1xf32> to vector<8x1xf32>
    %c0_62 = arith.constant 0 : index
    %c0_63 = arith.constant 0 : index
    %c0_64 = arith.constant 0 : index
    %141 = vector.load %arg12[%c0_62, %c0_63, %c0_64] : memref<1x8x128xf32, #tpu.memory_space<vmem>>, vector<1x8x128xf32>
    %142 = vector.shape_cast %141 : vector<1x8x128xf32> to vector<8x128xf32>
    %143 = vector.broadcast %140 : vector<8x1xf32> to vector<8x128xf32>
    %144 = arith.mulf %142, %143 : vector<8x128xf32>
    %c2_65 = arith.constant 2 : index
    %c0_66 = arith.constant 0 : index
    %c0_67 = arith.constant 0 : index
    %145 = vector.load %arg2[%c2_65, %c0_66, %c0_67] : memref<8x8x384xf32, #tpu.memory_space<vmem>>, vector<1x8x384xf32>
    %146 = vector.shape_cast %145 : vector<1x8x384xf32> to vector<8x384xf32>
    %c0_68 = arith.constant 0 : index
    %c0_69 = arith.constant 0 : index
    %c0_70 = arith.constant 0 : index
    %147 = vector.load %arg5[%c0_68, %c0_69, %c0_70] : memref<1x128x384xf32, #tpu.memory_space<vmem>>, vector<1x128x384xf32>
    %148 = vector.shape_cast %147 : vector<1x128x384xf32> to vector<128x384xf32>
    %cst_71 = arith.constant dense<0.000000e+00> : vector<8x384xf32>
    %149 = tpu.matmul %144, %148, %cst_71 {dimension_numbers = #tpu.dot_dimension_numbers<[1], [0], [0], [1], [0, 0, 1, 1], [], []>} : vector<8x128xf32>, vector<128x384xf32>, vector<8x384xf32> -> vector<8x384xf32>
    %c0_72 = arith.constant 0 : index
    %c0_73 = arith.constant 0 : index
    %c0_74 = arith.constant 0 : index
    %150 = vector.load %arg6[%c0_72, %c0_73, %c0_74] : memref<1x1x384xf32, #tpu.memory_space<vmem>>, vector<1x1x384xf32>
    %151 = vector.shape_cast %150 : vector<1x1x384xf32> to vector<1x384xf32>
    %152 = vector.broadcast %151 : vector<1x384xf32> to vector<8x384xf32>
    %153 = arith.addf %149, %152 : vector<8x384xf32>
    %154 = vector.extract_strided_slice %146 {offsets = [0, 0], sizes = [8, 128], strides = [1, 1]} : vector<8x384xf32> to vector<8x128xf32>
    %155 = vector.extract_strided_slice %153 {offsets = [0, 0], sizes = [8, 128], strides = [1, 1]} : vector<8x384xf32> to vector<8x128xf32>
    %156 = arith.addf %154, %155 : vector<8x128xf32>
    %157 = arith.negf %156 : vector<8x128xf32>
    %158 = math.exp %157 : vector<8x128xf32>
    %cst_75 = arith.constant 1.000000e+00 : f32
    %159 = vector.broadcast %cst_75 : f32 to vector<8x128xf32>
    %160 = arith.addf %159, %158 : vector<8x128xf32>
    %161 = arith.divf %159, %160 : vector<8x128xf32>
    %162 = vector.extract_strided_slice %146 {offsets = [0, 128], sizes = [8, 128], strides = [1, 1]} : vector<8x384xf32> to vector<8x128xf32>
    %163 = vector.extract_strided_slice %153 {offsets = [0, 128], sizes = [8, 128], strides = [1, 1]} : vector<8x384xf32> to vector<8x128xf32>
    %164 = arith.addf %162, %163 : vector<8x128xf32>
    %165 = arith.negf %164 : vector<8x128xf32>
    %166 = math.exp %165 : vector<8x128xf32>
    %cst_76 = arith.constant 1.000000e+00 : f32
    %167 = vector.broadcast %cst_76 : f32 to vector<8x128xf32>
    %168 = arith.addf %167, %166 : vector<8x128xf32>
    %169 = arith.divf %167, %168 : vector<8x128xf32>
    %170 = vector.extract_strided_slice %146 {offsets = [0, 256], sizes = [8, 128], strides = [1, 1]} : vector<8x384xf32> to vector<8x128xf32>
    %171 = vector.extract_strided_slice %153 {offsets = [0, 256], sizes = [8, 128], strides = [1, 1]} : vector<8x384xf32> to vector<8x128xf32>
    %172 = arith.mulf %161, %171 : vector<8x128xf32>
    %173 = arith.addf %170, %172 : vector<8x128xf32>
    %174 = math.tanh %173 : vector<8x128xf32>
    %175 = arith.subf %144, %174 : vector<8x128xf32>
    %176 = arith.mulf %169, %175 : vector<8x128xf32>
    %177 = arith.addf %174, %176 : vector<8x128xf32>
    %c0_77 = arith.constant 0 : index
    %c0_78 = arith.constant 0 : index
    %c0_79 = arith.constant 0 : index
    %178 = vector.load %arg12[%c0_77, %c0_78, %c0_79] : memref<1x8x128xf32, #tpu.memory_space<vmem>>, vector<1x8x128xf32>
    %179 = vector.shape_cast %178 : vector<1x8x128xf32> to vector<8x128xf32>
    %180 = vector.shape_cast %177 : vector<8x128xf32> to vector<1x8x128xf32>
    tpu.vector_store %arg12[%c0_77, %c0_78, %c0_79], %180 {strides = array<i32>} : memref<1x8x128xf32, #tpu.memory_space<vmem>>, vector<1x8x128xf32>,
    %cst_80 = arith.constant dense<0.000000e+00> : vector<8xf32>
    %181 = vector.multi_reduction <add>, %177, %cst_80 [1] : vector<8x128xf32> to vector<8xf32>
    %182 = vector.shape_cast %181 : vector<8xf32> to vector<8x1xf32>
    %cst_81 = arith.constant 3.125000e-02 : f32
    %183 = vector.broadcast %cst_81 : f32 to vector<8x1xf32>
    %184 = arith.mulf %182, %183 : vector<8x1xf32>
    %185 = arith.mulf %177, %177 : vector<8x128xf32>
    %cst_82 = arith.constant dense<0.000000e+00> : vector<8xf32>
    %186 = vector.multi_reduction <add>, %185, %cst_82 [1] : vector<8x128xf32> to vector<8xf32>
    %187 = vector.shape_cast %186 : vector<8xf32> to vector<8x1xf32>
    %cst_83 = arith.constant 3.125000e-02 : f32
    %188 = vector.broadcast %cst_83 : f32 to vector<8x1xf32>
    %189 = arith.mulf %187, %188 : vector<8x1xf32>
    %190 = arith.mulf %184, %184 : vector<8x1xf32>
    %191 = arith.subf %189, %190 : vector<8x1xf32>
    %192 = vector.broadcast %184 : vector<8x1xf32> to vector<8x128xf32>
    %193 = arith.subf %177, %192 : vector<8x128xf32>
    %cst_84 = arith.constant 9.99999974E-6 : f32
    %194 = vector.broadcast %cst_84 : f32 to vector<8x1xf32>
    %195 = arith.addf %191, %194 : vector<8x1xf32>
    %196 = math.rsqrt %195 : vector<8x1xf32>
    %197 = vector.broadcast %196 : vector<8x1xf32> to vector<8x128xf32>
    %198 = arith.mulf %193, %197 : vector<8x128xf32>
    %199 = vector.broadcast %3 : vector<1x128xf32> to vector<8x128xf32>
    %200 = arith.mulf %198, %199 : vector<8x128xf32>
    %201 = vector.broadcast %4 : vector<1x128xf32> to vector<8x128xf32>
    %202 = arith.addf %200, %201 : vector<8x128xf32>
    %c2_85 = arith.constant 2 : index
    %c0_86 = arith.constant 0 : index
    %c0_87 = arith.constant 0 : index
    %203 = vector.load %arg11[%c2_85, %c0_86, %c0_87] : memref<8x8x128xf32, #tpu.memory_space<vmem>>, vector<1x8x128xf32>
    %204 = vector.shape_cast %203 : vector<1x8x128xf32> to vector<8x128xf32>
    %205 = vector.shape_cast %202 : vector<8x128xf32> to vector<1x8x128xf32>
    tpu.vector_store %arg11[%c2_85, %c0_86, %c0_87], %205 {strides = array<i32>} : memref<8x8x128xf32, #tpu.memory_space<vmem>>, vector<1x8x128xf32>,
    %c3 = arith.constant 3 : index
    %c0_88 = arith.constant 0 : index
    %c0_89 = arith.constant 0 : index
    %206 = vector.load %arg3[%c3, %c0_88, %c0_89] : memref<8x8x1xf32, #tpu.memory_space<vmem>>, vector<1x8x1xf32>
    %207 = vector.shape_cast %206 : vector<1x8x1xf32> to vector<8x1xf32>
    %c0_90 = arith.constant 0 : index
    %c0_91 = arith.constant 0 : index
    %c0_92 = arith.constant 0 : index
    %208 = vector.load %arg12[%c0_90, %c0_91, %c0_92] : memref<1x8x128xf32, #tpu.memory_space<vmem>>, vector<1x8x128xf32>
    %209 = vector.shape_cast %208 : vector<1x8x128xf32> to vector<8x128xf32>
    %210 = vector.broadcast %207 : vector<8x1xf32> to vector<8x128xf32>
    %211 = arith.mulf %209, %210 : vector<8x128xf32>
    %c3_93 = arith.constant 3 : index
    %c0_94 = arith.constant 0 : index
    %c0_95 = arith.constant 0 : index
    %212 = vector.load %arg2[%c3_93, %c0_94, %c0_95] : memref<8x8x384xf32, #tpu.memory_space<vmem>>, vector<1x8x384xf32>
    %213 = vector.shape_cast %212 : vector<1x8x384xf32> to vector<8x384xf32>
    %c0_96 = arith.constant 0 : index
    %c0_97 = arith.constant 0 : index
    %c0_98 = arith.constant 0 : index
    %214 = vector.load %arg5[%c0_96, %c0_97, %c0_98] : memref<1x128x384xf32, #tpu.memory_space<vmem>>, vector<1x128x384xf32>
    %215 = vector.shape_cast %214 : vector<1x128x384xf32> to vector<128x384xf32>
    %cst_99 = arith.constant dense<0.000000e+00> : vector<8x384xf32>
    %216 = tpu.matmul %211, %215, %cst_99 {dimension_numbers = #tpu.dot_dimension_numbers<[1], [0], [0], [1], [0, 0, 1, 1], [], []>} : vector<8x128xf32>, vector<128x384xf32>, vector<8x384xf32> -> vector<8x384xf32>
    %c0_100 = arith.constant 0 : index
    %c0_101 = arith.constant 0 : index
    %c0_102 = arith.constant 0 : index
    %217 = vector.load %arg6[%c0_100, %c0_101, %c0_102] : memref<1x1x384xf32, #tpu.memory_space<vmem>>, vector<1x1x384xf32>
    %218 = vector.shape_cast %217 : vector<1x1x384xf32> to vector<1x384xf32>
    %219 = vector.broadcast %218 : vector<1x384xf32> to vector<8x384xf32>
    %220 = arith.addf %216, %219 : vector<8x384xf32>
    %221 = vector.extract_strided_slice %213 {offsets = [0, 0], sizes = [8, 128], strides = [1, 1]} : vector<8x384xf32> to vector<8x128xf32>
    %222 = vector.extract_strided_slice %220 {offsets = [0, 0], sizes = [8, 128], strides = [1, 1]} : vector<8x384xf32> to vector<8x128xf32>
    %223 = arith.addf %221, %222 : vector<8x128xf32>
    %224 = arith.negf %223 : vector<8x128xf32>
    %225 = math.exp %224 : vector<8x128xf32>
    %cst_103 = arith.constant 1.000000e+00 : f32
    %226 = vector.broadcast %cst_103 : f32 to vector<8x128xf32>
    %227 = arith.addf %226, %225 : vector<8x128xf32>
    %228 = arith.divf %226, %227 : vector<8x128xf32>
    %229 = vector.extract_strided_slice %213 {offsets = [0, 128], sizes = [8, 128], strides = [1, 1]} : vector<8x384xf32> to vector<8x128xf32>
    %230 = vector.extract_strided_slice %220 {offsets = [0, 128], sizes = [8, 128], strides = [1, 1]} : vector<8x384xf32> to vector<8x128xf32>
    %231 = arith.addf %229, %230 : vector<8x128xf32>
    %232 = arith.negf %231 : vector<8x128xf32>
    %233 = math.exp %232 : vector<8x128xf32>
    %cst_104 = arith.constant 1.000000e+00 : f32
    %234 = vector.broadcast %cst_104 : f32 to vector<8x128xf32>
    %235 = arith.addf %234, %233 : vector<8x128xf32>
    %236 = arith.divf %234, %235 : vector<8x128xf32>
    %237 = vector.extract_strided_slice %213 {offsets = [0, 256], sizes = [8, 128], strides = [1, 1]} : vector<8x384xf32> to vector<8x128xf32>
    %238 = vector.extract_strided_slice %220 {offsets = [0, 256], sizes = [8, 128], strides = [1, 1]} : vector<8x384xf32> to vector<8x128xf32>
    %239 = arith.mulf %228, %238 : vector<8x128xf32>
    %240 = arith.addf %237, %239 : vector<8x128xf32>
    %241 = math.tanh %240 : vector<8x128xf32>
    %242 = arith.subf %211, %241 : vector<8x128xf32>
    %243 = arith.mulf %236, %242 : vector<8x128xf32>
    %244 = arith.addf %241, %243 : vector<8x128xf32>
    %c0_105 = arith.constant 0 : index
    %c0_106 = arith.constant 0 : index
    %c0_107 = arith.constant 0 : index
    %245 = vector.load %arg12[%c0_105, %c0_106, %c0_107] : memref<1x8x128xf32, #tpu.memory_space<vmem>>, vector<1x8x128xf32>
    %246 = vector.shape_cast %245 : vector<1x8x128xf32> to vector<8x128xf32>
    %247 = vector.shape_cast %244 : vector<8x128xf32> to vector<1x8x128xf32>
    tpu.vector_store %arg12[%c0_105, %c0_106, %c0_107], %247 {strides = array<i32>} : memref<1x8x128xf32, #tpu.memory_space<vmem>>, vector<1x8x128xf32>,
    %cst_108 = arith.constant dense<0.000000e+00> : vector<8xf32>
    %248 = vector.multi_reduction <add>, %244, %cst_108 [1] : vector<8x128xf32> to vector<8xf32>
    %249 = vector.shape_cast %248 : vector<8xf32> to vector<8x1xf32>
    %cst_109 = arith.constant 3.125000e-02 : f32
    %250 = vector.broadcast %cst_109 : f32 to vector<8x1xf32>
    %251 = arith.mulf %249, %250 : vector<8x1xf32>
    %252 = arith.mulf %244, %244 : vector<8x128xf32>
    %cst_110 = arith.constant dense<0.000000e+00> : vector<8xf32>
    %253 = vector.multi_reduction <add>, %252, %cst_110 [1] : vector<8x128xf32> to vector<8xf32>
    %254 = vector.shape_cast %253 : vector<8xf32> to vector<8x1xf32>
    %cst_111 = arith.constant 3.125000e-02 : f32
    %255 = vector.broadcast %cst_111 : f32 to vector<8x1xf32>
    %256 = arith.mulf %254, %255 : vector<8x1xf32>
    %257 = arith.mulf %251, %251 : vector<8x1xf32>
    %258 = arith.subf %256, %257 : vector<8x1xf32>
    %259 = vector.broadcast %251 : vector<8x1xf32> to vector<8x128xf32>
    %260 = arith.subf %244, %259 : vector<8x128xf32>
    %cst_112 = arith.constant 9.99999974E-6 : f32
    %261 = vector.broadcast %cst_112 : f32 to vector<8x1xf32>
    %262 = arith.addf %258, %261 : vector<8x1xf32>
    %263 = math.rsqrt %262 : vector<8x1xf32>
    %264 = vector.broadcast %263 : vector<8x1xf32> to vector<8x128xf32>
    %265 = arith.mulf %260, %264 : vector<8x128xf32>
    %266 = vector.broadcast %3 : vector<1x128xf32> to vector<8x128xf32>
    %267 = arith.mulf %265, %266 : vector<8x128xf32>
    %268 = vector.broadcast %4 : vector<1x128xf32> to vector<8x128xf32>
    %269 = arith.addf %267, %268 : vector<8x128xf32>
    %c3_113 = arith.constant 3 : index
    %c0_114 = arith.constant 0 : index
    %c0_115 = arith.constant 0 : index
    %270 = vector.load %arg11[%c3_113, %c0_114, %c0_115] : memref<8x8x128xf32, #tpu.memory_space<vmem>>, vector<1x8x128xf32>
    %271 = vector.shape_cast %270 : vector<1x8x128xf32> to vector<8x128xf32>
    %272 = vector.shape_cast %269 : vector<8x128xf32> to vector<1x8x128xf32>
    tpu.vector_store %arg11[%c3_113, %c0_114, %c0_115], %272 {strides = array<i32>} : memref<8x8x128xf32, #tpu.memory_space<vmem>>, vector<1x8x128xf32>,
    %c4 = arith.constant 4 : index
    %c0_116 = arith.constant 0 : index
    %c0_117 = arith.constant 0 : index
    %273 = vector.load %arg3[%c4, %c0_116, %c0_117] : memref<8x8x1xf32, #tpu.memory_space<vmem>>, vector<1x8x1xf32>
    %274 = vector.shape_cast %273 : vector<1x8x1xf32> to vector<8x1xf32>
    %c0_118 = arith.constant 0 : index
    %c0_119 = arith.constant 0 : index
    %c0_120 = arith.constant 0 : index
    %275 = vector.load %arg12[%c0_118, %c0_119, %c0_120] : memref<1x8x128xf32, #tpu.memory_space<vmem>>, vector<1x8x128xf32>
    %276 = vector.shape_cast %275 : vector<1x8x128xf32> to vector<8x128xf32>
    %277 = vector.broadcast %274 : vector<8x1xf32> to vector<8x128xf32>
    %278 = arith.mulf %276, %277 : vector<8x128xf32>
    %c4_121 = arith.constant 4 : index
    %c0_122 = arith.constant 0 : index
    %c0_123 = arith.constant 0 : index
    %279 = vector.load %arg2[%c4_121, %c0_122, %c0_123] : memref<8x8x384xf32, #tpu.memory_space<vmem>>, vector<1x8x384xf32>
    %280 = vector.shape_cast %279 : vector<1x8x384xf32> to vector<8x384xf32>
    %c0_124 = arith.constant 0 : index
    %c0_125 = arith.constant 0 : index
    %c0_126 = arith.constant 0 : index
    %281 = vector.load %arg5[%c0_124, %c0_125, %c0_126] : memref<1x128x384xf32, #tpu.memory_space<vmem>>, vector<1x128x384xf32>
    %282 = vector.shape_cast %281 : vector<1x128x384xf32> to vector<128x384xf32>
    %cst_127 = arith.constant dense<0.000000e+00> : vector<8x384xf32>
    %283 = tpu.matmul %278, %282, %cst_127 {dimension_numbers = #tpu.dot_dimension_numbers<[1], [0], [0], [1], [0, 0, 1, 1], [], []>} : vector<8x128xf32>, vector<128x384xf32>, vector<8x384xf32> -> vector<8x384xf32>
    %c0_128 = arith.constant 0 : index
    %c0_129 = arith.constant 0 : index
    %c0_130 = arith.constant 0 : index
    %284 = vector.load %arg6[%c0_128, %c0_129, %c0_130] : memref<1x1x384xf32, #tpu.memory_space<vmem>>, vector<1x1x384xf32>
    %285 = vector.shape_cast %284 : vector<1x1x384xf32> to vector<1x384xf32>
    %286 = vector.broadcast %285 : vector<1x384xf32> to vector<8x384xf32>
    %287 = arith.addf %283, %286 : vector<8x384xf32>
    %288 = vector.extract_strided_slice %280 {offsets = [0, 0], sizes = [8, 128], strides = [1, 1]} : vector<8x384xf32> to vector<8x128xf32>
    %289 = vector.extract_strided_slice %287 {offsets = [0, 0], sizes = [8, 128], strides = [1, 1]} : vector<8x384xf32> to vector<8x128xf32>
    %290 = arith.addf %288, %289 : vector<8x128xf32>
    %291 = arith.negf %290 : vector<8x128xf32>
    %292 = math.exp %291 : vector<8x128xf32>
    %cst_131 = arith.constant 1.000000e+00 : f32
    %293 = vector.broadcast %cst_131 : f32 to vector<8x128xf32>
    %294 = arith.addf %293, %292 : vector<8x128xf32>
    %295 = arith.divf %293, %294 : vector<8x128xf32>
    %296 = vector.extract_strided_slice %280 {offsets = [0, 128], sizes = [8, 128], strides = [1, 1]} : vector<8x384xf32> to vector<8x128xf32>
    %297 = vector.extract_strided_slice %287 {offsets = [0, 128], sizes = [8, 128], strides = [1, 1]} : vector<8x384xf32> to vector<8x128xf32>
    %298 = arith.addf %296, %297 : vector<8x128xf32>
    %299 = arith.negf %298 : vector<8x128xf32>
    %300 = math.exp %299 : vector<8x128xf32>
    %cst_132 = arith.constant 1.000000e+00 : f32
    %301 = vector.broadcast %cst_132 : f32 to vector<8x128xf32>
    %302 = arith.addf %301, %300 : vector<8x128xf32>
    %303 = arith.divf %301, %302 : vector<8x128xf32>
    %304 = vector.extract_strided_slice %280 {offsets = [0, 256], sizes = [8, 128], strides = [1, 1]} : vector<8x384xf32> to vector<8x128xf32>
    %305 = vector.extract_strided_slice %287 {offsets = [0, 256], sizes = [8, 128], strides = [1, 1]} : vector<8x384xf32> to vector<8x128xf32>
    %306 = arith.mulf %295, %305 : vector<8x128xf32>
    %307 = arith.addf %304, %306 : vector<8x128xf32>
    %308 = math.tanh %307 : vector<8x128xf32>
    %309 = arith.subf %278, %308 : vector<8x128xf32>
    %310 = arith.mulf %303, %309 : vector<8x128xf32>
    %311 = arith.addf %308, %310 : vector<8x128xf32>
    %c0_133 = arith.constant 0 : index
    %c0_134 = arith.constant 0 : index
    %c0_135 = arith.constant 0 : index
    %312 = vector.load %arg12[%c0_133, %c0_134, %c0_135] : memref<1x8x128xf32, #tpu.memory_space<vmem>>, vector<1x8x128xf32>
    %313 = vector.shape_cast %312 : vector<1x8x128xf32> to vector<8x128xf32>
    %314 = vector.shape_cast %311 : vector<8x128xf32> to vector<1x8x128xf32>
    tpu.vector_store %arg12[%c0_133, %c0_134, %c0_135], %314 {strides = array<i32>} : memref<1x8x128xf32, #tpu.memory_space<vmem>>, vector<1x8x128xf32>,
    %cst_136 = arith.constant dense<0.000000e+00> : vector<8xf32>
    %315 = vector.multi_reduction <add>, %311, %cst_136 [1] : vector<8x128xf32> to vector<8xf32>
    %316 = vector.shape_cast %315 : vector<8xf32> to vector<8x1xf32>
    %cst_137 = arith.constant 3.125000e-02 : f32
    %317 = vector.broadcast %cst_137 : f32 to vector<8x1xf32>
    %318 = arith.mulf %316, %317 : vector<8x1xf32>
    %319 = arith.mulf %311, %311 : vector<8x128xf32>
    %cst_138 = arith.constant dense<0.000000e+00> : vector<8xf32>
    %320 = vector.multi_reduction <add>, %319, %cst_138 [1] : vector<8x128xf32> to vector<8xf32>
    %321 = vector.shape_cast %320 : vector<8xf32> to vector<8x1xf32>
    %cst_139 = arith.constant 3.125000e-02 : f32
    %322 = vector.broadcast %cst_139 : f32 to vector<8x1xf32>
    %323 = arith.mulf %321, %322 : vector<8x1xf32>
    %324 = arith.mulf %318, %318 : vector<8x1xf32>
    %325 = arith.subf %323, %324 : vector<8x1xf32>
    %326 = vector.broadcast %318 : vector<8x1xf32> to vector<8x128xf32>
    %327 = arith.subf %311, %326 : vector<8x128xf32>
    %cst_140 = arith.constant 9.99999974E-6 : f32
    %328 = vector.broadcast %cst_140 : f32 to vector<8x1xf32>
    %329 = arith.addf %325, %328 : vector<8x1xf32>
    %330 = math.rsqrt %329 : vector<8x1xf32>
    %331 = vector.broadcast %330 : vector<8x1xf32> to vector<8x128xf32>
    %332 = arith.mulf %327, %331 : vector<8x128xf32>
    %333 = vector.broadcast %3 : vector<1x128xf32> to vector<8x128xf32>
    %334 = arith.mulf %332, %333 : vector<8x128xf32>
    %335 = vector.broadcast %4 : vector<1x128xf32> to vector<8x128xf32>
    %336 = arith.addf %334, %335 : vector<8x128xf32>
    %c4_141 = arith.constant 4 : index
    %c0_142 = arith.constant 0 : index
    %c0_143 = arith.constant 0 : index
    %337 = vector.load %arg11[%c4_141, %c0_142, %c0_143] : memref<8x8x128xf32, #tpu.memory_space<vmem>>, vector<1x8x128xf32>
    %338 = vector.shape_cast %337 : vector<1x8x128xf32> to vector<8x128xf32>
    %339 = vector.shape_cast %336 : vector<8x128xf32> to vector<1x8x128xf32>
    tpu.vector_store %arg11[%c4_141, %c0_142, %c0_143], %339 {strides = array<i32>} : memref<8x8x128xf32, #tpu.memory_space<vmem>>, vector<1x8x128xf32>,
    %c5 = arith.constant 5 : index
    %c0_144 = arith.constant 0 : index
    %c0_145 = arith.constant 0 : index
    %340 = vector.load %arg3[%c5, %c0_144, %c0_145] : memref<8x8x1xf32, #tpu.memory_space<vmem>>, vector<1x8x1xf32>
    %341 = vector.shape_cast %340 : vector<1x8x1xf32> to vector<8x1xf32>
    %c0_146 = arith.constant 0 : index
    %c0_147 = arith.constant 0 : index
    %c0_148 = arith.constant 0 : index
    %342 = vector.load %arg12[%c0_146, %c0_147, %c0_148] : memref<1x8x128xf32, #tpu.memory_space<vmem>>, vector<1x8x128xf32>
    %343 = vector.shape_cast %342 : vector<1x8x128xf32> to vector<8x128xf32>
    %344 = vector.broadcast %341 : vector<8x1xf32> to vector<8x128xf32>
    %345 = arith.mulf %343, %344 : vector<8x128xf32>
    %c5_149 = arith.constant 5 : index
    %c0_150 = arith.constant 0 : index
    %c0_151 = arith.constant 0 : index
    %346 = vector.load %arg2[%c5_149, %c0_150, %c0_151] : memref<8x8x384xf32, #tpu.memory_space<vmem>>, vector<1x8x384xf32>
    %347 = vector.shape_cast %346 : vector<1x8x384xf32> to vector<8x384xf32>
    %c0_152 = arith.constant 0 : index
    %c0_153 = arith.constant 0 : index
    %c0_154 = arith.constant 0 : index
    %348 = vector.load %arg5[%c0_152, %c0_153, %c0_154] : memref<1x128x384xf32, #tpu.memory_space<vmem>>, vector<1x128x384xf32>
    %349 = vector.shape_cast %348 : vector<1x128x384xf32> to vector<128x384xf32>
    %cst_155 = arith.constant dense<0.000000e+00> : vector<8x384xf32>
    %350 = tpu.matmul %345, %349, %cst_155 {dimension_numbers = #tpu.dot_dimension_numbers<[1], [0], [0], [1], [0, 0, 1, 1], [], []>} : vector<8x128xf32>, vector<128x384xf32>, vector<8x384xf32> -> vector<8x384xf32>
    %c0_156 = arith.constant 0 : index
    %c0_157 = arith.constant 0 : index
    %c0_158 = arith.constant 0 : index
    %351 = vector.load %arg6[%c0_156, %c0_157, %c0_158] : memref<1x1x384xf32, #tpu.memory_space<vmem>>, vector<1x1x384xf32>
    %352 = vector.shape_cast %351 : vector<1x1x384xf32> to vector<1x384xf32>
    %353 = vector.broadcast %352 : vector<1x384xf32> to vector<8x384xf32>
    %354 = arith.addf %350, %353 : vector<8x384xf32>
    %355 = vector.extract_strided_slice %347 {offsets = [0, 0], sizes = [8, 128], strides = [1, 1]} : vector<8x384xf32> to vector<8x128xf32>
    %356 = vector.extract_strided_slice %354 {offsets = [0, 0], sizes = [8, 128], strides = [1, 1]} : vector<8x384xf32> to vector<8x128xf32>
    %357 = arith.addf %355, %356 : vector<8x128xf32>
    %358 = arith.negf %357 : vector<8x128xf32>
    %359 = math.exp %358 : vector<8x128xf32>
    %cst_159 = arith.constant 1.000000e+00 : f32
    %360 = vector.broadcast %cst_159 : f32 to vector<8x128xf32>
    %361 = arith.addf %360, %359 : vector<8x128xf32>
    %362 = arith.divf %360, %361 : vector<8x128xf32>
    %363 = vector.extract_strided_slice %347 {offsets = [0, 128], sizes = [8, 128], strides = [1, 1]} : vector<8x384xf32> to vector<8x128xf32>
    %364 = vector.extract_strided_slice %354 {offsets = [0, 128], sizes = [8, 128], strides = [1, 1]} : vector<8x384xf32> to vector<8x128xf32>
    %365 = arith.addf %363, %364 : vector<8x128xf32>
    %366 = arith.negf %365 : vector<8x128xf32>
    %367 = math.exp %366 : vector<8x128xf32>
    %cst_160 = arith.constant 1.000000e+00 : f32
    %368 = vector.broadcast %cst_160 : f32 to vector<8x128xf32>
    %369 = arith.addf %368, %367 : vector<8x128xf32>
    %370 = arith.divf %368, %369 : vector<8x128xf32>
    %371 = vector.extract_strided_slice %347 {offsets = [0, 256], sizes = [8, 128], strides = [1, 1]} : vector<8x384xf32> to vector<8x128xf32>
    %372 = vector.extract_strided_slice %354 {offsets = [0, 256], sizes = [8, 128], strides = [1, 1]} : vector<8x384xf32> to vector<8x128xf32>
    %373 = arith.mulf %362, %372 : vector<8x128xf32>
    %374 = arith.addf %371, %373 : vector<8x128xf32>
    %375 = math.tanh %374 : vector<8x128xf32>
    %376 = arith.subf %345, %375 : vector<8x128xf32>
    %377 = arith.mulf %370, %376 : vector<8x128xf32>
    %378 = arith.addf %375, %377 : vector<8x128xf32>
    %c0_161 = arith.constant 0 : index
    %c0_162 = arith.constant 0 : index
    %c0_163 = arith.constant 0 : index
    %379 = vector.load %arg12[%c0_161, %c0_162, %c0_163] : memref<1x8x128xf32, #tpu.memory_space<vmem>>, vector<1x8x128xf32>
    %380 = vector.shape_cast %379 : vector<1x8x128xf32> to vector<8x128xf32>
    %381 = vector.shape_cast %378 : vector<8x128xf32> to vector<1x8x128xf32>
    tpu.vector_store %arg12[%c0_161, %c0_162, %c0_163], %381 {strides = array<i32>} : memref<1x8x128xf32, #tpu.memory_space<vmem>>, vector<1x8x128xf32>,
    %cst_164 = arith.constant dense<0.000000e+00> : vector<8xf32>
    %382 = vector.multi_reduction <add>, %378, %cst_164 [1] : vector<8x128xf32> to vector<8xf32>
    %383 = vector.shape_cast %382 : vector<8xf32> to vector<8x1xf32>
    %cst_165 = arith.constant 3.125000e-02 : f32
    %384 = vector.broadcast %cst_165 : f32 to vector<8x1xf32>
    %385 = arith.mulf %383, %384 : vector<8x1xf32>
    %386 = arith.mulf %378, %378 : vector<8x128xf32>
    %cst_166 = arith.constant dense<0.000000e+00> : vector<8xf32>
    %387 = vector.multi_reduction <add>, %386, %cst_166 [1] : vector<8x128xf32> to vector<8xf32>
    %388 = vector.shape_cast %387 : vector<8xf32> to vector<8x1xf32>
    %cst_167 = arith.constant 3.125000e-02 : f32
    %389 = vector.broadcast %cst_167 : f32 to vector<8x1xf32>
    %390 = arith.mulf %388, %389 : vector<8x1xf32>
    %391 = arith.mulf %385, %385 : vector<8x1xf32>
    %392 = arith.subf %390, %391 : vector<8x1xf32>
    %393 = vector.broadcast %385 : vector<8x1xf32> to vector<8x128xf32>
    %394 = arith.subf %378, %393 : vector<8x128xf32>
    %cst_168 = arith.constant 9.99999974E-6 : f32
    %395 = vector.broadcast %cst_168 : f32 to vector<8x1xf32>
    %396 = arith.addf %392, %395 : vector<8x1xf32>
    %397 = math.rsqrt %396 : vector<8x1xf32>
    %398 = vector.broadcast %397 : vector<8x1xf32> to vector<8x128xf32>
    %399 = arith.mulf %394, %398 : vector<8x128xf32>
    %400 = vector.broadcast %3 : vector<1x128xf32> to vector<8x128xf32>
    %401 = arith.mulf %399, %400 : vector<8x128xf32>
    %402 = vector.broadcast %4 : vector<1x128xf32> to vector<8x128xf32>
    %403 = arith.addf %401, %402 : vector<8x128xf32>
    %c5_169 = arith.constant 5 : index
    %c0_170 = arith.constant 0 : index
    %c0_171 = arith.constant 0 : index
    %404 = vector.load %arg11[%c5_169, %c0_170, %c0_171] : memref<8x8x128xf32, #tpu.memory_space<vmem>>, vector<1x8x128xf32>
    %405 = vector.shape_cast %404 : vector<1x8x128xf32> to vector<8x128xf32>
    %406 = vector.shape_cast %403 : vector<8x128xf32> to vector<1x8x128xf32>
    tpu.vector_store %arg11[%c5_169, %c0_170, %c0_171], %406 {strides = array<i32>} : memref<8x8x128xf32, #tpu.memory_space<vmem>>, vector<1x8x128xf32>,
    %c6 = arith.constant 6 : index
    %c0_172 = arith.constant 0 : index
    %c0_173 = arith.constant 0 : index
    %407 = vector.load %arg3[%c6, %c0_172, %c0_173] : memref<8x8x1xf32, #tpu.memory_space<vmem>>, vector<1x8x1xf32>
    %408 = vector.shape_cast %407 : vector<1x8x1xf32> to vector<8x1xf32>
    %c0_174 = arith.constant 0 : index
    %c0_175 = arith.constant 0 : index
    %c0_176 = arith.constant 0 : index
    %409 = vector.load %arg12[%c0_174, %c0_175, %c0_176] : memref<1x8x128xf32, #tpu.memory_space<vmem>>, vector<1x8x128xf32>
    %410 = vector.shape_cast %409 : vector<1x8x128xf32> to vector<8x128xf32>
    %411 = vector.broadcast %408 : vector<8x1xf32> to vector<8x128xf32>
    %412 = arith.mulf %410, %411 : vector<8x128xf32>
    %c6_177 = arith.constant 6 : index
    %c0_178 = arith.constant 0 : index
    %c0_179 = arith.constant 0 : index
    %413 = vector.load %arg2[%c6_177, %c0_178, %c0_179] : memref<8x8x384xf32, #tpu.memory_space<vmem>>, vector<1x8x384xf32>
    %414 = vector.shape_cast %413 : vector<1x8x384xf32> to vector<8x384xf32>
    %c0_180 = arith.constant 0 : index
    %c0_181 = arith.constant 0 : index
    %c0_182 = arith.constant 0 : index
    %415 = vector.load %arg5[%c0_180, %c0_181, %c0_182] : memref<1x128x384xf32, #tpu.memory_space<vmem>>, vector<1x128x384xf32>
    %416 = vector.shape_cast %415 : vector<1x128x384xf32> to vector<128x384xf32>
    %cst_183 = arith.constant dense<0.000000e+00> : vector<8x384xf32>
    %417 = tpu.matmul %412, %416, %cst_183 {dimension_numbers = #tpu.dot_dimension_numbers<[1], [0], [0], [1], [0, 0, 1, 1], [], []>} : vector<8x128xf32>, vector<128x384xf32>, vector<8x384xf32> -> vector<8x384xf32>
    %c0_184 = arith.constant 0 : index
    %c0_185 = arith.constant 0 : index
    %c0_186 = arith.constant 0 : index
    %418 = vector.load %arg6[%c0_184, %c0_185, %c0_186] : memref<1x1x384xf32, #tpu.memory_space<vmem>>, vector<1x1x384xf32>
    %419 = vector.shape_cast %418 : vector<1x1x384xf32> to vector<1x384xf32>
    %420 = vector.broadcast %419 : vector<1x384xf32> to vector<8x384xf32>
    %421 = arith.addf %417, %420 : vector<8x384xf32>
    %422 = vector.extract_strided_slice %414 {offsets = [0, 0], sizes = [8, 128], strides = [1, 1]} : vector<8x384xf32> to vector<8x128xf32>
    %423 = vector.extract_strided_slice %421 {offsets = [0, 0], sizes = [8, 128], strides = [1, 1]} : vector<8x384xf32> to vector<8x128xf32>
    %424 = arith.addf %422, %423 : vector<8x128xf32>
    %425 = arith.negf %424 : vector<8x128xf32>
    %426 = math.exp %425 : vector<8x128xf32>
    %cst_187 = arith.constant 1.000000e+00 : f32
    %427 = vector.broadcast %cst_187 : f32 to vector<8x128xf32>
    %428 = arith.addf %427, %426 : vector<8x128xf32>
    %429 = arith.divf %427, %428 : vector<8x128xf32>
    %430 = vector.extract_strided_slice %414 {offsets = [0, 128], sizes = [8, 128], strides = [1, 1]} : vector<8x384xf32> to vector<8x128xf32>
    %431 = vector.extract_strided_slice %421 {offsets = [0, 128], sizes = [8, 128], strides = [1, 1]} : vector<8x384xf32> to vector<8x128xf32>
    %432 = arith.addf %430, %431 : vector<8x128xf32>
    %433 = arith.negf %432 : vector<8x128xf32>
    %434 = math.exp %433 : vector<8x128xf32>
    %cst_188 = arith.constant 1.000000e+00 : f32
    %435 = vector.broadcast %cst_188 : f32 to vector<8x128xf32>
    %436 = arith.addf %435, %434 : vector<8x128xf32>
    %437 = arith.divf %435, %436 : vector<8x128xf32>
    %438 = vector.extract_strided_slice %414 {offsets = [0, 256], sizes = [8, 128], strides = [1, 1]} : vector<8x384xf32> to vector<8x128xf32>
    %439 = vector.extract_strided_slice %421 {offsets = [0, 256], sizes = [8, 128], strides = [1, 1]} : vector<8x384xf32> to vector<8x128xf32>
    %440 = arith.mulf %429, %439 : vector<8x128xf32>
    %441 = arith.addf %438, %440 : vector<8x128xf32>
    %442 = math.tanh %441 : vector<8x128xf32>
    %443 = arith.subf %412, %442 : vector<8x128xf32>
    %444 = arith.mulf %437, %443 : vector<8x128xf32>
    %445 = arith.addf %442, %444 : vector<8x128xf32>
    %c0_189 = arith.constant 0 : index
    %c0_190 = arith.constant 0 : index
    %c0_191 = arith.constant 0 : index
    %446 = vector.load %arg12[%c0_189, %c0_190, %c0_191] : memref<1x8x128xf32, #tpu.memory_space<vmem>>, vector<1x8x128xf32>
    %447 = vector.shape_cast %446 : vector<1x8x128xf32> to vector<8x128xf32>
    %448 = vector.shape_cast %445 : vector<8x128xf32> to vector<1x8x128xf32>
    tpu.vector_store %arg12[%c0_189, %c0_190, %c0_191], %448 {strides = array<i32>} : memref<1x8x128xf32, #tpu.memory_space<vmem>>, vector<1x8x128xf32>,
    %cst_192 = arith.constant dense<0.000000e+00> : vector<8xf32>
    %449 = vector.multi_reduction <add>, %445, %cst_192 [1] : vector<8x128xf32> to vector<8xf32>
    %450 = vector.shape_cast %449 : vector<8xf32> to vector<8x1xf32>
    %cst_193 = arith.constant 3.125000e-02 : f32
    %451 = vector.broadcast %cst_193 : f32 to vector<8x1xf32>
    %452 = arith.mulf %450, %451 : vector<8x1xf32>
    %453 = arith.mulf %445, %445 : vector<8x128xf32>
    %cst_194 = arith.constant dense<0.000000e+00> : vector<8xf32>
    %454 = vector.multi_reduction <add>, %453, %cst_194 [1] : vector<8x128xf32> to vector<8xf32>
    %455 = vector.shape_cast %454 : vector<8xf32> to vector<8x1xf32>
    %cst_195 = arith.constant 3.125000e-02 : f32
    %456 = vector.broadcast %cst_195 : f32 to vector<8x1xf32>
    %457 = arith.mulf %455, %456 : vector<8x1xf32>
    %458 = arith.mulf %452, %452 : vector<8x1xf32>
    %459 = arith.subf %457, %458 : vector<8x1xf32>
    %460 = vector.broadcast %452 : vector<8x1xf32> to vector<8x128xf32>
    %461 = arith.subf %445, %460 : vector<8x128xf32>
    %cst_196 = arith.constant 9.99999974E-6 : f32
    %462 = vector.broadcast %cst_196 : f32 to vector<8x1xf32>
    %463 = arith.addf %459, %462 : vector<8x1xf32>
    %464 = math.rsqrt %463 : vector<8x1xf32>
    %465 = vector.broadcast %464 : vector<8x1xf32> to vector<8x128xf32>
    %466 = arith.mulf %461, %465 : vector<8x128xf32>
    %467 = vector.broadcast %3 : vector<1x128xf32> to vector<8x128xf32>
    %468 = arith.mulf %466, %467 : vector<8x128xf32>
    %469 = vector.broadcast %4 : vector<1x128xf32> to vector<8x128xf32>
    %470 = arith.addf %468, %469 : vector<8x128xf32>
    %c6_197 = arith.constant 6 : index
    %c0_198 = arith.constant 0 : index
    %c0_199 = arith.constant 0 : index
    %471 = vector.load %arg11[%c6_197, %c0_198, %c0_199] : memref<8x8x128xf32, #tpu.memory_space<vmem>>, vector<1x8x128xf32>
    %472 = vector.shape_cast %471 : vector<1x8x128xf32> to vector<8x128xf32>
    %473 = vector.shape_cast %470 : vector<8x128xf32> to vector<1x8x128xf32>
    tpu.vector_store %arg11[%c6_197, %c0_198, %c0_199], %473 {strides = array<i32>} : memref<8x8x128xf32, #tpu.memory_space<vmem>>, vector<1x8x128xf32>,
    %c7 = arith.constant 7 : index
    %c0_200 = arith.constant 0 : index
    %c0_201 = arith.constant 0 : index
    %474 = vector.load %arg3[%c7, %c0_200, %c0_201] : memref<8x8x1xf32, #tpu.memory_space<vmem>>, vector<1x8x1xf32>
    %475 = vector.shape_cast %474 : vector<1x8x1xf32> to vector<8x1xf32>
    %c0_202 = arith.constant 0 : index
    %c0_203 = arith.constant 0 : index
    %c0_204 = arith.constant 0 : index
    %476 = vector.load %arg12[%c0_202, %c0_203, %c0_204] : memref<1x8x128xf32, #tpu.memory_space<vmem>>, vector<1x8x128xf32>
    %477 = vector.shape_cast %476 : vector<1x8x128xf32> to vector<8x128xf32>
    %478 = vector.broadcast %475 : vector<8x1xf32> to vector<8x128xf32>
    %479 = arith.mulf %477, %478 : vector<8x128xf32>
    %c7_205 = arith.constant 7 : index
    %c0_206 = arith.constant 0 : index
    %c0_207 = arith.constant 0 : index
    %480 = vector.load %arg2[%c7_205, %c0_206, %c0_207] : memref<8x8x384xf32, #tpu.memory_space<vmem>>, vector<1x8x384xf32>
    %481 = vector.shape_cast %480 : vector<1x8x384xf32> to vector<8x384xf32>
    %c0_208 = arith.constant 0 : index
    %c0_209 = arith.constant 0 : index
    %c0_210 = arith.constant 0 : index
    %482 = vector.load %arg5[%c0_208, %c0_209, %c0_210] : memref<1x128x384xf32, #tpu.memory_space<vmem>>, vector<1x128x384xf32>
    %483 = vector.shape_cast %482 : vector<1x128x384xf32> to vector<128x384xf32>
    %cst_211 = arith.constant dense<0.000000e+00> : vector<8x384xf32>
    %484 = tpu.matmul %479, %483, %cst_211 {dimension_numbers = #tpu.dot_dimension_numbers<[1], [0], [0], [1], [0, 0, 1, 1], [], []>} : vector<8x128xf32>, vector<128x384xf32>, vector<8x384xf32> -> vector<8x384xf32>
    %c0_212 = arith.constant 0 : index
    %c0_213 = arith.constant 0 : index
    %c0_214 = arith.constant 0 : index
    %485 = vector.load %arg6[%c0_212, %c0_213, %c0_214] : memref<1x1x384xf32, #tpu.memory_space<vmem>>, vector<1x1x384xf32>
    %486 = vector.shape_cast %485 : vector<1x1x384xf32> to vector<1x384xf32>
    %487 = vector.broadcast %486 : vector<1x384xf32> to vector<8x384xf32>
    %488 = arith.addf %484, %487 : vector<8x384xf32>
    %489 = vector.extract_strided_slice %481 {offsets = [0, 0], sizes = [8, 128], strides = [1, 1]} : vector<8x384xf32> to vector<8x128xf32>
    %490 = vector.extract_strided_slice %488 {offsets = [0, 0], sizes = [8, 128], strides = [1, 1]} : vector<8x384xf32> to vector<8x128xf32>
    %491 = arith.addf %489, %490 : vector<8x128xf32>
    %492 = arith.negf %491 : vector<8x128xf32>
    %493 = math.exp %492 : vector<8x128xf32>
    %cst_215 = arith.constant 1.000000e+00 : f32
    %494 = vector.broadcast %cst_215 : f32 to vector<8x128xf32>
    %495 = arith.addf %494, %493 : vector<8x128xf32>
    %496 = arith.divf %494, %495 : vector<8x128xf32>
    %497 = vector.extract_strided_slice %481 {offsets = [0, 128], sizes = [8, 128], strides = [1, 1]} : vector<8x384xf32> to vector<8x128xf32>
    %498 = vector.extract_strided_slice %488 {offsets = [0, 128], sizes = [8, 128], strides = [1, 1]} : vector<8x384xf32> to vector<8x128xf32>
    %499 = arith.addf %497, %498 : vector<8x128xf32>
    %500 = arith.negf %499 : vector<8x128xf32>
    %501 = math.exp %500 : vector<8x128xf32>
    %cst_216 = arith.constant 1.000000e+00 : f32
    %502 = vector.broadcast %cst_216 : f32 to vector<8x128xf32>
    %503 = arith.addf %502, %501 : vector<8x128xf32>
    %504 = arith.divf %502, %503 : vector<8x128xf32>
    %505 = vector.extract_strided_slice %481 {offsets = [0, 256], sizes = [8, 128], strides = [1, 1]} : vector<8x384xf32> to vector<8x128xf32>
    %506 = vector.extract_strided_slice %488 {offsets = [0, 256], sizes = [8, 128], strides = [1, 1]} : vector<8x384xf32> to vector<8x128xf32>
    %507 = arith.mulf %496, %506 : vector<8x128xf32>
    %508 = arith.addf %505, %507 : vector<8x128xf32>
    %509 = math.tanh %508 : vector<8x128xf32>
    %510 = arith.subf %479, %509 : vector<8x128xf32>
    %511 = arith.mulf %504, %510 : vector<8x128xf32>
    %512 = arith.addf %509, %511 : vector<8x128xf32>
    %c0_217 = arith.constant 0 : index
    %c0_218 = arith.constant 0 : index
    %c0_219 = arith.constant 0 : index
    %513 = vector.load %arg12[%c0_217, %c0_218, %c0_219] : memref<1x8x128xf32, #tpu.memory_space<vmem>>, vector<1x8x128xf32>
    %514 = vector.shape_cast %513 : vector<1x8x128xf32> to vector<8x128xf32>
    %515 = vector.shape_cast %512 : vector<8x128xf32> to vector<1x8x128xf32>
    tpu.vector_store %arg12[%c0_217, %c0_218, %c0_219], %515 {strides = array<i32>} : memref<1x8x128xf32, #tpu.memory_space<vmem>>, vector<1x8x128xf32>,
    %cst_220 = arith.constant dense<0.000000e+00> : vector<8xf32>
    %516 = vector.multi_reduction <add>, %512, %cst_220 [1] : vector<8x128xf32> to vector<8xf32>
    %517 = vector.shape_cast %516 : vector<8xf32> to vector<8x1xf32>
    %cst_221 = arith.constant 3.125000e-02 : f32
    %518 = vector.broadcast %cst_221 : f32 to vector<8x1xf32>
    %519 = arith.mulf %517, %518 : vector<8x1xf32>
    %520 = arith.mulf %512, %512 : vector<8x128xf32>
    %cst_222 = arith.constant dense<0.000000e+00> : vector<8xf32>
    %521 = vector.multi_reduction <add>, %520, %cst_222 [1] : vector<8x128xf32> to vector<8xf32>
    %522 = vector.shape_cast %521 : vector<8xf32> to vector<8x1xf32>
    %cst_223 = arith.constant 3.125000e-02 : f32
    %523 = vector.broadcast %cst_223 : f32 to vector<8x1xf32>
    %524 = arith.mulf %522, %523 : vector<8x1xf32>
    %525 = arith.mulf %519, %519 : vector<8x1xf32>
    %526 = arith.subf %524, %525 : vector<8x1xf32>
    %527 = vector.broadcast %519 : vector<8x1xf32> to vector<8x128xf32>
    %528 = arith.subf %512, %527 : vector<8x128xf32>
    %cst_224 = arith.constant 9.99999974E-6 : f32
    %529 = vector.broadcast %cst_224 : f32 to vector<8x1xf32>
    %530 = arith.addf %526, %529 : vector<8x1xf32>
    %531 = math.rsqrt %530 : vector<8x1xf32>
    %532 = vector.broadcast %531 : vector<8x1xf32> to vector<8x128xf32>
    %533 = arith.mulf %528, %532 : vector<8x128xf32>
    %534 = vector.broadcast %3 : vector<1x128xf32> to vector<8x128xf32>
    %535 = arith.mulf %533, %534 : vector<8x128xf32>
    %536 = vector.broadcast %4 : vector<1x128xf32> to vector<8x128xf32>
    %537 = arith.addf %535, %536 : vector<8x128xf32>
    %c7_225 = arith.constant 7 : index
    %c0_226 = arith.constant 0 : index
    %c0_227 = arith.constant 0 : index
    %538 = vector.load %arg11[%c7_225, %c0_226, %c0_227] : memref<8x8x128xf32, #tpu.memory_space<vmem>>, vector<1x8x128xf32>
    %539 = vector.shape_cast %538 : vector<1x8x128xf32> to vector<8x128xf32>
    %540 = vector.shape_cast %537 : vector<8x128xf32> to vector<1x8x128xf32>
    tpu.vector_store %arg11[%c7_225, %c0_226, %c0_227], %540 {strides = array<i32>} : memref<8x8x128xf32, #tpu.memory_space<vmem>>, vector<1x8x128xf32>,
    return
  }
  func.func @transform_0(%arg0: i32, %arg1: i32) -> (i32, i32, i32) {
    %c0_i32 = arith.constant 0 : i32
    %c0_i32_0 = arith.constant 0 : i32
    return %arg1, %arg0, %c0_i32 : i32, i32, i32
  }
  func.func @transform_1(%arg0: i32, %arg1: i32) -> (i32, i32, i32) {
    %c0_i32 = arith.constant 0 : i32
    %c0_i32_0 = arith.constant 0 : i32
    return %arg1, %arg0, %c0_i32 : i32, i32, i32
  }
  func.func @transform_2(%arg0: i32, %arg1: i32) -> (i32, i32, i32) {
    %c0_i32 = arith.constant 0 : i32
    %c0_i32_0 = arith.constant 0 : i32
    %c0_i32_1 = arith.constant 0 : i32
    return %c0_i32, %arg0, %c0_i32_0 : i32, i32, i32
  }
  func.func @transform_3(%arg0: i32, %arg1: i32) -> (i32, i32, i32) {
    %c0_i32 = arith.constant 0 : i32
    %c0_i32_0 = arith.constant 0 : i32
    %c0_i32_1 = arith.constant 0 : i32
    %c0_i32_2 = arith.constant 0 : i32
    return %c0_i32, %c0_i32_0, %c0_i32_1 : i32, i32, i32
  }
  func.func @transform_4(%arg0: i32, %arg1: i32) -> (i32, i32, i32) {
    %c0_i32 = arith.constant 0 : i32
    %c0_i32_0 = arith.constant 0 : i32
    %c0_i32_1 = arith.constant 0 : i32
    %c0_i32_2 = arith.constant 0 : i32
    return %c0_i32, %c0_i32_0, %c0_i32_1 : i32, i32, i32
  }
  func.func @transform_5(%arg0: i32, %arg1: i32) -> (i32, i32, i32) {
    %c0_i32 = arith.constant 0 : i32
    %c0_i32_0 = arith.constant 0 : i32
    %c0_i32_1 = arith.constant 0 : i32
    %c0_i32_2 = arith.constant 0 : i32
    return %c0_i32, %c0_i32_0, %c0_i32_1 : i32, i32, i32
  }
  func.func @transform_6(%arg0: i32, %arg1: i32) -> (i32, i32, i32) {
    %c0_i32 = arith.constant 0 : i32
    %c0_i32_0 = arith.constant 0 : i32
    %c0_i32_1 = arith.constant 0 : i32
    %c0_i32_2 = arith.constant 0 : i32
    return %c0_i32, %c0_i32_0, %c0_i32_1 : i32, i32, i32
  }
  func.func @transform_7(%arg0: i32, %arg1: i32) -> (i32, i32) {
    %c0_i32 = arith.constant 0 : i32
    %c0_i32_0 = arith.constant 0 : i32
    %c0_i32_1 = arith.constant 0 : i32
    return %c0_i32, %c0_i32_0 : i32, i32
  }
  func.func @transform_8(%arg0: i32, %arg1: i32) -> (i32, i32) {
    %c0_i32 = arith.constant 0 : i32
    %c0_i32_0 = arith.constant 0 : i32
    %c0_i32_1 = arith.constant 0 : i32
    return %c0_i32, %c0_i32_0 : i32, i32
  }
  func.func @transform_9(%arg0: i32, %arg1: i32) -> (i32, i32, i32) {
    %c0_i32 = arith.constant 0 : i32
    %c0_i32_0 = arith.constant 0 : i32
    return %arg1, %arg0, %c0_i32 : i32, i32, i32
  }
  func.func @transform_10(%arg0: i32, %arg1: i32) -> (i32, i32, i32) {
    %c0_i32 = arith.constant 0 : i32
    %c0_i32_0 = arith.constant 0 : i32
    %c0_i32_1 = arith.constant 0 : i32
    return %c0_i32, %arg0, %c0_i32_0 : i32, i32, i32
  }
}

</mosaic_0001>

<bundles_post_ra>
// kernel: rnn_layer_forward.2
= control target key start
LH: loop header
LB: loop body
LE: loop exit
PB: predicated region body
PF: predicated region fallthrough
CT: control target
= control target key end

     0   :  { %8 = vsyncpa [#allocation3], 0  ;;  %s442_s12 = smov [#allocation2]   ;;  %s596_s0 = inlined_call_operand.vmem [shape: f32[8,8,128], index: 0, kind: input, shape index: {}]   ;;  %s597_s1 = inlined_call_operand.hbm [shape: f32[128,384], index: 1, kind: input, shape index: {}]   ;;  %s598_s2 = inlined_call_operand.vmem [shape: f32[1,384], index: 2, kind: input, shape index: {}]   ;;  %s599_s3 = inlined_call_operand.vmem [shape: f32[8,8,384], index: 3, kind: output, shape index: {}]  }
   0x1   :  { %s16_s13 = sshll.u32 %s442_s12, 4  ;;  %s17_s13 = int_to_ptr.vmem [resolvable:$true] %s16_s13 }
   0x2   :  { %s428_s14 = scalar_lea.vmem %s17_s13, 6144  ;;  %p433_p1 = scmp.lt.s32.totalorder %s17_s13, %s17_s13 }
   0x3   :  { %p429_p0 = scmp.ne.s32.totalorder %s17_s13, %s428_s14  ;;  %p434_p2 = scmp.lt.s32.totalorder %s428_s14, %s428_s14 }
   0x5   :  { %p435_p3 = por %p434_p2, %p433_p1 }
   0x7   :  { %p436_p4 = pnand %p435_p3, %p429_p0 }
   0x9   :  { %439 = shalt.err (!%p436_p4)
}
   0xa   :  { %s443_s15 = smov 384   ;;  %s444_s16 = smov 24  }
   0xb   :  { %22 = dma.hbm_to_vmem [thread:$0]  %s597_s1, 6144, %s17_s13, [#allocation3], %s443_s15, %s443_s15, %s444_s16  }
   0xc   :  { %440 = dma.done.wait [#allocation3], 6144  }
   0xd   :  { %441 = vsyncadd [#allocation3], 4294961152  ;;  %v445_v0 = vmov 0.0   ;;  %v82_v1 = vld [vmem:[#allocation2 + $0x170] sm:$0xff]  ;;  %v81_v2 = vld [vmem:[#allocation2 + $0x168] sm:$0xff]  ;;  %v86_v57 = vlaneseq }
   0xe   :  { %165 = vmatprep.mubr.f32.mxu0 %v445_v0  ;;  %v79_v3 = vld [vmem:[#allocation2 + $0x158] sm:$0xff]  ;;  %101 = vmatprep.subr.mxu0 %v82_v1  ;;  %v78_v4 = vld [vmem:[#allocation2 + $0x150] sm:$0xff]  ;;  %v76_v5 = vld [vmem:[#allocation2 + $0x140] sm:$0xff] }
   0xf   :  { %102 = vmatpush1.msra.mxu0 %v81_v2  ;;  %v75_v6 = vld [vmem:[#allocation2 + $0x138] sm:$0xff]  ;;  %v73_v7 = vld [vmem:[#allocation2 + $0x128] sm:$0xff]  ;;  %v72_v8 = vld [vmem:[#allocation2 + $0x120] sm:$0xff]  ;;  %v87_v58 = vshrl.u32 %v86_v57, 7 }
  0x10   :  { %103 = vmatprep.subr.mxu0 %v79_v3  ;;  %v83_v9 = vld [vmem:[#allocation2 + $0x178] sm:$0xff]  ;;  %v70_v10 = vld [vmem:[#allocation2 + $0x110] sm:$0xff]  ;;  %v80_v11 = vld [vmem:[#allocation2 + $0x160] sm:$0xff] }
  0x11   :  { %104 = vmatpush1.msra.mxu0 %v78_v4  ;;  %372 = vmatprep.subr.mxu1 %v83_v9  ;;  %v69_v12 = vld [vmem:[#allocation2 + $0x108] sm:$0xff]  ;;  %v67_v14 = vld [vmem:[#allocation2 + $0xf8] sm:$0xff]  ;;  %v66_v15 = vld [vmem:[#allocation2 + $0xf0] sm:$0xff]  ;;  %v88_v59 = vsub.s32 0, %v87_v58  ;;  %v92_v61 = vsub.s32 1, %v87_v58  ;;  %v96_v63 = vsub.s32 2, %v87_v58 }
  0x12   :  { %105 = vmatprep.subr.mxu0 %v76_v5  ;;  %373 = vmatpush3.msra.mxu1 %v83_v9  ;;  %v77_v13 = vld [vmem:[#allocation2 + $0x148] sm:$0xff]  ;;  %v74_v16 = vld [vmem:[#allocation2 + $0x130] sm:$0xff]  ;;  %v64_v17 = vld [vmem:[#allocation2 + $0xe0] sm:$0xff] }
  0x13   :  { %106 = vmatpush1.msra.mxu0 %v75_v6  ;;  %374 = vmatprep.subr.mxu1 %v80_v11  ;;  %v63_v18 = vld [vmem:[#allocation2 + $0xd8] sm:$0xff]  ;;  %v61_v20 = vld [vmem:[#allocation2 + $0xc8] sm:$0xff]  ;;  %v60_v21 = vld [vmem:[#allocation2 + $0xc0] sm:$0xff] }
  0x14   :  { %107 = vmatprep.subr.mxu0 %v73_v7  ;;  %375 = vmatpush3.msra.mxu1 %v80_v11  ;;  %v71_v19 = vld [vmem:[#allocation2 + $0x118] sm:$0xff]  ;;  %v68_v22 = vld [vmem:[#allocation2 + $0x100] sm:$0xff]  ;;  %v58_v23 = vld [vmem:[#allocation2 + $0xb0] sm:$0xff] }
  0x15   :  { %108 = vmatpush1.msra.mxu0 %v72_v8  ;;  %376 = vmatprep.subr.mxu1 %v77_v13  ;;  %v57_v24 = vld [vmem:[#allocation2 + $0xa8] sm:$0xff]  ;;  %v55_v26 = vld [vmem:[#allocation2 + $0x98] sm:$0xff]  ;;  %v54_v27 = vld [vmem:[#allocation2 + $0x90] sm:$0xff] }
  0x16   :  { %109 = vmatprep.subr.mxu0 %v70_v10  ;;  %377 = vmatpush3.msra.mxu1 %v77_v13  ;;  %v65_v25 = vld [vmem:[#allocation2 + $0xe8] sm:$0xff]  ;;  %v62_v28 = vld [vmem:[#allocation2 + $0xd0] sm:$0xff]  ;;  %v52_v29 = vld [vmem:[#allocation2 + $0x80] sm:$0xff] }
  0x17   :  { %110 = vmatpush1.msra.mxu0 %v69_v12  ;;  %378 = vmatprep.subr.mxu1 %v74_v16  ;;  %v51_v30 = vld [vmem:[#allocation2 + $0x78] sm:$0xff]  ;;  %v49_v32 = vld [vmem:[#allocation2 + $0x68] sm:$0xff]  ;;  %v48_v33 = vld [vmem:[#allocation2 + $0x60] sm:$0xff] }
  0x18   :  { %111 = vmatprep.subr.mxu0 %v67_v14  ;;  %379 = vmatpush3.msra.mxu1 %v74_v16  ;;  %v59_v31 = vld [vmem:[#allocation2 + $0xb8] sm:$0xff]  ;;  %v56_v34 = vld [vmem:[#allocation2 + $0xa0] sm:$0xff]  ;;  %v46_v35 = vld [vmem:[#allocation2 + $0x50] sm:$0xff] }
  0x19   :  { %112 = vmatpush1.msra.mxu0 %v66_v15  ;;  %380 = vmatprep.subr.mxu1 %v71_v19  ;;  %v45_v36 = vld [vmem:[#allocation2 + $0x48] sm:$0xff]  ;;  %v43_v38 = vld [vmem:[#allocation2 + $0x38] sm:$0xff]  ;;  %v42_v39 = vld [vmem:[#allocation2 + $0x30] sm:$0xff] }
  0x1a   :  { %113 = vmatprep.subr.mxu0 %v64_v17  ;;  %381 = vmatpush3.msra.mxu1 %v71_v19  ;;  %v53_v37 = vld [vmem:[#allocation2 + $0x88] sm:$0xff]  ;;  %v50_v40 = vld [vmem:[#allocation2 + $0x70] sm:$0xff]  ;;  %v40_v41 = vld [vmem:[#allocation2 + $0x20] sm:$0xff] }
  0x1b   :  { %114 = vmatpush1.msra.mxu0 %v63_v18  ;;  %382 = vmatprep.subr.mxu1 %v68_v22  ;;  %v39_v42 = vld [vmem:[#allocation2 + $0x18] sm:$0xff]  ;;  %v37_v44 = vld [vmem:[#allocation2 + $0x8] sm:$0xff]  ;;  %v36_v45 = vld [vmem:[#allocation2] sm:$0xff] }
  0x1c   :  { %115 = vmatprep.subr.mxu0 %v61_v20  ;;  %383 = vmatpush3.msra.mxu1 %v68_v22  ;;  %v47_v43 = vld [vmem:[#allocation2 + $0x58] sm:$0xff]  ;;  %v44_v46 = vld [vmem:[#allocation2 + $0x40] sm:$0xff]  ;;  %v41_v48 = vld [vmem:[#allocation2 + $0x28] sm:$0xff] }
  0x1d   :  { %116 = vmatpush1.msra.mxu0 %v60_v21  ;;  %384 = vmatprep.subr.mxu1 %v65_v25  ;;  %v28_v47 = vld [vmem:[%s596_s0] sm:$0xff]  ;;  %v38_v49 = vld [vmem:[#allocation2 + $0x10] sm:$0xff]  ;;  %v29_v50 = vld [vmem:[%s596_s0 + $0x8] sm:$0xff] }
  0x1e   :  { %117 = vmatprep.subr.mxu0 %v58_v23  ;;  %385 = vmatpush3.msra.mxu1 %v65_v25  ;;  %v30_v51 = vld [vmem:[%s596_s0 + $0x10] sm:$0xff]  ;;  %v31_v52 = vld [vmem:[%s596_s0 + $0x18] sm:$0xff]  ;;  %v32_v53 = vld [vmem:[%s596_s0 + $0x20] sm:$0xff] }
  0x1f   :  { %118 = vmatpush1.msra.mxu0 %v57_v24  ;;  %386 = vmatprep.subr.mxu1 %v62_v28  ;;  %v34_v54 = vld [vmem:[%s596_s0 + $0x30] sm:$0xff]  ;;  %v33_v55 = vld [vmem:[%s596_s0 + $0x28] sm:$0xff]  ;;  %v35_v56 = vld [vmem:[%s596_s0 + $0x38] sm:$0xff] }
  0x20   :  { %119 = vmatprep.subr.mxu0 %v55_v26  ;;  %387 = vmatpush3.msra.mxu1 %v62_v28  ;;  %v84_v60 = vld [vmem:[%s598_s2] sm:$0x7] }
  0x21   :  { %120 = vmatpush1.msra.mxu0 %v54_v27  ;;  %388 = vmatprep.subr.mxu1 %v59_v31  ;;  %v504_v62 = vrot.slane %v84_v60, %v88_v59  ;;  %v506_v1 = vrot.slane %v84_v60, %v92_v61  ;;  %v97_v5 = vrot.slane %v84_v60, %v96_v63 }
  0x22   :  { %121 = vmatprep.subr.mxu0 %v52_v29  ;;  %389 = vmatpush3.msra.mxu1 %v59_v31 }
  0x23   :  { %122 = vmatpush1.msra.mxu0 %v51_v30  ;;  %390 = vmatprep.subr.mxu1 %v56_v34 }
  0x24   :  { %123 = vmatprep.subr.mxu0 %v49_v32  ;;  %391 = vmatpush3.msra.mxu1 %v56_v34 }
  0x25   :  { %124 = vmatpush1.msra.mxu0 %v48_v33  ;;  %392 = vmatprep.subr.mxu1 %v53_v37 }
  0x26   :  { %125 = vmatprep.subr.mxu0 %v46_v35  ;;  %393 = vmatpush3.msra.mxu1 %v53_v37 }
  0x27   :  { %126 = vmatpush1.msra.mxu0 %v45_v36  ;;  %394 = vmatprep.subr.mxu1 %v50_v40 }
  0x28   :  { %127 = vmatprep.subr.mxu0 %v43_v38  ;;  %395 = vmatpush3.msra.mxu1 %v50_v40 }
  0x29   :  { %128 = vmatpush1.msra.mxu0 %v42_v39  ;;  %396 = vmatprep.subr.mxu1 %v47_v43 }
  0x2a   :  { %129 = vmatprep.subr.mxu0 %v40_v41  ;;  %397 = vmatpush3.msra.mxu1 %v47_v43 }
  0x2b   :  { %130 = vmatpush1.msra.mxu0 %v39_v42  ;;  %398 = vmatprep.subr.mxu1 %v44_v46 }
  0x2c   :  { %131 = vmatprep.subr.mxu0 %v37_v44  ;;  %399 = vmatpush3.msra.mxu1 %v44_v46 }
  0x2d   :  { %132 = vmatpush1.msra.mxu0 %v36_v45  ;;  %400 = vmatprep.subr.mxu1 %v41_v48 }
  0x2e   :  { %166 = vmatmul.mubr.f32.vlgmr.msra.gmra.mxu0 %v28_v47  ;;  %401 = vmatpush3.msra.mxu1 %v41_v48 }
  0x2f   :  { %171 = vmatprep.mubr.f32.mxu0 %v445_v0  ;;  %404 = vmatprep.mubr.f32.mxu1 %v28_v47 }
  0x30   :  { %402 = vmatprep.subr.mxu1 %v38_v49 }
  0x31   :  { %403 = vmatpush3.msra.mxu1 %v38_v49 }
  0x32   :  { %172 = vmatmul.mubr.f32.gmra.mxu0 %v29_v50  ;;  %405 = vmatmul.mubr.f32.vlgmr.msra.gmra.mxu1 %v29_v50 }
  0x33   :  { %177 = vmatprep.mubr.f32.mxu0 %v445_v0  ;;  %407 = vmatprep.mubr.f32.mxu1 %v30_v51 }
  0x36   :  { %178 = vmatmul.mubr.f32.gmra.mxu0 %v30_v51  ;;  %408 = vmatmul.mubr.f32.gmra.mxu1 %v31_v52 }
  0x37   :  { %183 = vmatprep.mubr.f32.mxu0 %v445_v0  ;;  %410 = vmatprep.mubr.f32.mxu1 %v32_v53 }
  0x3a   :  { %184 = vmatmul.mubr.f32.gmra.mxu0 %v31_v52  ;;  %411 = vmatmul.mubr.f32.gmra.mxu1 %v33_v55 }
  0x3b   :  { %189 = vmatprep.mubr.f32.mxu0 %v445_v0  ;;  %413 = vmatprep.mubr.f32.mxu1 %v34_v54 }
  0x3e   :  { %190 = vmatmul.mubr.f32.gmra.mxu0 %v32_v53  ;;  %414 = vmatmul.mubr.f32.gmra.mxu1 %v35_v56 }
  0x3f   :  { %195 = vmatprep.mubr.f32.mxu0 %v445_v0 }
  0x42   :  { %196 = vmatmul.mubr.f32.gmra.mxu0 %v33_v55 }
  0x43   :  { %201 = vmatprep.mubr.f32.mxu0 %v445_v0 }
  0x46   :  { %202 = vmatmul.mubr.f32.gmra.mxu0 %v34_v54 }
  0x47   :  { %207 = vmatprep.mubr.f32.mxu0 %v445_v0 }
  0x4a   :  { %208 = vmatmul.mubr.f32.gmra.mxu0 %v35_v56 }
  0xee   :  { %v167_v2 = vpop.f32.mrf.mxu0 }
  0xef   :  { %v168_v3 = vadd.f32 %v167_v2, %v504_v62 }
  0xf0   :  { %v169_v4 = vpop.f32.mrf.mxu0 }
  0xf1   :  { %319 = vst [vmem:[%s599_s3] sm:$0xff] %v168_v3  ;;  %v170_v0 = vadd.f32 %v169_v4, %v506_v1 }
  0xf2   :  { %v173_v6 = vpop.f32.mrf.mxu0  ;;  %v406_v8 = vpop.f32.mrf.mxu1 }
  0xf3   :  { %320 = vst [vmem:[%s599_s3 + $0x8] sm:$0xff] %v170_v0  ;;  %v174_v7 = vadd.f32 %v173_v6, %v504_v62  ;;  %v286_v10 = vadd.f32 %v406_v8, %v97_v5 }
  0xf4   :  { %v175_v9 = vpop.f32.mrf.mxu0  ;;  %v280_v12 = vpop.f32.mrf.mxu1 }
  0xf5   :  { %322 = vst [vmem:[%s599_s3 + $0x18] sm:$0xff] %v174_v7  ;;  %v176_v11 = vadd.f32 %v175_v9, %v506_v1  ;;  %324 = vst [vmem:[%s599_s3 + $0x28] sm:$0xff] %v286_v10  ;;  %v281_v14 = vadd.f32 %v280_v12, %v97_v5 }
  0xf6   :  { %v179_v13 = vpop.f32.mrf.mxu0  ;;  %v409_v16 = vpop.f32.mrf.mxu1 }
  0xf7   :  { %323 = vst [vmem:[%s599_s3 + $0x20] sm:$0xff] %v176_v11  ;;  %v180_v15 = vadd.f32 %v179_v13, %v504_v62  ;;  %321 = vst [vmem:[%s599_s3 + $0x10] sm:$0xff] %v281_v14  ;;  %v296_v18 = vadd.f32 %v409_v16, %v97_v5 }
  0xf8   :  { %v181_v17 = vpop.f32.mrf.mxu0  ;;  %v290_v20 = vpop.f32.mrf.mxu1 }
  0xf9   :  { %325 = vst [vmem:[%s599_s3 + $0x30] sm:$0xff] %v180_v15  ;;  %v182_v19 = vadd.f32 %v181_v17, %v506_v1  ;;  %330 = vst [vmem:[%s599_s3 + $0x58] sm:$0xff] %v296_v18  ;;  %v291_v22 = vadd.f32 %v290_v20, %v97_v5 }
  0xfa   :  { %v185_v21 = vpop.f32.mrf.mxu0  ;;  %v412_v24 = vpop.f32.mrf.mxu1 }
  0xfb   :  { %326 = vst [vmem:[%s599_s3 + $0x38] sm:$0xff] %v182_v19  ;;  %v186_v23 = vadd.f32 %v185_v21, %v504_v62  ;;  %327 = vst [vmem:[%s599_s3 + $0x40] sm:$0xff] %v291_v22  ;;  %v306_v26 = vadd.f32 %v412_v24, %v97_v5 }
  0xfc   :  { %v187_v25 = vpop.f32.mrf.mxu0  ;;  %v300_v28 = vpop.f32.mrf.mxu1 }
  0xfd   :  { %328 = vst [vmem:[%s599_s3 + $0x48] sm:$0xff] %v186_v23  ;;  %v188_v27 = vadd.f32 %v187_v25, %v506_v1  ;;  %336 = vst [vmem:[%s599_s3 + $0x88] sm:$0xff] %v306_v26  ;;  %v301_v30 = vadd.f32 %v300_v28, %v97_v5 }
  0xfe   :  { %v191_v29 = vpop.f32.mrf.mxu0  ;;  %v415_v32 = vpop.f32.mrf.mxu1 }
  0xff   :  { %329 = vst [vmem:[%s599_s3 + $0x50] sm:$0xff] %v188_v27  ;;  %v192_v31 = vadd.f32 %v191_v29, %v504_v62  ;;  %333 = vst [vmem:[%s599_s3 + $0x70] sm:$0xff] %v301_v30  ;;  %v316_v34 = vadd.f32 %v415_v32, %v97_v5 }
 0x100   :  { %v193_v33 = vpop.f32.mrf.mxu0  ;;  %v310_v36 = vpop.f32.mrf.mxu1 }
 0x101   :  { %331 = vst [vmem:[%s599_s3 + $0x60] sm:$0xff] %v192_v31  ;;  %v194_v35 = vadd.f32 %v193_v33, %v506_v1  ;;  %342 = vst [vmem:[%s599_s3 + $0xb8] sm:$0xff] %v316_v34  ;;  %v311_v38 = vadd.f32 %v310_v36, %v97_v5 }
 0x102   :  { %v197_v37 = vpop.f32.mrf.mxu0 }
 0x103   :  { %332 = vst [vmem:[%s599_s3 + $0x68] sm:$0xff] %v194_v35  ;;  %v198_v39 = vadd.f32 %v197_v37, %v504_v62  ;;  %339 = vst [vmem:[%s599_s3 + $0xa0] sm:$0xff] %v311_v38 }
 0x104   :  { %v199_v40 = vpop.f32.mrf.mxu0 }
 0x105   :  { %334 = vst [vmem:[%s599_s3 + $0x78] sm:$0xff] %v198_v39  ;;  %v200_v41 = vadd.f32 %v199_v40, %v506_v1 }
 0x106   :  { %v203_v42 = vpop.f32.mrf.mxu0 }
 0x107   :  { %335 = vst [vmem:[%s599_s3 + $0x80] sm:$0xff] %v200_v41  ;;  %v204_v43 = vadd.f32 %v203_v42, %v504_v62 }
 0x108   :  { %v205_v44 = vpop.f32.mrf.mxu0 }
 0x109   :  { %337 = vst [vmem:[%s599_s3 + $0x90] sm:$0xff] %v204_v43  ;;  %v206_v45 = vadd.f32 %v205_v44, %v506_v1 }
 0x10a   :  { %v209_v46 = vpop.f32.mrf.mxu0 }
 0x10b   :  { %338 = vst [vmem:[%s599_s3 + $0x98] sm:$0xff] %v206_v45  ;;  %v210_v47 = vadd.f32 %v209_v46, %v504_v62 }
 0x10c   :  { %v211_v48 = vpop.f32.mrf.mxu0 }
 0x10d   :  { %340 = vst [vmem:[%s599_s3 + $0xa8] sm:$0xff] %v210_v47  ;;  %v212_v49 = vadd.f32 %v211_v48, %v506_v1 }
 0x10f   :  { %341 = vst [vmem:[%s599_s3 + $0xb0] sm:$0xff] %v212_v49 }
 0x110   :  { %347 = vsyncpa [#allocation3], 1 }

// kernel: rnn_layer_forward.3
= control target key start
LH: loop header
LB: loop body
LE: loop exit
PB: predicated region body
PF: predicated region fallthrough
CT: control target
= control target key end

     0   :  { %v2687_v0 = vmov 0   ;;  %v4104_v2 = vmov 0.0   ;;  %vm2689_vm0 = vmmov 0   ;;  %v103_v61 = vlaneseq  ;;  %s4093_s1 = inlined_call_operand.vmem [shape: f32[8,8,1], index: 1, kind: input, shape index: {}]   ;;  %s4094_s3 = inlined_call_operand.vmem [shape: f32[1,128,384], index: 3, kind: input, shape index: {}]   ;;  %s4095_s5 = inlined_call_operand.vmem [shape: f32[1,128,384], index: 5, kind: input, shape index: {}]   ;;  %s4096_s6 = inlined_call_operand.vmem [shape: f32[1,1,384], index: 6, kind: input, shape index: {}, may-alias: {4,6}]   ;;  %s4097_s2 = inlined_call_operand.vmem [shape: f32[1,8,128], index: 2, kind: input, shape index: {}]   ;;  %s4098_s4 = inlined_call_operand.vmem [shape: f32[1,1,384], index: 4, kind: input, shape index: {}, may-alias: {4,6}]   ;;  %s4099_s0 = inlined_call_operand.vmem [shape: f32[8,8,384], index: 0, kind: input, shape index: {}]   ;;  %s4100_s7 = inlined_call_operand.vmem [shape: f32[1,128], index: 7, kind: input, shape index: {}]   ;;  %s4101_s8 = inlined_call_operand.vmem [shape: f32[1,128], index: 8, kind: input, shape index: {}]   ;;  %s4102_s9 = inlined_call_operand.vmem [shape: f32[8,8,128], index: 9, kind: output, shape index: {0}]   ;;  %s4103_s10 = inlined_call_operand.vmem [shape: f32[1,8,128], index: 10, kind: output, shape index: {1}]  }
   0x1   :  { %2587 = vset.pattern.permute.xlu0 %v2687_v0  ;;  %v42_v1 = vld [vmem:[%s4093_s1] sm:$0xff]  ;;  %2304 = vmatprep.subr.mxu1 %v4104_v2  ;;  %v2119_v3 = vld [vmem:[%s4093_s1 + $0x8] sm:$0xff]  ;;  %v2756_v4 = vld [vmem:[%s4094_s3 + $0x170] sm:$0xff] }
   0x2   :  { %46 = vperm.xlu0 %2587, %v42_v1   ;;  %4130 = vst [vmem:[#allocation2_spill] sm:$0xff] %v2756_v4  ;;  %v2761_v5 = vld [vmem:[%s4094_s3 + $0x168] sm:$0xff]  ;;  %182 = vmatprep.mubr.f32.mxu0 %v4104_v2  ;;  %v2768_v6 = vld [vmem:[%s4094_s3 + $0x178] sm:$0xff]  ;;  %v2778_v8 = vld [vmem:[%s4094_s3 + $0x150] sm:$0xff]  ;;  %v104_v62 = vshrl.u32 %v103_v61, 7 }
   0x3   :  { %118 = vmatprep.subr.mxu0 %v2756_v4  ;;  %v2773_v7 = vld [vmem:[%s4094_s3 + $0x158] sm:$0xff]  ;;  %2336 = vmatprep.mubr.msk.f32.mxu1 %vm2689_vm0, %v4104_v2  ;;  %v2787_v9 = vld [vmem:[%s4094_s3 + $0x160] sm:$0xff]  ;;  %v2805_v12 = vld [vmem:[%s4094_s3 + $0x148] sm:$0xff] }
   0x4   :  { %119 = vmatpush1.msra.mxu0 %v2761_v5  ;;  %2305 = vmatpush3.msra.mxu1 %v2768_v6  ;;  %v2792_v10 = vld [vmem:[%s4094_s3 + $0x140] sm:$0xff]  ;;  %v2799_v11 = vld [vmem:[%s4094_s3 + $0x138] sm:$0xff]  ;;  %v2810_v13 = vld [vmem:[%s4094_s3 + $0x128] sm:$0xff]  ;;  %v3154_v63 = vsub.s32 0, %v104_v62 }
   0x5   :  { %120 = vmatprep.subr.mxu0 %v2773_v7  ;;  %2306 = vmatprep.subr.mxu1 %v4104_v2  ;;  %v2140_v14 = vld [vmem:[%s4093_s1 + $0x20] sm:$0xff]  ;;  %v2827_v16 = vld [vmem:[%s4094_s3 + $0x130] sm:$0xff]  ;;  %v2840_v18 = vld [vmem:[%s4094_s3 + $0x108] sm:$0xff] }
   0x6   :  { %313 = vperm.xlu0 %2587, %v2119_v3   ;;  %121 = vmatpush1.msra.mxu0 %v2778_v8  ;;  %v2822_v15 = vld [vmem:[%s4094_s3 + $0x120] sm:$0xff]  ;;  %v2834_v17 = vld [vmem:[%s4094_s3 + $0x110] sm:$0xff]  ;;  %v2845_v19 = vld [vmem:[%s4094_s3 + $0x118] sm:$0xff]  ;;  %4134 = vst [vmem:[#allocation6_spill] sm:$0xff] %v3154_v63 }
   0x7   :  { %2307 = vmatpush3.msra.mxu1 %v2787_v9  ;;  %122 = vmatprep.subr.mxu0 %v2792_v10  ;;  %v2154_v20 = vld [vmem:[%s4093_s1 + $0x30] sm:$0xff]  ;;  %v2855_v21 = vld [vmem:[%s4094_s3 + $0xf8] sm:$0xff]  ;;  %v2869_v23 = vld [vmem:[%s4094_s3 + $0x100] sm:$0xff] }
   0x8   :  { %2308 = vmatprep.subr.mxu1 %v4104_v2  ;;  %123 = vmatpush1.msra.mxu0 %v2799_v11  ;;  %v2862_v22 = vld [vmem:[%s4094_s3 + $0xf0] sm:$0xff]  ;;  %v2874_v24 = vld [vmem:[%s4094_s3 + $0xe0] sm:$0xff]  ;;  %v2880_v25 = vld [vmem:[%s4094_s3 + $0xd8] sm:$0xff] }
   0x9   :  { %2309 = vmatpush3.msra.mxu1 %v2805_v12  ;;  %124 = vmatprep.subr.mxu0 %v2810_v13  ;;  %v2887_v26 = vld [vmem:[%s4094_s3 + $0xe8] sm:$0xff]  ;;  %v2899_v28 = vld [vmem:[%s4094_s3 + $0xc0] sm:$0xff]  ;;  %v2906_v29 = vld [vmem:[%s4094_s3 + $0xd0] sm:$0xff] }
   0xa   :  { %1084 = vperm.xlu0 %2587, %v2140_v14   ;;  %2310 = vmatprep.subr.mxu1 %v4104_v2  ;;  %v2892_v27 = vld [vmem:[%s4094_s3 + $0xc8] sm:$0xff]  ;;  %v2911_v30 = vld [vmem:[%s4094_s3 + $0xb0] sm:$0xff]  ;;  %v2925_v32 = vld [vmem:[%s4094_s3 + $0xb8] sm:$0xff] }
   0xb   :  { %125 = vmatpush1.msra.mxu0 %v2822_v15  ;;  %2311 = vmatpush3.msra.mxu1 %v2827_v16  ;;  %v2918_v31 = vld [vmem:[%s4094_s3 + $0xa8] sm:$0xff]  ;;  %v2930_v33 = vld [vmem:[%s4094_s3 + $0x98] sm:$0xff]  ;;  %v2937_v34 = vld [vmem:[%s4094_s3 + $0x90] sm:$0xff] }
   0xc   :  { %126 = vmatprep.subr.mxu0 %v2834_v17  ;;  %2312 = vmatprep.subr.mxu1 %v4104_v2  ;;  %v2944_v35 = vld [vmem:[%s4094_s3 + $0xa0] sm:$0xff]  ;;  %v2956_v37 = vld [vmem:[%s4094_s3 + $0x78] sm:$0xff]  ;;  %v2963_v38 = vld [vmem:[%s4094_s3 + $0x88] sm:$0xff] }
   0xd   :  { %127 = vmatpush1.msra.mxu0 %v2840_v18  ;;  %2313 = vmatpush3.msra.mxu1 %v2845_v19  ;;  %v2949_v36 = vld [vmem:[%s4094_s3 + $0x80] sm:$0xff]  ;;  %v2968_v39 = vld [vmem:[%s4094_s3 + $0x68] sm:$0xff]  ;;  %v2982_v41 = vld [vmem:[%s4094_s3 + $0x70] sm:$0xff] }
   0xe   :  { %1598 = vperm.xlu0 %2587, %v2154_v20   ;;  %128 = vmatprep.subr.mxu0 %v2855_v21  ;;  %v2975_v40 = vld [vmem:[%s4094_s3 + $0x60] sm:$0xff]  ;;  %v2987_v42 = vld [vmem:[%s4094_s3 + $0x50] sm:$0xff]  ;;  %v2994_v43 = vld [vmem:[%s4094_s3 + $0x48] sm:$0xff] }
   0xf   :  { %2314 = vmatprep.subr.mxu1 %v4104_v2  ;;  %129 = vmatpush1.msra.mxu0 %v2862_v22  ;;  %v3001_v44 = vld [vmem:[%s4094_s3 + $0x58] sm:$0xff]  ;;  %v3013_v46 = vld [vmem:[%s4094_s3 + $0x30] sm:$0xff]  ;;  %v3020_v47 = vld [vmem:[%s4094_s3 + $0x40] sm:$0xff] }
  0x10   :  { %2315 = vmatpush3.msra.mxu1 %v2869_v23  ;;  %130 = vmatprep.subr.mxu0 %v2874_v24  ;;  %v3006_v45 = vld [vmem:[%s4094_s3 + $0x38] sm:$0xff]  ;;  %v3025_v48 = vld [vmem:[%s4094_s3 + $0x20] sm:$0xff]  ;;  %v3039_v50 = vld [vmem:[%s4094_s3 + $0x28] sm:$0xff] }
  0x11   :  { %2316 = vmatprep.subr.mxu1 %v4104_v2  ;;  %131 = vmatpush1.msra.mxu0 %v2880_v25  ;;  %v3032_v49 = vld [vmem:[%s4094_s3 + $0x18] sm:$0xff]  ;;  %v3044_v51 = vld [vmem:[%s4094_s3 + $0x8] sm:$0xff]  ;;  %v3051_v52 = vld [vmem:[%s4094_s3] sm:$0xff] }
  0x12   :  { %2317 = vmatpush3.msra.mxu1 %v2887_v26  ;;  %132 = vmatprep.subr.mxu0 %v2892_v27  ;;  %4131 = vst [vmem:[#allocation3_spill] sm:$0xff] %v3044_v51  ;;  %4132 = vst [vmem:[#allocation4_spill] sm:$0xff] %v3051_v52  ;;  %v3058_v53 = vld [vmem:[%s4094_s3 + $0x10] sm:$0xff]  ;;  %v38_v54 = vld [vmem:[%s4097_s2] sm:$0xff] }
  0x13   :  { %2318 = vmatprep.subr.mxu1 %v4104_v2  ;;  %133 = vmatpush1.msra.mxu0 %v2899_v28  ;;  %4133 = vst [vmem:[#allocation5_spill] sm:$0xff] %v3058_v53  ;;  %v2126_v57 = vld [vmem:[%s4093_s1 + $0x10] sm:$0xff]  ;;  %v2133_v58 = vld [vmem:[%s4093_s1 + $0x18] sm:$0xff]  ;;  %v2147_v59 = vld [vmem:[%s4093_s1 + $0x28] sm:$0xff] }
  0x14   :  { %2319 = vmatpush3.msra.mxu1 %v2906_v29  ;;  %134 = vmatprep.subr.mxu0 %v2911_v30  ;;  %v2161_v60 = vld [vmem:[%s4093_s1 + $0x38] sm:$0xff]  ;;  %v50_v3 = vld [vmem:[%s4099_s0] sm:$0xff] }
  0x15   :  { %2320 = vmatprep.subr.mxu1 %v4104_v2  ;;  %135 = vmatpush1.msra.mxu0 %v2918_v31 }
  0x16   :  { %2321 = vmatpush3.msra.mxu1 %v2925_v32  ;;  %136 = vmatprep.subr.mxu0 %v2930_v33 }
  0x17   :  { %2322 = vmatprep.subr.mxu1 %v4104_v2  ;;  %137 = vmatpush1.msra.mxu0 %v2937_v34 }
  0x18   :  { %2323 = vmatpush3.msra.mxu1 %v2944_v35  ;;  %138 = vmatprep.subr.mxu0 %v2949_v36 }
  0x19   :  { %2324 = vmatprep.subr.mxu1 %v4104_v2  ;;  %139 = vmatpush1.msra.mxu0 %v2956_v37 }
  0x1a   :  { %2325 = vmatpush3.msra.mxu1 %v2963_v38  ;;  %140 = vmatprep.subr.mxu0 %v2968_v39 }
  0x1b   :  { %2326 = vmatprep.subr.mxu1 %v4104_v2  ;;  %141 = vmatpush1.msra.mxu0 %v2975_v40 }
  0x1c   :  { %2327 = vmatpush3.msra.mxu1 %v2982_v41  ;;  %142 = vmatprep.subr.mxu0 %v2987_v42 }
  0x1d   :  { %2328 = vmatprep.subr.mxu1 %v4104_v2  ;;  %143 = vmatpush1.msra.mxu0 %v2994_v43 }
  0x1e   :  { %2329 = vmatpush3.msra.mxu1 %v3001_v44  ;;  %144 = vmatprep.subr.mxu0 %v3006_v45 }
  0x1f   :  { %2330 = vmatprep.subr.mxu1 %v4104_v2  ;;  %145 = vmatpush1.msra.mxu0 %v3013_v46 }
  0x20   :  { %2331 = vmatpush3.msra.mxu1 %v3020_v47  ;;  %146 = vmatprep.subr.mxu0 %v3025_v48 }
  0x21   :  { %2332 = vmatprep.subr.mxu1 %v4104_v2  ;;  %147 = vmatpush1.msra.mxu0 %v3032_v49 }
  0x22   :  { %2333 = vmatpush3.msra.mxu1 %v3039_v50  ;;  %148 = vmatprep.subr.mxu0 %v3044_v51 }
  0x23   :  { %2334 = vmatprep.subr.mxu1 %v4104_v2  ;;  %149 = vmatpush1.msra.mxu0 %v3051_v52 }
  0x24   :  { %2335 = vmatpush3.msra.mxu1 %v3058_v53  ;;  %2588 = vset.pattern.permute.xlu1 %v2687_v0  ;;  %v101_v0 = vld [vmem:[%s4098_s4] sm:$0x7] }
  0x25   :  { %386 = vmatprep.subr.mxu0 %v2756_v4  ;;  %2339 = vmatprep.subr.mxu1 %v4104_v2  ;;  %v106_v1 = vrot.slane %v101_v0, %v3154_v63  ;;  %v51_v63 = vld [vmem:[%s4099_s0 + $0x8] sm:$0xff] }
  0x26   :  { %570 = vperm.xlu1 %2588, %v2126_v57  }
  0x2a   :  { %827 = vperm.xlu1 %2588, %v2133_v58  }
  0x2e   :  { %1341 = vperm.xlu1 %2588, %v2147_v59  }
  0x32   :  { %1855 = vperm.xlu1 %2588, %v2161_v60  }
  0x7d   :  { %v47_v55 = vpop.permute.xlu0 %46 }
  0x7e   :  { %v3071_v56 = vmul.f32 %v47_v55, %v38_v54  ;;  %v3163_v55 = vsub.s32 1, %v104_v62 }
  0x80   :  { %183 = vmatmul.mubr.f32.vlgmr.msra.gmra.mxu0 %v3071_v56  ;;  %2337 = vmatmul.mubr.f32.vlgmr.msra.gmra.mxu1 %v3071_v56  ;;  %v110_v60 = vrot.slane %v101_v0, %v3163_v55 }
  0x81   :  { %387 = vmatpush1.msra.mxu0 %v2761_v5  ;;  %2340 = vmatpush3.msra.mxu1 %v2768_v6 }
  0x82   :  { %388 = vmatprep.subr.mxu0 %v2773_v7  ;;  %2341 = vmatprep.subr.mxu1 %v4104_v2 }
  0x83   :  { %389 = vmatpush1.msra.mxu0 %v2778_v8  ;;  %2342 = vmatpush3.msra.mxu1 %v2787_v9 }
  0x84   :  { %390 = vmatprep.subr.mxu0 %v2792_v10  ;;  %2343 = vmatprep.subr.mxu1 %v4104_v2 }
  0x85   :  { %391 = vmatpush1.msra.mxu0 %v2799_v11  ;;  %2344 = vmatpush3.msra.mxu1 %v2805_v12 }
  0x86   :  { %392 = vmatprep.subr.mxu0 %v2810_v13  ;;  %2345 = vmatprep.subr.mxu1 %v4104_v2 }
  0x87   :  { %393 = vmatpush1.msra.mxu0 %v2822_v15  ;;  %2346 = vmatpush3.msra.mxu1 %v2827_v16 }
  0x88   :  { %394 = vmatprep.subr.mxu0 %v2834_v17  ;;  %2347 = vmatprep.subr.mxu1 %v4104_v2 }
  0x89   :  { %395 = vmatpush1.msra.mxu0 %v2840_v18  ;;  %2348 = vmatpush3.msra.mxu1 %v2845_v19 }
  0x8a   :  { %396 = vmatprep.subr.mxu0 %v2855_v21  ;;  %2349 = vmatprep.subr.mxu1 %v4104_v2 }
  0x8b   :  { %397 = vmatpush1.msra.mxu0 %v2862_v22  ;;  %2350 = vmatpush3.msra.mxu1 %v2869_v23 }
  0x8c   :  { %398 = vmatprep.subr.mxu0 %v2874_v24  ;;  %2351 = vmatprep.subr.mxu1 %v4104_v2 }
  0x8d   :  { %399 = vmatpush1.msra.mxu0 %v2880_v25  ;;  %2352 = vmatpush3.msra.mxu1 %v2887_v26 }
  0x8e   :  { %400 = vmatprep.subr.mxu0 %v2892_v27  ;;  %2353 = vmatprep.subr.mxu1 %v4104_v2 }
  0x8f   :  { %401 = vmatpush1.msra.mxu0 %v2899_v28  ;;  %2354 = vmatpush3.msra.mxu1 %v2906_v29 }
  0x90   :  { %402 = vmatprep.subr.mxu0 %v2911_v30  ;;  %2355 = vmatprep.subr.mxu1 %v4104_v2 }
  0x91   :  { %403 = vmatpush1.msra.mxu0 %v2918_v31  ;;  %2356 = vmatpush3.msra.mxu1 %v2925_v32 }
  0x92   :  { %404 = vmatprep.subr.mxu0 %v2930_v33  ;;  %2357 = vmatprep.subr.mxu1 %v4104_v2 }
  0x93   :  { %405 = vmatpush1.msra.mxu0 %v2937_v34  ;;  %2358 = vmatpush3.msra.mxu1 %v2944_v35 }
  0x94   :  { %406 = vmatprep.subr.mxu0 %v2949_v36  ;;  %2359 = vmatprep.subr.mxu1 %v4104_v2 }
  0x95   :  { %407 = vmatpush1.msra.mxu0 %v2956_v37  ;;  %2360 = vmatpush3.msra.mxu1 %v2963_v38 }
  0x96   :  { %408 = vmatprep.subr.mxu0 %v2968_v39  ;;  %2361 = vmatprep.subr.mxu1 %v4104_v2 }
  0x97   :  { %409 = vmatpush1.msra.mxu0 %v2975_v40  ;;  %2362 = vmatpush3.msra.mxu1 %v2982_v41 }
  0x98   :  { %410 = vmatprep.subr.mxu0 %v2987_v42  ;;  %2363 = vmatprep.subr.mxu1 %v4104_v2 }
  0x99   :  { %411 = vmatpush1.msra.mxu0 %v2994_v43  ;;  %2364 = vmatpush3.msra.mxu1 %v3001_v44 }
  0x9a   :  { %412 = vmatprep.subr.mxu0 %v3006_v45  ;;  %2365 = vmatprep.subr.mxu1 %v4104_v2 }
  0x9b   :  { %413 = vmatpush1.msra.mxu0 %v3013_v46  ;;  %2366 = vmatpush3.msra.mxu1 %v3020_v47 }
  0x9c   :  { %414 = vmatprep.subr.mxu0 %v3025_v48  ;;  %2367 = vmatprep.subr.mxu1 %v4104_v2 }
  0x9d   :  { %415 = vmatpush1.msra.mxu0 %v3032_v49  ;;  %2368 = vmatpush3.msra.mxu1 %v3039_v50 }
  0x9e   :  { %416 = vmatprep.subr.mxu0 %v3044_v51  ;;  %2369 = vmatprep.subr.mxu1 %v4104_v2 }
  0x9f   :  { %417 = vmatpush1.msra.mxu0 %v3051_v52  ;;  %450 = vmatprep.mubr.f32.mxu0 %v4104_v2 }
  0xa0   :  { %2370 = vmatpush3.msra.mxu1 %v3058_v53  ;;  %2371 = vmatprep.mubr.msk.f32.mxu1 %vm2689_vm0, %v4104_v2 }
  0xa1   :  { %643 = vmatprep.subr.mxu0 %v2756_v4  ;;  %2374 = vmatprep.subr.mxu1 %v4104_v2 }
 0x140   :  { %v184_v14 = vpop.f32.mrf.mxu0  ;;  %v255_v20 = vpop.f32.mrf.mxu1 }
 0x141   :  { %v185_v54 = vadd.f32 %v184_v14, %v106_v1  ;;  %v3169_v1 = vsub.s32 2, %v104_v62  ;;  %v314_v62 = vpop.permute.xlu0 %313 }
 0x142   :  { %v2338_v57 = vpop.f32.mrf.mxu1  ;;  %v186_v61 = vpop.f32.mrf.mxu0 }
 0x143   :  { %v259_v58 = vadd.f32 %v185_v54, %v50_v3  ;;  %v187_v2 = vadd.f32 %v186_v61, %v110_v60  ;;  %v114_v3 = vrot.slane %v101_v0, %v3169_v1 }
 0x145   :  { %v2115_v59 = vmul.f32 -1.442695, %v259_v58  ;;  %v266_v4 = vadd.f32 %v187_v2, %v51_v63  ;;  %v256_v54 = vadd.f32 %v255_v20, %v114_v3  ;;  %v52_v58 = vld [vmem:[%s4099_s0 + $0x10] sm:$0xff] }
 0x147   :  { %2589 = vpow2.f32 %v2115_v59  ;;  %v2116_v53 = vmul.f32 -1.442695, %v266_v4 }
 0x149   :  { %2591 = vpow2.f32 %v2116_v53 }
 0x154   :  { %v2590_v52 = vpop.eup %2589 }
 0x155   :  { %v263_v51 = vadd.f32 1.0, %v2590_v52 }
 0x156   :  { %v2592_v14 = vpop.eup %2591 }
 0x157   :  { %2593 = vrcp.f32 %v263_v51  ;;  %v270_v61 = vadd.f32 1.0, %v2592_v14 }
 0x164   :  { %v2594_v57 = vpop.eup %2593 }
 0x165   :  { %v273_v59 = vmul.f32 %v2594_v57, %v256_v54 }
 0x167   :  { %v274_v60 = vadd.f32 %v273_v59, %v52_v58 }
 0x169   :  { %2595 = vtanh.f32 %v274_v60 }
 0x16a   :  { %2597 = vrcp.f32 %v270_v61  ;;  %v3267_v61 = vld [vmem:[%s4100_s7] ss:$0 sm:$0xff] }
 0x176   :  { %v2596_v2 = vpop.eup %2595 }
 0x177   :  { %v276_v4 = vsub.f32 %v3071_v56, %v2596_v2  ;;  %v2598_v51 = vpop.eup %2597  ;;  %v4135_v56 = vmov 0.0  }
 0x179   :  { %v277_v52 = vmul.f32 %v2598_v51, %v276_v4  ;;  %v3272_v4 = vld [vmem:[%s4101_s8] ss:$0 sm:$0xff] }
 0x17a   :  { %4144 = vst [vmem:[#allocation7_spill] sm:$0xff] %v3272_v4 }
 0x17b   :  { %v3176_v53 = vadd.f32 %v2596_v2, %v277_v52 }
 0x17d   :  { %280 = vadd.xlane.f32.xlu0 %v3176_v53  ;;  %v283_v63 = vmul.f32 %v3176_v53, %v3176_v53  ;;  %v3182_v0 = vmul.f32 %v314_v62, %v3176_v53  ;;  %v4145_v62 = vld [vmem:[#allocation6_spill] sm:$0xff] }
 0x17f   :  { %284 = vadd.xlane.f32.xlu1 %v283_v63  ;;  %451 = vmatmul.mubr.f32.vlgmr.msra.gmra.mxu0 %v3182_v0 }
 0x180   :  { %2372 = vmatmul.mubr.f32.vlgmr.msra.gmra.mxu1 %v3182_v0  ;;  %644 = vmatpush1.msra.mxu0 %v2761_v5 }
 0x181   :  { %2375 = vmatpush3.msra.mxu1 %v2768_v6  ;;  %645 = vmatprep.subr.mxu0 %v2773_v7 }
 0x182   :  { %2376 = vmatprep.subr.mxu1 %v4135_v56  ;;  %646 = vmatpush1.msra.mxu0 %v2778_v8 }
 0x183   :  { %2377 = vmatpush3.msra.mxu1 %v2787_v9  ;;  %647 = vmatprep.subr.mxu0 %v2792_v10 }
 0x184   :  { %2378 = vmatprep.subr.mxu1 %v4135_v56  ;;  %648 = vmatpush1.msra.mxu0 %v2799_v11 }
 0x185   :  { %2379 = vmatpush3.msra.mxu1 %v2805_v12  ;;  %649 = vmatprep.subr.mxu0 %v2810_v13 }
 0x186   :  { %2380 = vmatprep.subr.mxu1 %v4135_v56  ;;  %650 = vmatpush1.msra.mxu0 %v2822_v15 }
 0x187   :  { %2381 = vmatpush3.msra.mxu1 %v2827_v16  ;;  %651 = vmatprep.subr.mxu0 %v2834_v17 }
 0x188   :  { %2382 = vmatprep.subr.mxu1 %v4135_v56  ;;  %652 = vmatpush1.msra.mxu0 %v2840_v18 }
 0x189   :  { %2383 = vmatpush3.msra.mxu1 %v2845_v19  ;;  %653 = vmatprep.subr.mxu0 %v2855_v21 }
 0x18a   :  { %2384 = vmatprep.subr.mxu1 %v4135_v56  ;;  %654 = vmatpush1.msra.mxu0 %v2862_v22 }
 0x18b   :  { %2385 = vmatpush3.msra.mxu1 %v2869_v23  ;;  %655 = vmatprep.subr.mxu0 %v2874_v24 }
 0x18c   :  { %2386 = vmatprep.subr.mxu1 %v4135_v56  ;;  %656 = vmatpush1.msra.mxu0 %v2880_v25 }
 0x18d   :  { %2387 = vmatpush3.msra.mxu1 %v2887_v26  ;;  %657 = vmatprep.subr.mxu0 %v2892_v27 }
 0x18e   :  { %2388 = vmatprep.subr.mxu1 %v4135_v56  ;;  %658 = vmatpush1.msra.mxu0 %v2899_v28 }
 0x18f   :  { %2389 = vmatpush3.msra.mxu1 %v2906_v29  ;;  %659 = vmatprep.subr.mxu0 %v2911_v30 }
 0x190   :  { %2390 = vmatprep.subr.mxu1 %v4135_v56  ;;  %660 = vmatpush1.msra.mxu0 %v2918_v31 }
 0x191   :  { %2391 = vmatpush3.msra.mxu1 %v2925_v32  ;;  %661 = vmatprep.subr.mxu0 %v2930_v33 }
 0x192   :  { %2392 = vmatprep.subr.mxu1 %v4135_v56  ;;  %662 = vmatpush1.msra.mxu0 %v2937_v34 }
 0x193   :  { %2393 = vmatpush3.msra.mxu1 %v2944_v35  ;;  %663 = vmatprep.subr.mxu0 %v2949_v36 }
 0x194   :  { %2394 = vmatprep.subr.mxu1 %v4135_v56  ;;  %664 = vmatpush1.msra.mxu0 %v2956_v37 }
 0x195   :  { %2395 = vmatpush3.msra.mxu1 %v2963_v38  ;;  %665 = vmatprep.subr.mxu0 %v2968_v39 }
 0x196   :  { %2396 = vmatprep.subr.mxu1 %v4135_v56  ;;  %666 = vmatpush1.msra.mxu0 %v2975_v40  ;;  %v4136_v40 = vld [vmem:[#allocation3_spill] sm:$0xff] }
 0x197   :  { %2397 = vmatpush3.msra.mxu1 %v2982_v41  ;;  %667 = vmatprep.subr.mxu0 %v2987_v42  ;;  %v4137_v41 = vld [vmem:[#allocation4_spill] sm:$0xff]  ;;  %v4138_v42 = vld [vmem:[#allocation5_spill] sm:$0xff] }
 0x198   :  { %2398 = vmatprep.subr.mxu1 %v4135_v56  ;;  %668 = vmatpush1.msra.mxu0 %v2994_v43  ;;  %v4139_v43 = vld [vmem:[#allocation2_spill] sm:$0xff] }
 0x199   :  { %2399 = vmatpush3.msra.mxu1 %v3001_v44  ;;  %669 = vmatprep.subr.mxu0 %v3006_v45  ;;  %v571_v44 = vpop.permute.xlu1 %570  ;;  %4143 = vst [vmem:[#allocation2_spill] sm:$0xff] %v3267_v61 }
 0x19a   :  { %2400 = vmatprep.subr.mxu1 %v4135_v56  ;;  %670 = vmatpush1.msra.mxu0 %v3013_v46  ;;  %v3255_v46 = vpop.permute.xlu0 %1084 }
 0x19b   :  { %2401 = vmatpush3.msra.mxu1 %v3020_v47  ;;  %671 = vmatprep.subr.mxu0 %v3025_v48 }
 0x19c   :  { %2402 = vmatprep.subr.mxu1 %v4135_v56  ;;  %672 = vmatpush1.msra.mxu0 %v3032_v49 }
 0x19d   :  { %2403 = vmatpush3.msra.mxu1 %v3039_v50  ;;  %673 = vmatprep.subr.mxu0 %v4136_v40  ;;  %v3253_v45 = vpop.permute.xlu1 %827 }
 0x19e   :  { %2404 = vmatprep.subr.mxu1 %v4135_v56  ;;  %674 = vmatpush1.msra.mxu0 %v4137_v41  ;;  %v3259_v48 = vpop.permute.xlu0 %1598 }
 0x19f   :  { %707 = vmatprep.mubr.f32.mxu0 %v4135_v56  ;;  %2405 = vmatpush3.msra.mxu1 %v4138_v42  ;;  %4141 = vst [vmem:[#allocation4_spill] sm:$0xff] %v3259_v48 }
 0x1a0   :  { %2406 = vmatprep.mubr.msk.f32.mxu1 %vm2689_vm0, %v4135_v56  ;;  %900 = vmatprep.subr.mxu0 %v4139_v43  ;;  %v2120_v43 = vld [vmem:[%s4099_s0 + $0x18] sm:$0xff] }
 0x1a1   :  { %2409 = vmatprep.subr.mxu1 %v4135_v56  ;;  %v3257_v47 = vpop.permute.xlu1 %1341 }
 0x1a2   :  { %4140 = vst [vmem:[#allocation3_spill] sm:$0xff] %v3257_v47 }
 0x1a5   :  { %v3261_v49 = vpop.permute.xlu1 %1855 }
 0x1a6   :  { %4142 = vst [vmem:[#allocation5_spill] sm:$0xff] %v3261_v49 }
 0x206   :  { %v281_v50 = vpop.xlane.xlu0 %280 }
 0x207   :  { %v282_v20 = vmul.f32 0.03125, %v281_v50 }
 0x208   :  { %v285_v3 = vpop.xlane.xlu1 %284 }
 0x209   :  { %v287_v14 = vmul.f32 %v282_v20, %v282_v20  ;;  %v286_v54 = vmul.f32 0.03125, %v285_v3  ;;  %v289_v59 = vsub.f32 %v3176_v53, %v282_v20  ;;  %v369_v53 = vld [vmem:[%s4098_s4] sm:$0x7] }
 0x20a   :  { %v374_v63 = vrot.slane %v369_v53, %v4145_v62 }
 0x20b   :  { %v288_v57 = vsub.f32 %v286_v54, %v287_v14 }
 0x20d   :  { %v290_v58 = vadd.f32 1e-05, %v288_v57 }
 0x20f   :  { %2599 = vrsqrt.f32 %v290_v58  ;;  %v378_v58 = vrot.slane %v369_v53, %v3163_v55 }
 0x21c   :  { %v2600_v60 = vpop.eup %2599 }
 0x21d   :  { %v292_v2 = vmul.f32 %v2600_v60, %v289_v59 }
 0x21f   :  { %v299_v51 = vmul.f32 %v3267_v61, %v292_v2  ;;  %v2121_v2 = vld [vmem:[%s4099_s0 + $0x20] sm:$0xff] }
 0x221   :  { %v306_v52 = vadd.f32 %v3272_v4, %v299_v51 }
 0x223   :  { %307 = vst [vmem:[%s4102_s9] sm:$0xff] %v306_v52 }
 0x23f   :  { %v452_v50 = vpop.f32.mrf.mxu0 }
 0x240   :  { %v453_v20 = vadd.f32 %v452_v50, %v374_v63  ;;  %v523_v3 = vpop.f32.mrf.mxu1  ;;  %v382_v63 = vrot.slane %v369_v53, %v3169_v1 }
 0x241   :  { %v454_v59 = vpop.f32.mrf.mxu0 }
 0x242   :  { %v527_v14 = vadd.f32 %v2120_v43, %v453_v20  ;;  %v2373_v54 = vpop.f32.mrf.mxu1  ;;  %v455_v60 = vadd.f32 %v454_v59, %v378_v58  ;;  %v524_v50 = vadd.f32 %v523_v3, %v382_v63 }
 0x244   :  { %v2123_v57 = vmul.f32 -1.442695, %v527_v14  ;;  %v534_v51 = vadd.f32 %v2121_v2, %v455_v60  ;;  %v2122_v14 = vld [vmem:[%s4099_s0 + $0x28] sm:$0xff] }
 0x246   :  { %2601 = vpow2.f32 %v2123_v57  ;;  %v2124_v52 = vmul.f32 -1.442695, %v534_v51 }
 0x248   :  { %2603 = vpow2.f32 %v2124_v52 }
 0x253   :  { %v2602_v49 = vpop.eup %2601 }
 0x254   :  { %v531_v48 = vadd.f32 1.0, %v2602_v49 }
 0x255   :  { %v2604_v43 = vpop.eup %2603 }
 0x256   :  { %2605 = vrcp.f32 %v531_v48  ;;  %v538_v58 = vadd.f32 1.0, %v2604_v43 }
 0x263   :  { %v2606_v20 = vpop.eup %2605 }
 0x264   :  { %v541_v54 = vmul.f32 %v2606_v20, %v524_v50 }
 0x266   :  { %v542_v57 = vadd.f32 %v2122_v14, %v541_v54  ;;  %v2129_v14 = vld [vmem:[%s4099_s0 + $0x40] sm:$0xff] }
 0x268   :  { %2607 = vtanh.f32 %v542_v57 }
 0x269   :  { %2609 = vrcp.f32 %v538_v58 }
 0x275   :  { %v2608_v59 = vpop.eup %2607 }
 0x276   :  { %v544_v60 = vsub.f32 %v3182_v0, %v2608_v59  ;;  %v2610_v49 = vpop.eup %2609 }
 0x278   :  { %v545_v2 = vmul.f32 %v2610_v49, %v544_v60 }
 0x27a   :  { %v3295_v48 = vadd.f32 %v2608_v59, %v545_v2 }
 0x27c   :  { %548 = vadd.xlane.f32.xlu0 %v3295_v48  ;;  %v3299_v53 = vmul.f32 %v571_v44, %v3295_v48  ;;  %v551_v3 = vmul.f32 %v3295_v48, %v3295_v48 }
 0x27e   :  { %708 = vmatmul.mubr.f32.vlgmr.msra.gmra.mxu0 %v3299_v53  ;;  %2407 = vmatmul.mubr.f32.vlgmr.msra.gmra.mxu1 %v3299_v53 }
 0x27f   :  { %901 = vmatpush1.msra.mxu0 %v2761_v5  ;;  %2410 = vmatpush3.msra.mxu1 %v2768_v6  ;;  %v3355_v5 = vld [vmem:[%s4094_s3 + $0x60] sm:$0xff]  ;;  %v3360_v6 = vld [vmem:[%s4094_s3 + $0x70] sm:$0xff] }
 0x280   :  { %552 = vadd.xlane.f32.xlu0 %v551_v3  ;;  %902 = vmatprep.subr.mxu0 %v2773_v7  ;;  %v3367_v7 = vld [vmem:[%s4094_s3 + $0x50] sm:$0xff] }
 0x281   :  { %2411 = vmatprep.subr.mxu1 %v4135_v56  ;;  %903 = vmatpush1.msra.mxu0 %v2778_v8  ;;  %v3374_v8 = vld [vmem:[%s4094_s3 + $0x48] sm:$0xff] }
 0x282   :  { %2412 = vmatpush3.msra.mxu1 %v2787_v9  ;;  %904 = vmatprep.subr.mxu0 %v2792_v10  ;;  %v3379_v9 = vld [vmem:[%s4094_s3 + $0x58] sm:$0xff] }
 0x283   :  { %2413 = vmatprep.subr.mxu1 %v4135_v56  ;;  %905 = vmatpush1.msra.mxu0 %v2799_v11  ;;  %v3386_v10 = vld [vmem:[%s4094_s3 + $0x38] sm:$0xff]  ;;  %v3393_v11 = vld [vmem:[%s4094_s3 + $0x30] sm:$0xff] }
 0x284   :  { %2414 = vmatpush3.msra.mxu1 %v2805_v12  ;;  %906 = vmatprep.subr.mxu0 %v2810_v13  ;;  %v3398_v12 = vld [vmem:[%s4094_s3 + $0x40] sm:$0xff] }
 0x285   :  { %2415 = vmatprep.subr.mxu1 %v4135_v56  ;;  %907 = vmatpush1.msra.mxu0 %v2822_v15  ;;  %v3405_v13 = vld [vmem:[%s4094_s3 + $0x20] sm:$0xff]  ;;  %v3412_v15 = vld [vmem:[%s4094_s3 + $0x18] sm:$0xff] }
 0x286   :  { %2416 = vmatpush3.msra.mxu1 %v2827_v16  ;;  %908 = vmatprep.subr.mxu0 %v2834_v17  ;;  %4146 = vst [vmem:[#allocation8_spill] sm:$0xff] %v3412_v15  ;;  %v3417_v16 = vld [vmem:[%s4094_s3 + $0x28] sm:$0xff] }
 0x287   :  { %2417 = vmatprep.subr.mxu1 %v4135_v56  ;;  %909 = vmatpush1.msra.mxu0 %v2840_v18  ;;  %4147 = vst [vmem:[#allocation9_spill] sm:$0xff] %v3417_v16 }
 0x288   :  { %2418 = vmatpush3.msra.mxu1 %v2845_v19  ;;  %910 = vmatprep.subr.mxu0 %v2855_v21 }
 0x289   :  { %2419 = vmatprep.subr.mxu1 %v4135_v56  ;;  %911 = vmatpush1.msra.mxu0 %v2862_v22 }
 0x28a   :  { %2420 = vmatpush3.msra.mxu1 %v2869_v23  ;;  %912 = vmatprep.subr.mxu0 %v2874_v24 }
 0x28b   :  { %2421 = vmatprep.subr.mxu1 %v4135_v56  ;;  %913 = vmatpush1.msra.mxu0 %v2880_v25 }
 0x28c   :  { %2422 = vmatpush3.msra.mxu1 %v2887_v26  ;;  %914 = vmatprep.subr.mxu0 %v2892_v27 }
 0x28d   :  { %2423 = vmatprep.subr.mxu1 %v4135_v56  ;;  %915 = vmatpush1.msra.mxu0 %v2899_v28 }
 0x28e   :  { %2424 = vmatpush3.msra.mxu1 %v2906_v29  ;;  %916 = vmatprep.subr.mxu0 %v2911_v30  ;;  %v626_v30 = vld [vmem:[%s4098_s4] sm:$0x7] }
 0x28f   :  { %2425 = vmatprep.subr.mxu1 %v4135_v56  ;;  %917 = vmatpush1.msra.mxu0 %v2918_v31  ;;  %v631_v31 = vrot.slane %v626_v30, %v4145_v62  ;;  %v639_v63 = vrot.slane %v626_v30, %v3169_v1 }
 0x290   :  { %2426 = vmatpush3.msra.mxu1 %v2925_v32  ;;  %918 = vmatprep.subr.mxu0 %v2930_v33  ;;  %v2127_v32 = vld [vmem:[%s4099_s0 + $0x30] sm:$0xff] }
 0x291   :  { %2427 = vmatprep.subr.mxu1 %v4135_v56  ;;  %919 = vmatpush1.msra.mxu0 %v2937_v34 }
 0x292   :  { %2428 = vmatpush3.msra.mxu1 %v2944_v35  ;;  %920 = vmatprep.subr.mxu0 %v2949_v36 }
 0x293   :  { %2429 = vmatprep.subr.mxu1 %v4135_v56  ;;  %921 = vmatpush1.msra.mxu0 %v2956_v37 }
 0x294   :  { %2430 = vmatpush3.msra.mxu1 %v2963_v38  ;;  %922 = vmatprep.subr.mxu0 %v2968_v39  ;;  %v635_v39 = vrot.slane %v626_v30, %v3163_v55  ;;  %v3547_v30 = vld [vmem:[%s4094_s3 + $0x108] sm:$0xff] }
 0x295   :  { %2431 = vmatprep.subr.mxu1 %v4135_v56  ;;  %964 = vmatprep.mubr.f32.mxu0 %v4135_v56 }
 0x296   :  { %2441 = vmatprep.mubr.msk.f32.mxu1 %vm2689_vm0, %v4135_v56  ;;  %923 = vmatpush1.msra.mxu0 %v3355_v5 }
 0x297   :  { %2432 = vmatpush3.msra.mxu1 %v3360_v6  ;;  %924 = vmatprep.subr.mxu0 %v3367_v7 }
 0x298   :  { %2433 = vmatprep.subr.mxu1 %v4135_v56  ;;  %925 = vmatpush1.msra.mxu0 %v3374_v8 }
 0x299   :  { %2434 = vmatpush3.msra.mxu1 %v3379_v9  ;;  %926 = vmatprep.subr.mxu0 %v3386_v10 }
 0x29a   :  { %2435 = vmatprep.subr.mxu1 %v4135_v56  ;;  %927 = vmatpush1.msra.mxu0 %v3393_v11 }
 0x29b   :  { %2436 = vmatpush3.msra.mxu1 %v3398_v12  ;;  %928 = vmatprep.subr.mxu0 %v3405_v13 }
 0x29c   :  { %2437 = vmatprep.subr.mxu1 %v4135_v56  ;;  %929 = vmatpush1.msra.mxu0 %v3412_v15 }
 0x29d   :  { %2438 = vmatpush3.msra.mxu1 %v3417_v16  ;;  %930 = vmatprep.subr.mxu0 %v4136_v40 }
 0x29e   :  { %2439 = vmatprep.subr.mxu1 %v4135_v56  ;;  %931 = vmatpush1.msra.mxu0 %v4137_v41  ;;  %v2128_v41 = vld [vmem:[%s4099_s0 + $0x38] sm:$0xff] }
 0x29f   :  { %2440 = vmatpush3.msra.mxu1 %v4138_v42 }
 0x2a0   :  { %2444 = vmatprep.subr.mxu1 %v4135_v56 }
 0x305   :  { %v549_v17 = vpop.xlane.xlu0 %548 }
 0x306   :  { %v550_v18 = vmul.f32 0.03125, %v549_v17 }
 0x308   :  { %v555_v21 = vmul.f32 %v550_v18, %v550_v18  ;;  %v557_v25 = vsub.f32 %v3295_v48, %v550_v18  ;;  %v3476_v18 = vld [vmem:[%s4094_s3 + $0x178] sm:$0xff] }
 0x309   :  { %v553_v19 = vpop.xlane.xlu0 %552 }
 0x30a   :  { %v554_v22 = vmul.f32 0.03125, %v553_v19  ;;  %v3483_v19 = vld [vmem:[%s4094_s3 + $0x158] sm:$0xff] }
 0x30c   :  { %v556_v23 = vsub.f32 %v554_v22, %v555_v21  ;;  %v3490_v21 = vld [vmem:[%s4094_s3 + $0x150] sm:$0xff]  ;;  %v3495_v22 = vld [vmem:[%s4094_s3 + $0x160] sm:$0xff] }
 0x30e   :  { %v558_v24 = vadd.f32 1e-05, %v556_v23  ;;  %v3502_v23 = vld [vmem:[%s4094_s3 + $0x140] sm:$0xff] }
 0x310   :  { %2611 = vrsqrt.f32 %v558_v24  ;;  %v3509_v24 = vld [vmem:[%s4094_s3 + $0x138] sm:$0xff] }
 0x31d   :  { %v2612_v26 = vpop.eup %2611 }
 0x31e   :  { %v560_v27 = vmul.f32 %v2612_v26, %v557_v25  ;;  %v3514_v25 = vld [vmem:[%s4094_s3 + $0x148] sm:$0xff] }
 0x31f   :  { %v3521_v26 = vld [vmem:[%s4094_s3 + $0x128] sm:$0xff] }
 0x320   :  { %v561_v28 = vmul.f32 %v3267_v61, %v560_v27  ;;  %v3528_v27 = vld [vmem:[%s4094_s3 + $0x120] sm:$0xff] }
 0x322   :  { %v562_v29 = vadd.f32 %v3272_v4, %v561_v28  ;;  %v3533_v28 = vld [vmem:[%s4094_s3 + $0x130] sm:$0xff] }
 0x324   :  { %2125 = vst [vmem:[%s4102_s9 + $0x8] sm:$0xff] %v562_v29  ;;  %v3540_v29 = vld [vmem:[%s4094_s3 + $0x110] sm:$0xff] }
 0x33e   :  { %v709_v33 = vpop.f32.mrf.mxu0  ;;  %v780_v34 = vpop.f32.mrf.mxu1 }
 0x33f   :  { %v710_v35 = vadd.f32 %v709_v33, %v631_v31  ;;  %v781_v50 = vadd.f32 %v780_v34, %v639_v63  ;;  %v3552_v31 = vld [vmem:[%s4094_s3 + $0x118] sm:$0xff]  ;;  %v3564_v33 = vld [vmem:[%s4094_s3 + $0xf0] sm:$0xff]  ;;  %v3569_v34 = vld [vmem:[%s4094_s3 + $0x100] sm:$0xff] }
 0x340   :  { %v2408_v36 = vpop.f32.mrf.mxu1  ;;  %v711_v0 = vpop.f32.mrf.mxu0  ;;  %v3650_v63 = vld [vmem:[%s4094_s3 + $0x80] sm:$0xff] }
 0x341   :  { %v784_v37 = vadd.f32 %v2127_v32, %v710_v35  ;;  %v712_v40 = vadd.f32 %v711_v0, %v635_v39  ;;  %v3559_v32 = vld [vmem:[%s4094_s3 + $0xf8] sm:$0xff]  ;;  %v3576_v35 = vld [vmem:[%s4094_s3 + $0xe0] sm:$0xff]  ;;  %v3605_v0 = vld [vmem:[%s4094_s3 + $0xd0] sm:$0xff] }
 0x342   :  { %v3581_v36 = vld [vmem:[%s4094_s3 + $0xd8] sm:$0xff]  ;;  %v3600_v39 = vld [vmem:[%s4094_s3 + $0xc0] sm:$0xff] }
 0x343   :  { %v2130_v38 = vmul.f32 -1.442695, %v784_v37  ;;  %v791_v42 = vadd.f32 %v2128_v41, %v712_v40  ;;  %v3586_v37 = vld [vmem:[%s4094_s3 + $0xe8] sm:$0xff]  ;;  %v3612_v40 = vld [vmem:[%s4094_s3 + $0xb0] sm:$0xff] }
 0x344   :  { %v3619_v41 = vld [vmem:[%s4094_s3 + $0xa8] sm:$0xff] }
 0x345   :  { %2613 = vpow2.f32 %v2130_v38  ;;  %v2131_v44 = vmul.f32 -1.442695, %v791_v42  ;;  %v3593_v38 = vld [vmem:[%s4094_s3 + $0xc8] sm:$0xff]  ;;  %v3624_v42 = vld [vmem:[%s4094_s3 + $0xb8] sm:$0xff] }
 0x347   :  { %2615 = vpow2.f32 %v2131_v44  ;;  %v3631_v44 = vld [vmem:[%s4094_s3 + $0x98] sm:$0xff] }
 0x352   :  { %v2614_v51 = vpop.eup %2613 }
 0x353   :  { %v788_v52 = vadd.f32 1.0, %v2614_v51  ;;  %v3638_v51 = vld [vmem:[%s4094_s3 + $0x90] sm:$0xff] }
 0x354   :  { %v2616_v43 = vpop.eup %2615 }
 0x355   :  { %2617 = vrcp.f32 %v788_v52  ;;  %v795_v58 = vadd.f32 1.0, %v2616_v43  ;;  %v3643_v52 = vld [vmem:[%s4094_s3 + $0xa0] sm:$0xff]  ;;  %v3657_v43 = vld [vmem:[%s4094_s3 + $0x78] sm:$0xff] }
 0x362   :  { %v2618_v20 = vpop.eup %2617 }
 0x363   :  { %v798_v54 = vmul.f32 %v2618_v20, %v781_v50  ;;  %v3662_v50 = vld [vmem:[%s4094_s3 + $0x88] sm:$0xff] }
 0x364   :  { %v3669_v20 = vld [vmem:[%s4094_s3 + $0x68] sm:$0xff] }
 0x365   :  { %v799_v57 = vadd.f32 %v2129_v14, %v798_v54  ;;  %v3694_v14 = vld [vmem:[%s4094_s3 + $0x8] sm:$0xff]  ;;  %v3701_v54 = vld [vmem:[%s4094_s3] sm:$0xff] }
 0x366   :  { %4149 = vst [vmem:[#allocation11_spill] sm:$0xff] %v3694_v14  ;;  %4150 = vst [vmem:[#allocation12_spill] sm:$0xff] %v3701_v54 }
 0x367   :  { %2619 = vtanh.f32 %v799_v57  ;;  %v3706_v57 = vld [vmem:[%s4094_s3 + $0x10] sm:$0xff] }
 0x368   :  { %2621 = vrcp.f32 %v795_v58  ;;  %4151 = vst [vmem:[#allocation13_spill] sm:$0xff] %v3706_v57 }
 0x374   :  { %v2620_v59 = vpop.eup %2619 }
 0x375   :  { %v801_v60 = vsub.f32 %v3299_v53, %v2620_v59  ;;  %v2622_v49 = vpop.eup %2621  ;;  %v3465_v53 = vld [vmem:[%s4094_s3 + $0x170] sm:$0xff] }
 0x376   :  { %4148 = vst [vmem:[#allocation10_spill] sm:$0xff] %v3465_v53  ;;  %1157 = vmatprep.subr.mxu0 %v3465_v53 }
 0x377   :  { %v802_v2 = vmul.f32 %v2622_v49, %v801_v60 }
 0x379   :  { %v3448_v48 = vadd.f32 %v2620_v59, %v802_v2 }
 0x37b   :  { %805 = vadd.xlane.f32.xlu1 %v3448_v48  ;;  %v808_v3 = vmul.f32 %v3448_v48, %v3448_v48  ;;  %v3455_v17 = vmul.f32 %v3253_v45, %v3448_v48  ;;  %v3471_v45 = vld [vmem:[%s4094_s3 + $0x168] sm:$0xff] }
 0x37d   :  { %809 = vadd.xlane.f32.xlu0 %v808_v3  ;;  %965 = vmatmul.mubr.f32.vlgmr.msra.gmra.mxu0 %v3455_v17 }
 0x37e   :  { %2442 = vmatmul.mubr.f32.vlgmr.msra.gmra.mxu1 %v3455_v17  ;;  %1221 = vmatprep.mubr.f32.mxu0 %v4135_v56 }
 0x37f   :  { %2476 = vmatprep.mubr.msk.f32.mxu1 %vm2689_vm0, %v4135_v56  ;;  %1158 = vmatpush1.msra.mxu0 %v3471_v45 }
 0x380   :  { %2445 = vmatpush3.msra.mxu1 %v3476_v18  ;;  %1159 = vmatprep.subr.mxu0 %v3483_v19 }
 0x381   :  { %2446 = vmatprep.subr.mxu1 %v4135_v56  ;;  %1160 = vmatpush1.msra.mxu0 %v3490_v21 }
 0x382   :  { %2447 = vmatpush3.msra.mxu1 %v3495_v22  ;;  %1161 = vmatprep.subr.mxu0 %v3502_v23 }
 0x383   :  { %2448 = vmatprep.subr.mxu1 %v4135_v56  ;;  %1162 = vmatpush1.msra.mxu0 %v3509_v24 }
 0x384   :  { %2449 = vmatpush3.msra.mxu1 %v3514_v25  ;;  %1163 = vmatprep.subr.mxu0 %v3521_v26 }
 0x385   :  { %2450 = vmatprep.subr.mxu1 %v4135_v56  ;;  %1164 = vmatpush1.msra.mxu0 %v3528_v27 }
 0x386   :  { %2451 = vmatpush3.msra.mxu1 %v3533_v28  ;;  %1165 = vmatprep.subr.mxu0 %v3540_v29 }
 0x387   :  { %2452 = vmatprep.subr.mxu1 %v4135_v56  ;;  %1166 = vmatpush1.msra.mxu0 %v3547_v30 }
 0x388   :  { %2453 = vmatpush3.msra.mxu1 %v3552_v31  ;;  %1167 = vmatprep.subr.mxu0 %v3559_v32 }
 0x389   :  { %2454 = vmatprep.subr.mxu1 %v4135_v56  ;;  %1168 = vmatpush1.msra.mxu0 %v3564_v33 }
 0x38a   :  { %2455 = vmatpush3.msra.mxu1 %v3569_v34  ;;  %1169 = vmatprep.subr.mxu0 %v3576_v35 }
 0x38b   :  { %2456 = vmatprep.subr.mxu1 %v4135_v56  ;;  %1170 = vmatpush1.msra.mxu0 %v3581_v36 }
 0x38c   :  { %2457 = vmatpush3.msra.mxu1 %v3586_v37  ;;  %1171 = vmatprep.subr.mxu0 %v3593_v38 }
 0x38d   :  { %2458 = vmatprep.subr.mxu1 %v4135_v56  ;;  %1172 = vmatpush1.msra.mxu0 %v3600_v39 }
 0x38e   :  { %2459 = vmatpush3.msra.mxu1 %v3605_v0  ;;  %1173 = vmatprep.subr.mxu0 %v3612_v40 }
 0x38f   :  { %2460 = vmatprep.subr.mxu1 %v4135_v56  ;;  %1174 = vmatpush1.msra.mxu0 %v3619_v41 }
 0x390   :  { %2461 = vmatpush3.msra.mxu1 %v3624_v42  ;;  %1175 = vmatprep.subr.mxu0 %v3631_v44 }
 0x391   :  { %2462 = vmatprep.subr.mxu1 %v4135_v56  ;;  %1176 = vmatpush1.msra.mxu0 %v3638_v51 }
 0x392   :  { %2463 = vmatpush3.msra.mxu1 %v3643_v52  ;;  %1177 = vmatprep.subr.mxu0 %v3650_v63 }
 0x393   :  { %2464 = vmatprep.subr.mxu1 %v4135_v56  ;;  %1178 = vmatpush1.msra.mxu0 %v3657_v43 }
 0x394   :  { %2465 = vmatpush3.msra.mxu1 %v3662_v50  ;;  %1179 = vmatprep.subr.mxu0 %v3669_v20 }
 0x395   :  { %2466 = vmatprep.subr.mxu1 %v4135_v56  ;;  %1180 = vmatpush1.msra.mxu0 %v3355_v5 }
 0x396   :  { %2467 = vmatpush3.msra.mxu1 %v3360_v6  ;;  %1181 = vmatprep.subr.mxu0 %v3367_v7 }
 0x397   :  { %2468 = vmatprep.subr.mxu1 %v4135_v56  ;;  %1182 = vmatpush1.msra.mxu0 %v3374_v8 }
 0x398   :  { %2469 = vmatpush3.msra.mxu1 %v3379_v9  ;;  %1183 = vmatprep.subr.mxu0 %v3386_v10 }
 0x399   :  { %2470 = vmatprep.subr.mxu1 %v4135_v56  ;;  %1184 = vmatpush1.msra.mxu0 %v3393_v11 }
 0x39a   :  { %2471 = vmatpush3.msra.mxu1 %v3398_v12  ;;  %1185 = vmatprep.subr.mxu0 %v3405_v13 }
 0x39b   :  { %2472 = vmatprep.subr.mxu1 %v4135_v56  ;;  %1186 = vmatpush1.msra.mxu0 %v3412_v15 }
 0x39c   :  { %2473 = vmatpush3.msra.mxu1 %v3417_v16  ;;  %1187 = vmatprep.subr.mxu0 %v3694_v14 }
 0x39d   :  { %2474 = vmatprep.subr.mxu1 %v4135_v56  ;;  %1188 = vmatpush1.msra.mxu0 %v3701_v54 }
 0x39e   :  { %2475 = vmatpush3.msra.mxu1 %v3706_v57  ;;  %1414 = vmatprep.subr.mxu0 %v3465_v53 }
 0x39f   :  { %2479 = vmatprep.subr.mxu1 %v4135_v56 }
 0x404   :  { %v806_v58 = vpop.xlane.xlu1 %805 }
 0x405   :  { %v807_v59 = vmul.f32 0.03125, %v806_v58  ;;  %v883_v58 = vld [vmem:[%s4098_s4] sm:$0x7] }
 0x406   :  { %v810_v60 = vpop.xlane.xlu0 %809 }
 0x407   :  { %v812_v49 = vmul.f32 %v807_v59, %v807_v59  ;;  %v811_v2 = vmul.f32 0.03125, %v810_v60  ;;  %v814_v14 = vsub.f32 %v3448_v48, %v807_v59  ;;  %v888_v60 = vrot.slane %v883_v58, %v4145_v62 }
 0x409   :  { %v813_v3 = vsub.f32 %v811_v2, %v812_v49  ;;  %v892_v49 = vrot.slane %v883_v58, %v3163_v55 }
 0x40b   :  { %v815_v47 = vadd.f32 1e-05, %v813_v3  ;;  %v2135_v3 = vld [vmem:[%s4099_s0 + $0x50] sm:$0xff] }
 0x40d   :  { %2623 = vrsqrt.f32 %v815_v47  ;;  %v2134_v47 = vld [vmem:[%s4099_s0 + $0x48] sm:$0xff] }
 0x41a   :  { %v2624_v16 = vpop.eup %2623 }
 0x41b   :  { %v817_v15 = vmul.f32 %v2624_v16, %v814_v14 }
 0x41d   :  { %v818_v54 = vmul.f32 %v3267_v61, %v817_v15 }
 0x41f   :  { %v819_v57 = vadd.f32 %v3272_v4, %v818_v54 }
 0x421   :  { %2132 = vst [vmem:[%s4102_s9 + $0x10] sm:$0xff] %v819_v57 }
 0x43d   :  { %v966_v48 = vpop.f32.mrf.mxu0 }
 0x43e   :  { %v967_v16 = vadd.f32 %v966_v48, %v888_v60  ;;  %v1037_v14 = vpop.f32.mrf.mxu1  ;;  %v896_v60 = vrot.slane %v883_v58, %v3169_v1 }
 0x43f   :  { %v968_v57 = vpop.f32.mrf.mxu0 }
 0x440   :  { %v1041_v15 = vadd.f32 %v2134_v47, %v967_v16  ;;  %v2443_v59 = vpop.f32.mrf.mxu1  ;;  %v969_v2 = vadd.f32 %v968_v57, %v892_v49  ;;  %v1038_v48 = vadd.f32 %v1037_v14, %v896_v60  ;;  %v4156_v60 = vld [vmem:[#allocation13_spill] sm:$0xff] }
 0x442   :  { %v2137_v54 = vmul.f32 -1.442695, %v1041_v15  ;;  %v1048_v62 = vadd.f32 %v2135_v3, %v969_v2  ;;  %v2136_v15 = vld [vmem:[%s4099_s0 + $0x58] sm:$0xff]  ;;  %v4154_v2 = vld [vmem:[#allocation11_spill] sm:$0xff]  ;;  %v4155_v3 = vld [vmem:[#allocation12_spill] sm:$0xff] }
 0x444   :  { %2625 = vpow2.f32 %v2137_v54  ;;  %v2138_v4 = vmul.f32 -1.442695, %v1048_v62 }
 0x446   :  { %2627 = vpow2.f32 %v2138_v4 }
 0x451   :  { %v2626_v61 = vpop.eup %2625 }
 0x452   :  { %v1045_v53 = vadd.f32 1.0, %v2626_v61 }
 0x453   :  { %v2628_v47 = vpop.eup %2627 }
 0x454   :  { %2629 = vrcp.f32 %v1045_v53  ;;  %v1052_v49 = vadd.f32 1.0, %v2628_v47  ;;  %v4157_v47 = vld [vmem:[#allocation10_spill] sm:$0xff] }
 0x461   :  { %v2630_v16 = vpop.eup %2629 }
 0x462   :  { %v1055_v59 = vmul.f32 %v2630_v16, %v1038_v48 }
 0x464   :  { %v1056_v54 = vadd.f32 %v2136_v15, %v1055_v59 }
 0x466   :  { %2631 = vtanh.f32 %v1056_v54 }
 0x467   :  { %2633 = vrcp.f32 %v1052_v49 }
 0x473   :  { %v2632_v57 = vpop.eup %2631 }
 0x474   :  { %v1058_v62 = vsub.f32 %v3455_v17, %v2632_v57  ;;  %v2634_v61 = vpop.eup %2633  ;;  %v4153_v17 = vld [vmem:[#allocation9_spill] sm:$0xff] }
 0x476   :  { %v1059_v4 = vmul.f32 %v2634_v61, %v1058_v62 }
 0x478   :  { %v3734_v53 = vadd.f32 %v2632_v57, %v1059_v4 }
 0x47a   :  { %1062 = vadd.xlane.f32.xlu1 %v3734_v53  ;;  %v1065_v58 = vmul.f32 %v3734_v53, %v3734_v53  ;;  %v3741_v14 = vmul.f32 %v3255_v46, %v3734_v53  ;;  %v4152_v46 = vld [vmem:[#allocation8_spill] sm:$0xff] }
 0x47c   :  { %1066 = vadd.xlane.f32.xlu0 %v1065_v58  ;;  %1222 = vmatmul.mubr.f32.vlgmr.msra.gmra.mxu0 %v3741_v14  ;;  %v4158_v58 = vld [vmem:[#allocation2_spill] sm:$0xff] }
 0x47d   :  { %2477 = vmatmul.mubr.f32.vlgmr.msra.gmra.mxu1 %v3741_v14  ;;  %1415 = vmatpush1.msra.mxu0 %v3471_v45 }
 0x47e   :  { %2480 = vmatpush3.msra.mxu1 %v3476_v18  ;;  %1416 = vmatprep.subr.mxu0 %v3483_v19 }
 0x47f   :  { %2481 = vmatprep.subr.mxu1 %v4135_v56  ;;  %1417 = vmatpush1.msra.mxu0 %v3490_v21 }
 0x480   :  { %2482 = vmatpush3.msra.mxu1 %v3495_v22  ;;  %1418 = vmatprep.subr.mxu0 %v3502_v23 }
 0x481   :  { %2483 = vmatprep.subr.mxu1 %v4135_v56  ;;  %1419 = vmatpush1.msra.mxu0 %v3509_v24 }
 0x482   :  { %2484 = vmatpush3.msra.mxu1 %v3514_v25  ;;  %1420 = vmatprep.subr.mxu0 %v3521_v26 }
 0x483   :  { %2485 = vmatprep.subr.mxu1 %v4135_v56  ;;  %1421 = vmatpush1.msra.mxu0 %v3528_v27 }
 0x484   :  { %2486 = vmatpush3.msra.mxu1 %v3533_v28  ;;  %1422 = vmatprep.subr.mxu0 %v3540_v29 }
 0x485   :  { %2487 = vmatprep.subr.mxu1 %v4135_v56  ;;  %1423 = vmatpush1.msra.mxu0 %v3547_v30 }
 0x486   :  { %2488 = vmatpush3.msra.mxu1 %v3552_v31  ;;  %1424 = vmatprep.subr.mxu0 %v3559_v32 }
 0x487   :  { %2489 = vmatprep.subr.mxu1 %v4135_v56  ;;  %1425 = vmatpush1.msra.mxu0 %v3564_v33 }
 0x488   :  { %2490 = vmatpush3.msra.mxu1 %v3569_v34  ;;  %1426 = vmatprep.subr.mxu0 %v3576_v35 }
 0x489   :  { %2491 = vmatprep.subr.mxu1 %v4135_v56  ;;  %1427 = vmatpush1.msra.mxu0 %v3581_v36 }
 0x48a   :  { %2492 = vmatpush3.msra.mxu1 %v3586_v37  ;;  %1428 = vmatprep.subr.mxu0 %v3593_v38 }
 0x48b   :  { %2493 = vmatprep.subr.mxu1 %v4135_v56  ;;  %1429 = vmatpush1.msra.mxu0 %v3600_v39 }
 0x48c   :  { %2494 = vmatpush3.msra.mxu1 %v3605_v0  ;;  %1430 = vmatprep.subr.mxu0 %v3612_v40 }
 0x48d   :  { %2495 = vmatprep.subr.mxu1 %v4135_v56  ;;  %1431 = vmatpush1.msra.mxu0 %v3619_v41 }
 0x48e   :  { %2496 = vmatpush3.msra.mxu1 %v3624_v42  ;;  %1432 = vmatprep.subr.mxu0 %v3631_v44 }
 0x48f   :  { %2497 = vmatprep.subr.mxu1 %v4135_v56  ;;  %1433 = vmatpush1.msra.mxu0 %v3638_v51 }
 0x490   :  { %2498 = vmatpush3.msra.mxu1 %v3643_v52  ;;  %1434 = vmatprep.subr.mxu0 %v3650_v63 }
 0x491   :  { %2499 = vmatprep.subr.mxu1 %v4135_v56  ;;  %1435 = vmatpush1.msra.mxu0 %v3657_v43 }
 0x492   :  { %2500 = vmatpush3.msra.mxu1 %v3662_v50  ;;  %1436 = vmatprep.subr.mxu0 %v3669_v20 }
 0x493   :  { %2501 = vmatprep.subr.mxu1 %v4135_v56  ;;  %1437 = vmatpush1.msra.mxu0 %v3355_v5 }
 0x494   :  { %2502 = vmatpush3.msra.mxu1 %v3360_v6  ;;  %1438 = vmatprep.subr.mxu0 %v3367_v7 }
 0x495   :  { %2503 = vmatprep.subr.mxu1 %v4135_v56  ;;  %1439 = vmatpush1.msra.mxu0 %v3374_v8 }
 0x496   :  { %2504 = vmatpush3.msra.mxu1 %v3379_v9  ;;  %1440 = vmatprep.subr.mxu0 %v3386_v10 }
 0x497   :  { %2505 = vmatprep.subr.mxu1 %v4135_v56  ;;  %1441 = vmatpush1.msra.mxu0 %v3393_v11 }
 0x498   :  { %2506 = vmatpush3.msra.mxu1 %v3398_v12  ;;  %1442 = vmatprep.subr.mxu0 %v3405_v13 }
 0x499   :  { %2507 = vmatprep.subr.mxu1 %v4135_v56  ;;  %1443 = vmatpush1.msra.mxu0 %v4152_v46 }
 0x49a   :  { %2508 = vmatpush3.msra.mxu1 %v4153_v17  ;;  %1444 = vmatprep.subr.mxu0 %v4154_v2 }
 0x49b   :  { %2509 = vmatprep.subr.mxu1 %v4135_v56  ;;  %1445 = vmatpush1.msra.mxu0 %v4155_v3  ;;  %v4159_v3 = vld [vmem:[#allocation7_spill] sm:$0xff] }
 0x49c   :  { %1478 = vmatprep.mubr.f32.mxu0 %v4135_v56  ;;  %2510 = vmatpush3.msra.mxu1 %v4156_v60 }
 0x49d   :  { %2511 = vmatprep.mubr.msk.f32.mxu1 %vm2689_vm0, %v4135_v56  ;;  %1671 = vmatprep.subr.mxu0 %v4157_v47 }
 0x49e   :  { %2514 = vmatprep.subr.mxu1 %v4135_v56 }
 0x503   :  { %v1063_v48 = vpop.xlane.xlu1 %1062 }
 0x504   :  { %v1064_v16 = vmul.f32 0.03125, %v1063_v48  ;;  %v1140_v48 = vld [vmem:[%s4098_s4] sm:$0x7] }
 0x505   :  { %v1067_v15 = vpop.xlane.xlu0 %1066 }
 0x506   :  { %v1069_v59 = vmul.f32 %v1064_v16, %v1064_v16  ;;  %v1068_v54 = vmul.f32 0.03125, %v1067_v15  ;;  %v1071_v62 = vsub.f32 %v3734_v53, %v1064_v16  ;;  %v4160_v15 = vld [vmem:[#allocation6_spill] sm:$0xff] }
 0x507   :  { %v2141_v53 = vld [vmem:[%s4099_s0 + $0x60] sm:$0xff] }
 0x508   :  { %v1070_v49 = vsub.f32 %v1068_v54, %v1069_v59  ;;  %v1145_v59 = vrot.slane %v1140_v48, %v4160_v15 }
 0x50a   :  { %v1072_v57 = vadd.f32 1e-05, %v1070_v49 }
 0x50c   :  { %2635 = vrsqrt.f32 %v1072_v57 }
 0x519   :  { %v2636_v61 = vpop.eup %2635 }
 0x51a   :  { %v1074_v4 = vmul.f32 %v2636_v61, %v1071_v62 }
 0x51c   :  { %v1075_v60 = vmul.f32 %v4158_v58, %v1074_v4  ;;  %v2142_v4 = vld [vmem:[%s4099_s0 + $0x68] sm:$0xff] }
 0x51e   :  { %v1076_v2 = vadd.f32 %v4159_v3, %v1075_v60  ;;  %v1149_v60 = vrot.slane %v1140_v48, %v3163_v55 }
 0x520   :  { %2139 = vst [vmem:[%s4102_s9 + $0x18] sm:$0xff] %v1076_v2 }
 0x53c   :  { %v1223_v16 = vpop.f32.mrf.mxu0 }
 0x53d   :  { %v1224_v54 = vadd.f32 %v1223_v16, %v1145_v59  ;;  %v1294_v49 = vpop.f32.mrf.mxu1  ;;  %v1153_v59 = vrot.slane %v1140_v48, %v3169_v1 }
 0x53e   :  { %v1225_v2 = vpop.f32.mrf.mxu0 }
 0x53f   :  { %v1298_v57 = vadd.f32 %v2141_v53, %v1224_v54  ;;  %v2478_v62 = vpop.f32.mrf.mxu1  ;;  %v1226_v61 = vadd.f32 %v1225_v2, %v1149_v60  ;;  %v1295_v16 = vadd.f32 %v1294_v49, %v1153_v59  ;;  %v4161_v49 = vld [vmem:[#allocation3_spill] sm:$0xff] }
 0x541   :  { %v2144_v3 = vmul.f32 -1.442695, %v1298_v57  ;;  %v1305_v58 = vadd.f32 %v2142_v4, %v1226_v61  ;;  %v2143_v57 = vld [vmem:[%s4099_s0 + $0x70] sm:$0xff] }
 0x543   :  { %2637 = vpow2.f32 %v2144_v3  ;;  %v2145_v15 = vmul.f32 -1.442695, %v1305_v58 }
 0x545   :  { %2639 = vpow2.f32 %v2145_v15 }
 0x550   :  { %v2638_v47 = vpop.eup %2637 }
 0x551   :  { %v1302_v17 = vadd.f32 1.0, %v2638_v47 }
 0x552   :  { %v2640_v53 = vpop.eup %2639 }
 0x553   :  { %2641 = vrcp.f32 %v1302_v17  ;;  %v1309_v60 = vadd.f32 1.0, %v2640_v53 }
 0x560   :  { %v2642_v54 = vpop.eup %2641 }
 0x561   :  { %v1312_v62 = vmul.f32 %v2642_v54, %v1295_v16  ;;  %v3916_v54 = vld [vmem:[%s4100_s7] ss:$0 sm:$0xff] }
 0x563   :  { %v1313_v3 = vadd.f32 %v2143_v57, %v1312_v62  ;;  %v3922_v62 = vld [vmem:[%s4101_s8] ss:$0 sm:$0xff] }
 0x565   :  { %2643 = vtanh.f32 %v1313_v3 }
 0x566   :  { %2645 = vrcp.f32 %v1309_v60  ;;  %v1397_v60 = vld [vmem:[%s4098_s4] sm:$0x7] }
 0x572   :  { %v2644_v2 = vpop.eup %2643 }
 0x573   :  { %v1315_v61 = vsub.f32 %v3741_v14, %v2644_v2  ;;  %v2646_v47 = vpop.eup %2645 }
 0x575   :  { %v1316_v15 = vmul.f32 %v2646_v47, %v1315_v61  ;;  %v2148_v47 = vld [vmem:[%s4099_s0 + $0x78] sm:$0xff] }
 0x577   :  { %v3834_v17 = vadd.f32 %v2644_v2, %v1316_v15  ;;  %v4167_v2 = vld [vmem:[#allocation6_spill] sm:$0xff] }
 0x578   :  { %v1402_v61 = vrot.slane %v1397_v60, %v4167_v2 }
 0x579   :  { %1319 = vadd.xlane.f32.xlu1 %v3834_v17  ;;  %v1322_v48 = vmul.f32 %v3834_v17, %v3834_v17  ;;  %v3841_v4 = vmul.f32 %v4161_v49, %v3834_v17 }
 0x57b   :  { %1323 = vadd.xlane.f32.xlu0 %v1322_v48  ;;  %1479 = vmatmul.mubr.f32.vlgmr.msra.gmra.mxu0 %v3841_v4 }
 0x57c   :  { %2512 = vmatmul.mubr.f32.vlgmr.msra.gmra.mxu1 %v3841_v4  ;;  %1672 = vmatpush1.msra.mxu0 %v3471_v45 }
 0x57d   :  { %2515 = vmatpush3.msra.mxu1 %v3476_v18  ;;  %1673 = vmatprep.subr.mxu0 %v3483_v19 }
 0x57e   :  { %2516 = vmatprep.subr.mxu1 %v4135_v56  ;;  %1674 = vmatpush1.msra.mxu0 %v3490_v21 }
 0x57f   :  { %2517 = vmatpush3.msra.mxu1 %v3495_v22  ;;  %1675 = vmatprep.subr.mxu0 %v3502_v23 }
 0x580   :  { %2518 = vmatprep.subr.mxu1 %v4135_v56  ;;  %1676 = vmatpush1.msra.mxu0 %v3509_v24 }
 0x581   :  { %2519 = vmatpush3.msra.mxu1 %v3514_v25  ;;  %1677 = vmatprep.subr.mxu0 %v3521_v26 }
 0x582   :  { %2520 = vmatprep.subr.mxu1 %v4135_v56  ;;  %1678 = vmatpush1.msra.mxu0 %v3528_v27 }
 0x583   :  { %2521 = vmatpush3.msra.mxu1 %v3533_v28  ;;  %1679 = vmatprep.subr.mxu0 %v3540_v29 }
 0x584   :  { %2522 = vmatprep.subr.mxu1 %v4135_v56  ;;  %1680 = vmatpush1.msra.mxu0 %v3547_v30 }
 0x585   :  { %2523 = vmatpush3.msra.mxu1 %v3552_v31  ;;  %1681 = vmatprep.subr.mxu0 %v3559_v32 }
 0x586   :  { %2524 = vmatprep.subr.mxu1 %v4135_v56  ;;  %1682 = vmatpush1.msra.mxu0 %v3564_v33 }
 0x587   :  { %2525 = vmatpush3.msra.mxu1 %v3569_v34  ;;  %1683 = vmatprep.subr.mxu0 %v3576_v35 }
 0x588   :  { %2526 = vmatprep.subr.mxu1 %v4135_v56  ;;  %1684 = vmatpush1.msra.mxu0 %v3581_v36 }
 0x589   :  { %2527 = vmatpush3.msra.mxu1 %v3586_v37  ;;  %1685 = vmatprep.subr.mxu0 %v3593_v38 }
 0x58a   :  { %2528 = vmatprep.subr.mxu1 %v4135_v56  ;;  %1686 = vmatpush1.msra.mxu0 %v3600_v39 }
 0x58b   :  { %2529 = vmatpush3.msra.mxu1 %v3605_v0  ;;  %1687 = vmatprep.subr.mxu0 %v3612_v40 }
 0x58c   :  { %2530 = vmatprep.subr.mxu1 %v4135_v56  ;;  %1688 = vmatpush1.msra.mxu0 %v3619_v41 }
 0x58d   :  { %2531 = vmatpush3.msra.mxu1 %v3624_v42  ;;  %1689 = vmatprep.subr.mxu0 %v3631_v44 }
 0x58e   :  { %2532 = vmatprep.subr.mxu1 %v4135_v56  ;;  %1690 = vmatpush1.msra.mxu0 %v3638_v51 }
 0x58f   :  { %2533 = vmatpush3.msra.mxu1 %v3643_v52  ;;  %1691 = vmatprep.subr.mxu0 %v3650_v63 }
 0x590   :  { %2534 = vmatprep.subr.mxu1 %v4135_v56  ;;  %1692 = vmatpush1.msra.mxu0 %v3657_v43 }
 0x591   :  { %2535 = vmatpush3.msra.mxu1 %v3662_v50  ;;  %1693 = vmatprep.subr.mxu0 %v3669_v20 }
 0x592   :  { %2536 = vmatprep.subr.mxu1 %v4135_v56  ;;  %1694 = vmatpush1.msra.mxu0 %v3355_v5  ;;  %v4162_v5 = vld [vmem:[#allocation9_spill] sm:$0xff] }
 0x593   :  { %2537 = vmatpush3.msra.mxu1 %v3360_v6  ;;  %1695 = vmatprep.subr.mxu0 %v3367_v7  ;;  %v4163_v6 = vld [vmem:[#allocation11_spill] sm:$0xff]  ;;  %v4164_v7 = vld [vmem:[#allocation12_spill] sm:$0xff] }
 0x594   :  { %2538 = vmatprep.subr.mxu1 %v4135_v56  ;;  %1696 = vmatpush1.msra.mxu0 %v3374_v8  ;;  %v4165_v8 = vld [vmem:[#allocation13_spill] sm:$0xff] }
 0x595   :  { %2539 = vmatpush3.msra.mxu1 %v3379_v9  ;;  %1697 = vmatprep.subr.mxu0 %v3386_v10  ;;  %v4166_v9 = vld [vmem:[#allocation10_spill] sm:$0xff] }
 0x596   :  { %2540 = vmatprep.subr.mxu1 %v4135_v56  ;;  %1698 = vmatpush1.msra.mxu0 %v3393_v11 }
 0x597   :  { %2541 = vmatpush3.msra.mxu1 %v3398_v12  ;;  %1699 = vmatprep.subr.mxu0 %v3405_v13 }
 0x598   :  { %2542 = vmatprep.subr.mxu1 %v4135_v56  ;;  %1700 = vmatpush1.msra.mxu0 %v4152_v46 }
 0x599   :  { %2543 = vmatpush3.msra.mxu1 %v4162_v5  ;;  %1701 = vmatprep.subr.mxu0 %v4163_v6 }
 0x59a   :  { %2544 = vmatprep.subr.mxu1 %v4135_v56  ;;  %1702 = vmatpush1.msra.mxu0 %v4164_v7 }
 0x59b   :  { %1735 = vmatprep.mubr.f32.mxu0 %v4135_v56  ;;  %2545 = vmatpush3.msra.mxu1 %v4165_v8 }
 0x59c   :  { %2546 = vmatprep.mubr.msk.f32.mxu1 %vm2689_vm0, %v4135_v56  ;;  %1928 = vmatprep.subr.mxu0 %v4166_v9 }
 0x59d   :  { %2549 = vmatprep.subr.mxu1 %v4135_v56 }
 0x602   :  { %v1320_v10 = vpop.xlane.xlu1 %1319 }
 0x603   :  { %v1321_v11 = vmul.f32 0.03125, %v1320_v10  ;;  %v1406_v10 = vrot.slane %v1397_v60, %v3163_v55 }
 0x604   :  { %v1324_v12 = vpop.xlane.xlu0 %1323 }
 0x605   :  { %v1326_v13 = vmul.f32 %v1321_v11, %v1321_v11  ;;  %v1325_v14 = vmul.f32 0.03125, %v1324_v12  ;;  %v1328_v59 = vsub.f32 %v3834_v17, %v1321_v11 }
 0x607   :  { %v1327_v46 = vsub.f32 %v1325_v14, %v1326_v13  ;;  %v2149_v13 = vld [vmem:[%s4099_s0 + $0x80] sm:$0xff] }
 0x609   :  { %v1329_v58 = vadd.f32 1e-05, %v1327_v46 }
 0x60b   :  { %2647 = vrsqrt.f32 %v1329_v58 }
 0x618   :  { %v2648_v53 = vpop.eup %2647 }
 0x619   :  { %v1331_v16 = vmul.f32 %v2648_v53, %v1328_v59  ;;  %v1410_v53 = vrot.slane %v1397_v60, %v3169_v1 }
 0x61b   :  { %v1332_v57 = vmul.f32 %v3916_v54, %v1331_v16 }
 0x61d   :  { %v1333_v3 = vadd.f32 %v3922_v62, %v1332_v57 }
 0x61f   :  { %2146 = vst [vmem:[%s4102_s9 + $0x20] sm:$0xff] %v1333_v3 }
 0x63b   :  { %v1480_v15 = vpop.f32.mrf.mxu0 }
 0x63c   :  { %v1481_v17 = vadd.f32 %v1480_v15, %v1402_v61  ;;  %v1551_v48 = vpop.f32.mrf.mxu1  ;;  %v2150_v61 = vld [vmem:[%s4099_s0 + $0x88] sm:$0xff] }
 0x63d   :  { %v1482_v11 = vpop.f32.mrf.mxu0  ;;  %v1552_v57 = vadd.f32 %v1551_v48, %v1410_v53  ;;  %v4168_v48 = vld [vmem:[#allocation4_spill] sm:$0xff] }
 0x63e   :  { %v1555_v49 = vadd.f32 %v2148_v47, %v1481_v17  ;;  %v2513_v5 = vpop.f32.mrf.mxu1  ;;  %v1483_v12 = vadd.f32 %v1482_v11, %v1406_v10 }
 0x640   :  { %v2151_v9 = vmul.f32 -1.442695, %v1555_v49  ;;  %v1562_v14 = vadd.f32 %v2149_v13, %v1483_v12 }
 0x642   :  { %2649 = vpow2.f32 %v2151_v9  ;;  %v2152_v46 = vmul.f32 -1.442695, %v1562_v14 }
 0x644   :  { %2651 = vpow2.f32 %v2152_v46 }
 0x64f   :  { %v2650_v58 = vpop.eup %2649 }
 0x650   :  { %v1559_v59 = vadd.f32 1.0, %v2650_v58 }
 0x651   :  { %v2652_v16 = vpop.eup %2651 }
 0x652   :  { %2653 = vrcp.f32 %v1559_v59  ;;  %v1566_v17 = vadd.f32 1.0, %v2652_v16  ;;  %v2157_v16 = vld [vmem:[%s4099_s0 + $0xa0] sm:$0xff] }
 0x65f   :  { %v2654_v3 = vpop.eup %2653 }
 0x660   :  { %v1569_v47 = vmul.f32 %v2654_v3, %v1552_v57 }
 0x662   :  { %v1570_v15 = vadd.f32 %v2150_v61, %v1569_v47 }
 0x664   :  { %2655 = vtanh.f32 %v1570_v15 }
 0x665   :  { %2657 = vrcp.f32 %v1566_v17 }
 0x671   :  { %v2656_v49 = vpop.eup %2655 }
 0x672   :  { %v1572_v5 = vsub.f32 %v3841_v4, %v2656_v49  ;;  %v2658_v9 = vpop.eup %2657 }
 0x674   :  { %v1573_v10 = vmul.f32 %v2658_v9, %v1572_v5 }
 0x676   :  { %v3944_v11 = vadd.f32 %v2656_v49, %v1573_v10  ;;  %v4169_v10 = vld [vmem:[#allocation5_spill] sm:$0xff] }
 0x678   :  { %1576 = vadd.xlane.f32.xlu1 %v3944_v11  ;;  %v1579_v60 = vmul.f32 %v3944_v11, %v3944_v11  ;;  %v3951_v12 = vmul.f32 %v4168_v48, %v3944_v11 }
 0x67a   :  { %1580 = vadd.xlane.f32.xlu0 %v1579_v60  ;;  %1736 = vmatmul.mubr.f32.vlgmr.msra.gmra.mxu0 %v3951_v12 }
 0x67b   :  { %2547 = vmatmul.mubr.f32.vlgmr.msra.gmra.mxu1 %v3951_v12  ;;  %1929 = vmatpush1.msra.mxu0 %v3471_v45  ;;  %v1875_v45 = vld [vmem:[%s4094_s3 + $0x60] sm:$0xff] }
 0x67c   :  { %2550 = vmatpush3.msra.mxu1 %v3476_v18  ;;  %1930 = vmatprep.subr.mxu0 %v3483_v19  ;;  %v1877_v18 = vld [vmem:[%s4094_s3 + $0x70] sm:$0xff] }
 0x67d   :  { %2551 = vmatprep.subr.mxu1 %v4135_v56  ;;  %1931 = vmatpush1.msra.mxu0 %v3490_v21  ;;  %v1873_v19 = vld [vmem:[%s4094_s3 + $0x50] sm:$0xff]  ;;  %v1872_v21 = vld [vmem:[%s4094_s3 + $0x48] sm:$0xff] }
 0x67e   :  { %2552 = vmatpush3.msra.mxu1 %v3495_v22  ;;  %1932 = vmatprep.subr.mxu0 %v3502_v23  ;;  %v1874_v22 = vld [vmem:[%s4094_s3 + $0x58] sm:$0xff] }
 0x67f   :  { %2553 = vmatprep.subr.mxu1 %v4135_v56  ;;  %1933 = vmatpush1.msra.mxu0 %v3509_v24  ;;  %v1870_v23 = vld [vmem:[%s4094_s3 + $0x38] sm:$0xff]  ;;  %v1869_v24 = vld [vmem:[%s4094_s3 + $0x30] sm:$0xff] }
 0x680   :  { %2554 = vmatpush3.msra.mxu1 %v3514_v25  ;;  %1934 = vmatprep.subr.mxu0 %v3521_v26  ;;  %v1871_v25 = vld [vmem:[%s4094_s3 + $0x40] sm:$0xff] }
 0x681   :  { %2555 = vmatprep.subr.mxu1 %v4135_v56  ;;  %1935 = vmatpush1.msra.mxu0 %v3528_v27  ;;  %v1867_v26 = vld [vmem:[%s4094_s3 + $0x20] sm:$0xff]  ;;  %v1866_v27 = vld [vmem:[%s4094_s3 + $0x18] sm:$0xff] }
 0x682   :  { %2556 = vmatpush3.msra.mxu1 %v3533_v28  ;;  %1936 = vmatprep.subr.mxu0 %v3540_v29  ;;  %v1868_v28 = vld [vmem:[%s4094_s3 + $0x28] sm:$0xff] }
 0x683   :  { %2557 = vmatprep.subr.mxu1 %v4135_v56  ;;  %1937 = vmatpush1.msra.mxu0 %v3547_v30 }
 0x684   :  { %2558 = vmatpush3.msra.mxu1 %v3552_v31  ;;  %1938 = vmatprep.subr.mxu0 %v3559_v32 }
 0x685   :  { %2559 = vmatprep.subr.mxu1 %v4135_v56  ;;  %1939 = vmatpush1.msra.mxu0 %v3564_v33 }
 0x686   :  { %2560 = vmatpush3.msra.mxu1 %v3569_v34  ;;  %1940 = vmatprep.subr.mxu0 %v3576_v35 }
 0x687   :  { %2561 = vmatprep.subr.mxu1 %v4135_v56  ;;  %1941 = vmatpush1.msra.mxu0 %v3581_v36 }
 0x688   :  { %2562 = vmatpush3.msra.mxu1 %v3586_v37  ;;  %1942 = vmatprep.subr.mxu0 %v3593_v38 }
 0x689   :  { %2563 = vmatprep.subr.mxu1 %v4135_v56  ;;  %1943 = vmatpush1.msra.mxu0 %v3600_v39 }
 0x68a   :  { %2564 = vmatpush3.msra.mxu1 %v3605_v0  ;;  %1944 = vmatprep.subr.mxu0 %v3612_v40  ;;  %v1654_v0 = vld [vmem:[%s4098_s4] sm:$0x7] }
 0x68b   :  { %2565 = vmatprep.subr.mxu1 %v4135_v56  ;;  %1945 = vmatpush1.msra.mxu0 %v3619_v41  ;;  %v1659_v40 = vrot.slane %v1654_v0, %v4167_v2  ;;  %v2155_v41 = vld [vmem:[%s4099_s0 + $0x90] sm:$0xff]  ;;  %v1667_v46 = vrot.slane %v1654_v0, %v3169_v1 }
 0x68c   :  { %2566 = vmatpush3.msra.mxu1 %v3624_v42  ;;  %1946 = vmatprep.subr.mxu0 %v3631_v44 }
 0x68d   :  { %2567 = vmatprep.subr.mxu1 %v4135_v56  ;;  %1947 = vmatpush1.msra.mxu0 %v3638_v51 }
 0x68e   :  { %2568 = vmatpush3.msra.mxu1 %v3643_v52  ;;  %1948 = vmatprep.subr.mxu0 %v3650_v63 }
 0x68f   :  { %2569 = vmatprep.subr.mxu1 %v4135_v56  ;;  %1949 = vmatpush1.msra.mxu0 %v3657_v43 }
 0x690   :  { %2570 = vmatpush3.msra.mxu1 %v3662_v50  ;;  %1950 = vmatprep.subr.mxu0 %v3669_v20  ;;  %v1663_v50 = vrot.slane %v1654_v0, %v3163_v55 }
 0x691   :  { %2571 = vmatprep.subr.mxu1 %v4135_v56  ;;  %1992 = vmatprep.mubr.f32.mxu0 %v4135_v56 }
 0x692   :  { %2581 = vmatprep.mubr.msk.f32.mxu1 %vm2689_vm0, %v4135_v56  ;;  %1951 = vmatpush1.msra.mxu0 %v1875_v45 }
 0x693   :  { %2572 = vmatpush3.msra.mxu1 %v1877_v18  ;;  %1952 = vmatprep.subr.mxu0 %v1873_v19 }
 0x694   :  { %2573 = vmatprep.subr.mxu1 %v4135_v56  ;;  %1953 = vmatpush1.msra.mxu0 %v1872_v21 }
 0x695   :  { %2574 = vmatpush3.msra.mxu1 %v1874_v22  ;;  %1954 = vmatprep.subr.mxu0 %v1870_v23 }
 0x696   :  { %2575 = vmatprep.subr.mxu1 %v4135_v56  ;;  %1955 = vmatpush1.msra.mxu0 %v1869_v24 }
 0x697   :  { %2576 = vmatpush3.msra.mxu1 %v1871_v25  ;;  %1956 = vmatprep.subr.mxu0 %v1867_v26 }
 0x698   :  { %2577 = vmatprep.subr.mxu1 %v4135_v56  ;;  %1957 = vmatpush1.msra.mxu0 %v1866_v27  ;;  %v1911_v27 = vld [vmem:[%s4098_s4] sm:$0x7] }
 0x699   :  { %2578 = vmatpush3.msra.mxu1 %v1868_v28  ;;  %1958 = vmatprep.subr.mxu0 %v4163_v6  ;;  %v2156_v6 = vld [vmem:[%s4099_s0 + $0x98] sm:$0xff]  ;;  %v1916_v28 = vrot.slane %v1911_v27, %v4167_v2 }
 0x69a   :  { %2579 = vmatprep.subr.mxu1 %v4135_v56  ;;  %1959 = vmatpush1.msra.mxu0 %v4164_v7 }
 0x69b   :  { %2580 = vmatpush3.msra.mxu1 %v4165_v8 }
 0x701   :  { %v1577_v29 = vpop.xlane.xlu1 %1576 }
 0x702   :  { %v1578_v30 = vmul.f32 0.03125, %v1577_v29  ;;  %v2162_v29 = vld [vmem:[%s4099_s0 + $0xa8] sm:$0xff] }
 0x703   :  { %v1581_v31 = vpop.xlane.xlu0 %1580 }
 0x704   :  { %v1583_v32 = vmul.f32 %v1578_v30, %v1578_v30  ;;  %v1582_v33 = vmul.f32 0.03125, %v1581_v31  ;;  %v1585_v36 = vsub.f32 %v3944_v11, %v1578_v30 }
 0x706   :  { %v1584_v34 = vsub.f32 %v1582_v33, %v1583_v32 }
 0x708   :  { %v1586_v35 = vadd.f32 1e-05, %v1584_v34 }
 0x70a   :  { %2659 = vrsqrt.f32 %v1586_v35 }
 0x717   :  { %v2660_v37 = vpop.eup %2659 }
 0x718   :  { %v1588_v38 = vmul.f32 %v2660_v37, %v1585_v36  ;;  %v1920_v36 = vrot.slane %v1911_v27, %v3163_v55  ;;  %v2164_v55 = vld [vmem:[%s4099_s0 + $0xb8] sm:$0xff] }
 0x71a   :  { %v1589_v39 = vmul.f32 %v3916_v54, %v1588_v38 }
 0x71c   :  { %v1590_v56 = vadd.f32 %v3922_v62, %v1589_v39  ;;  %v2163_v39 = vld [vmem:[%s4099_s0 + $0xb0] sm:$0xff] }
 0x71e   :  { %2153 = vst [vmem:[%s4102_s9 + $0x28] sm:$0xff] %v1590_v56 }
 0x73a   :  { %v1737_v42 = vpop.f32.mrf.mxu0 }
 0x73b   :  { %v1738_v44 = vadd.f32 %v1737_v42, %v1659_v40  ;;  %v1808_v51 = vpop.f32.mrf.mxu1 }
 0x73c   :  { %v1739_v20 = vpop.f32.mrf.mxu0  ;;  %v1809_v59 = vadd.f32 %v1808_v51, %v1667_v46 }
 0x73d   :  { %v1812_v52 = vadd.f32 %v2155_v41, %v1738_v44  ;;  %v2548_v63 = vpop.f32.mrf.mxu1  ;;  %v1740_v4 = vadd.f32 %v1739_v20, %v1663_v50  ;;  %v1924_v41 = vrot.slane %v1911_v27, %v3169_v1 }
 0x73f   :  { %v2158_v43 = vmul.f32 -1.442695, %v1812_v52  ;;  %v1819_v7 = vadd.f32 %v2156_v6, %v1740_v4 }
 0x741   :  { %2661 = vpow2.f32 %v2158_v43  ;;  %v2159_v8 = vmul.f32 -1.442695, %v1819_v7 }
 0x743   :  { %2663 = vpow2.f32 %v2159_v8 }
 0x74e   :  { %v2662_v13 = vpop.eup %2661 }
 0x74f   :  { %v1816_v14 = vadd.f32 1.0, %v2662_v13 }
 0x750   :  { %v2664_v58 = vpop.eup %2663 }
 0x751   :  { %2665 = vrcp.f32 %v1816_v14  ;;  %v1823_v61 = vadd.f32 1.0, %v2664_v58 }
 0x75e   :  { %v2666_v53 = vpop.eup %2665 }
 0x75f   :  { %v1826_v57 = vmul.f32 %v2666_v53, %v1809_v59 }
 0x761   :  { %v1827_v3 = vadd.f32 %v2157_v16, %v1826_v57 }
 0x763   :  { %2667 = vtanh.f32 %v1827_v3 }
 0x764   :  { %2669 = vrcp.f32 %v1823_v61 }
 0x770   :  { %v2668_v47 = vpop.eup %2667 }
 0x771   :  { %v1829_v15 = vsub.f32 %v3951_v12, %v2668_v47  ;;  %v2670_v17 = vpop.eup %2669 }
 0x773   :  { %v1830_v49 = vmul.f32 %v2670_v17, %v1829_v15 }
 0x775   :  { %v1831_v5 = vadd.f32 %v2668_v47, %v1830_v49 }
 0x777   :  { %1833 = vadd.xlane.f32.xlu1 %v1831_v5  ;;  %v1836_v9 = vmul.f32 %v1831_v5, %v1831_v5  ;;  %v1858_v11 = vmul.f32 %v4169_v10, %v1831_v5 }
 0x779   :  { %1837 = vadd.xlane.f32.xlu0 %v1836_v9  ;;  %1993 = vmatmul.mubr.f32.vlgmr.msra.gmra.mxu0 %v1858_v11 }
 0x77a   :  { %2582 = vmatmul.mubr.f32.vlgmr.msra.gmra.mxu1 %v1858_v11 }
 0x800   :  { %v1834_v60 = vpop.xlane.xlu1 %1833 }
 0x801   :  { %v1835_v48 = vmul.f32 0.03125, %v1834_v60 }
 0x802   :  { %v1838_v45 = vpop.xlane.xlu0 %1837 }
 0x803   :  { %v1840_v18 = vmul.f32 %v1835_v48, %v1835_v48  ;;  %v1839_v19 = vmul.f32 0.03125, %v1838_v45  ;;  %v1842_v23 = vsub.f32 %v1831_v5, %v1835_v48 }
 0x805   :  { %v1841_v21 = vsub.f32 %v1839_v19, %v1840_v18 }
 0x807   :  { %v1843_v22 = vadd.f32 1e-05, %v1841_v21 }
 0x809   :  { %2671 = vrsqrt.f32 %v1843_v22 }
 0x816   :  { %v2672_v12 = vpop.eup %2671 }
 0x817   :  { %v1845_v24 = vmul.f32 %v2672_v12, %v1842_v23 }
 0x819   :  { %v1846_v25 = vmul.f32 %v3916_v54, %v1845_v24 }
 0x81b   :  { %v1847_v26 = vadd.f32 %v3922_v62, %v1846_v25 }
 0x81d   :  { %2160 = vst [vmem:[%s4102_s9 + $0x30] sm:$0xff] %v1847_v26 }
 0x839   :  { %v1994_v30 = vpop.f32.mrf.mxu0 }
 0x83a   :  { %v1995_v31 = vadd.f32 %v1994_v30, %v1916_v28  ;;  %v2065_v32 = vpop.f32.mrf.mxu1 }
 0x83b   :  { %v1996_v37 = vpop.f32.mrf.mxu0  ;;  %v2066_v44 = vadd.f32 %v2065_v32, %v1924_v41 }
 0x83c   :  { %v2069_v33 = vadd.f32 %v2162_v29, %v1995_v31  ;;  %v2583_v34 = vpop.f32.mrf.mxu1  ;;  %v1997_v38 = vadd.f32 %v1996_v37, %v1920_v36 }
 0x83e   :  { %v2165_v35 = vmul.f32 -1.442695, %v2069_v33  ;;  %v2076_v2 = vadd.f32 %v2163_v39, %v1997_v38 }
 0x840   :  { %2673 = vpow2.f32 %v2165_v35  ;;  %v2166_v56 = vmul.f32 -1.442695, %v2076_v2 }
 0x842   :  { %2675 = vpow2.f32 %v2166_v56 }
 0x84d   :  { %v2674_v0 = vpop.eup %2673 }
 0x84e   :  { %v2073_v40 = vadd.f32 1.0, %v2674_v0 }
 0x84f   :  { %v2676_v42 = vpop.eup %2675 }
 0x850   :  { %2677 = vrcp.f32 %v2073_v40  ;;  %v2080_v43 = vadd.f32 1.0, %v2676_v42 }
 0x85d   :  { %v2678_v51 = vpop.eup %2677 }
 0x85e   :  { %v2083_v52 = vmul.f32 %v2678_v51, %v2066_v44 }
 0x860   :  { %v2084_v63 = vadd.f32 %v2164_v55, %v2083_v52 }
 0x862   :  { %2679 = vtanh.f32 %v2084_v63 }
 0x863   :  { %2681 = vrcp.f32 %v2080_v43 }
 0x86f   :  { %v2680_v50 = vpop.eup %2679 }
 0x870   :  { %v2086_v20 = vsub.f32 %v1858_v11, %v2680_v50  ;;  %v2682_v4 = vpop.eup %2681 }
 0x872   :  { %v2087_v6 = vmul.f32 %v2682_v4, %v2086_v20 }
 0x874   :  { %v2088_v7 = vadd.f32 %v2680_v50, %v2087_v6 }
 0x876   :  { %2090 = vadd.xlane.f32.xlu1 %v2088_v7  ;;  %2089 = vst [vmem:[%s4103_s10] sm:$0xff] %v2088_v7  ;;  %v2093_v1 = vmul.f32 %v2088_v7, %v2088_v7 }
 0x878   :  { %2094 = vadd.xlane.f32.xlu0 %v2093_v1 }
 0x8ff   :  { %v2091_v8 = vpop.xlane.xlu1 %2090 }
 0x900   :  { %v2092_v13 = vmul.f32 0.03125, %v2091_v8 }
 0x901   :  { %v2095_v14 = vpop.xlane.xlu0 %2094 }
 0x902   :  { %v2097_v46 = vmul.f32 %v2092_v13, %v2092_v13  ;;  %v2096_v58 = vmul.f32 0.03125, %v2095_v14  ;;  %v2099_v16 = vsub.f32 %v2088_v7, %v2092_v13 }
 0x904   :  { %v2098_v59 = vsub.f32 %v2096_v58, %v2097_v46 }
 0x906   :  { %v2100_v53 = vadd.f32 1e-05, %v2098_v59 }
 0x908   :  { %2683 = vrsqrt.f32 %v2100_v53 }
 0x915   :  { %v2684_v57 = vpop.eup %2683 }
 0x916   :  { %v2102_v3 = vmul.f32 %v2684_v57, %v2099_v16 }
 0x918   :  { %v2103_v61 = vmul.f32 %v3916_v54, %v2102_v3 }
 0x91a   :  { %v2104_v47 = vadd.f32 %v3922_v62, %v2103_v61 }
 0x91c   :  { %2167 = vst [vmem:[%s4102_s9 + $0x38] sm:$0xff] %v2104_v47 }

</bundles_post_ra>
